<compile_context>
chip_gen: v5e
topology: v5e:2x2
jax: 0.10.0
libtpu: 0.0.40
codegen_flags: <defaults>
</compile_context>

<pallas_src>
import functools
import math

import jax
import jax.numpy as jnp
from jax.experimental import pallas as pl
from jax.experimental.pallas import tpu as pltpu


VMEM_SPEC = pl.BlockSpec(memory_space=pltpu.MemorySpace.VMEM)


# ---------------------------------------------------------------------------
# Fused Pallas kernel: expand(1x1)+tanh -> depthwise 3x3 + tanh -> pointwise 1x1
# ---------------------------------------------------------------------------
def _fused_block_kernel(*refs, W, R, has_expand):
    """Activations are 2D: rows = flattened (B, H, W) on sublanes, channels on lanes.

    refs (has_expand=True):  x_ref (R, Cin), ew_ref (Cin, Chid),
                             dw_ref (9, 1, Chid), pw_ref (Chid, Cout),
                             o_ref (R, Cout), h_pad (R_pad, Chid) scratch
    refs (has_expand=False): x_ref (R, Chid), dw_ref, pw_ref, o_ref, h_pad
    """
    if has_expand:
        x_ref, ew_ref, dw_ref, pw_ref, o_ref, h_pad = refs
    else:
        x_ref, dw_ref, pw_ref, o_ref, h_pad = refs

    # ---- 1x1 expansion conv (+ Tanh), f32 accumulation on the MXU ----------
    if has_expand:
        h = jnp.tanh(jnp.dot(x_ref[...], ew_ref[...],
                             preferred_element_type=jnp.float32))
    else:
        h = x_ref[...].astype(jnp.float32)

    # Keep the expanded activation resident in VMEM scratch.  The scratch has a
    # zeroed tail so the shifted tap reads below stay in-bounds and finite.
    h_pad[...] = jnp.zeros_like(h_pad)
    h_pad[pl.ds(0, R), :] = h

    # ---- depthwise 3x3, stride 1, padding 0 (+ Tanh) ------------------------
    # A spatial tap (i, j) is a row shift of i*W + j in the flattened layout;
    # gather it in-kernel as a sublane-offset slice of the VMEM scratch.
    def tap(i, j):
        return h_pad[pl.ds(i * W + j, R), :] * dw_ref[3 * i + j]

    t = [tap(i, j) for i in range(3) for j in range(3)]
    # balanced-tree accumulation (shorter dependence chain than a serial 9-term sum)
    acc = ((t[0] + t[1]) + (t[2] + t[3])) + ((t[4] + t[5]) + (t[6] + t[7])) + t[8]
    d = jnp.tanh(acc)

    # ---- 1x1 pointwise projection (no activation) ---------------------------
    out = jnp.dot(d, pw_ref[...], preferred_element_type=jnp.float32)
    o_ref[...] = out.astype(o_ref.dtype)


# ---------------------------------------------------------------------------
# Wrapper (layout glue only — everything compute lives in the single kernel)
# ---------------------------------------------------------------------------
def net_for_stride_one_forward(x_nchw, params):
    """NetForStrideOne.forward.  x_nchw: (B, Cin, H, W) -> (B, Cout, H-2, W-2)."""
    expansion = params["expansion"]
    has_expand = expansion != 1

    B, Cin, H, W = x_nchw.shape
    Ho, Wo = H - 2, W - 2
    Chid = expansion * Cin
    Cout = params["pw_w"].shape[1]
    R = B * H * W
    # padded scratch rows: max tap offset is 2*W + 2; round up to a sublane multiple
    R_pad = ((R + 2 * W + 2 + 7) // 8) * 8

    # NCHW -> flattened (rows, channels); pure layout glue, stays in XLA
    x2d = jnp.transpose(x_nchw, (0, 2, 3, 1)).reshape(R, Cin)
    dw_flat = params["dw_w"].reshape(9, 1, Chid)

    args = [x2d]
    if has_expand:
        args.append(params["expand_w"])
    args += [dw_flat, params["pw_w"]]

    out2d = pl.pallas_call(
        functools.partial(_fused_block_kernel, W=W, R=R, has_expand=has_expand),
        out_shape=jax.ShapeDtypeStruct((R, Cout), x_nchw.dtype),
        in_specs=[VMEM_SPEC] * len(args),
        out_specs=VMEM_SPEC,
        scratch_shapes=[pltpu.VMEM((R_pad, Chid), jnp.float32)],
    )(*args)

    # kernel produced the result on the full HxW grid; keep the valid window,
    # return NCHW like the PyTorch module
    out = out2d.reshape(B, H, W, Cout)[:, :Ho, :Wo, :]
    return jnp.transpose(out, (0, 3, 1, 2))


# ---------------------------------------------------------------------------
# Parameters + pure-JAX reference (for a correctness check)
# ---------------------------------------------------------------------------
def init_params(key, in_fts, out_fts, expansion, dtype=jnp.float32):
    hidden = expansion * in_fts
    ks = jax.random.split(key, 3)

    def u(k, shape, fan_in):
        s = 1.0 / math.sqrt(fan_in)
        return jax.random.uniform(k, shape, dtype, minval=-s, maxval=s)

    params = {"expansion": expansion}
    if expansion != 1:
        params["expand_w"] = u(ks[0], (in_fts, hidden), in_fts)   # 1x1 expansion
    params["dw_w"] = u(ks[1], (3, 3, hidden), 9)                  # depthwise 3x3
    params["pw_w"] = u(ks[2], (hidden, out_fts), hidden)          # 1x1 projection
    return params


def reference_forward(x_nchw, params):
    """Plain-JAX reference of NetForStrideOne.forward (NCHW in/out)."""
    hp = jax.lax.Precision.HIGHEST
    x = x_nchw.astype(jnp.float32)
    if params["expansion"] != 1:
        x = jnp.tanh(jnp.einsum("bchw,cd->bdhw", x, params["expand_w"], precision=hp))
    B, C, H, W = x.shape
    Ho, Wo = H - 2, W - 2
    dw = params["dw_w"]
    acc = jnp.zeros((B, C, Ho, Wo), jnp.float32)
    for i in range(3):
        for j in range(3):
            acc = acc + x[:, :, i:i + Ho, j:j + Wo] * dw[i, j][None, :, None, None]
    x = jnp.tanh(acc)
    return jnp.einsum("bchw,cd->bdhw", x, params["pw_w"], precision=hp)


if __name__ == "__main__":
    key = jax.random.PRNGKey(0)
    kx1, kp1, kx2, kp2 = jax.random.split(key, 4)

    # Case 1: expansion != 1  (1x1 expand + tanh -> dw 3x3 + tanh -> pw 1x1)
    x1 = jax.random.normal(kx1, (2, 4, 16, 16), jnp.float32)
    p1 = init_params(kp1, in_fts=4, out_fts=8, expansion=2)
    fwd1 = jax.jit(lambda inp: net_for_stride_one_forward(inp, p1))
    y1 = fwd1(x1)
    jax.block_until_ready(y1)
    assert y1.shape == (2, 8, 14, 14), y1.shape
    assert bool(jnp.all(jnp.isfinite(y1)))
    err1 = float(jnp.max(jnp.abs(y1 - reference_forward(x1, p1))))
    assert err1 < 2e-2, err1   # loose tol: allows matmul precision differences only

    # Case 2: expansion == 1  (dw 3x3 + tanh -> pw 1x1)
    x2 = jax.random.normal(kx2, (2, 8, 16, 16), jnp.float32)
    p2 = init_params(kp2, in_fts=8, out_fts=8, expansion=1)
    fwd2 = jax.jit(lambda inp: net_for_stride_one_forward(inp, p2))
    y2 = fwd2(x2)
    jax.block_until_ready(y2)
    assert y2.shape == (2, 8, 14, 14), y2.shape
    assert bool(jnp.all(jnp.isfinite(y2)))
    err2 = float(jnp.max(jnp.abs(y2 - reference_forward(x2, p2))))
    assert err2 < 2e-2, err2

    print("KERNEL_OK")
</pallas_src>

<mosaic_0001>
module attributes {stable_mosaic.version = 11 : i64} {
  func.func @_fused_block_kernel(%arg0: memref<512x4xf32, #tpu.memory_space<vmem>>, %arg1: memref<4x8xf32, #tpu.memory_space<vmem>>, %arg2: memref<9x1x8xf32, #tpu.memory_space<vmem>>, %arg3: memref<8x8xf32, #tpu.memory_space<vmem>>, %arg4: memref<512x8xf32, #tpu.memory_space<vmem>>, %arg5: memref<552x8xf32, #tpu.memory_space<vmem>>) attributes {dimension_semantics = [], scalar_prefetch = 0 : i64, scratch_operands = 1 : i64, tpu.core_type = #tpu.core_type<tc>} {
    %c0 = arith.constant 0 : index
    %c0_0 = arith.constant 0 : index
    %0 = vector.load %arg0[%c0, %c0_0] : memref<512x4xf32, #tpu.memory_space<vmem>>, vector<512x4xf32>
    %c0_1 = arith.constant 0 : index
    %c0_2 = arith.constant 0 : index
    %1 = vector.load %arg1[%c0_1, %c0_2] : memref<4x8xf32, #tpu.memory_space<vmem>>, vector<4x8xf32>
    %cst = arith.constant dense<0.000000e+00> : vector<512x8xf32>
    %2 = tpu.matmul %0, %1, %cst {dimension_numbers = #tpu.dot_dimension_numbers<[1], [0], [0], [1], [0, 0, 1, 1], [], []>} : vector<512x4xf32>, vector<4x8xf32>, vector<512x8xf32> -> vector<512x8xf32>
    %3 = math.tanh %2 : vector<512x8xf32>
    %cst_3 = arith.constant 0.000000e+00 : f32
    %4 = vector.broadcast %cst_3 : f32 to vector<552x8xf32>
    %c0_4 = arith.constant 0 : index
    %c0_5 = arith.constant 0 : index
    %5 = vector.load %arg5[%c0_4, %c0_5] : memref<552x8xf32, #tpu.memory_space<vmem>>, vector<552x8xf32>
    tpu.vector_store %arg5[%c0_4, %c0_5], %4 {strides = array<i32>} : memref<552x8xf32, #tpu.memory_space<vmem>>, vector<552x8xf32>,
    %c0_6 = arith.constant 0 : index
    %c0_7 = arith.constant 0 : index
    %6 = vector.load %arg5[%c0_6, %c0_7] : memref<552x8xf32, #tpu.memory_space<vmem>>, vector<512x8xf32>
    tpu.vector_store %arg5[%c0_6, %c0_7], %3 {strides = array<i32>} : memref<552x8xf32, #tpu.memory_space<vmem>>, vector<512x8xf32>,
    %c0_8 = arith.constant 0 : index
    %c0_9 = arith.constant 0 : index
    %7 = vector.load %arg5[%c0_8, %c0_9] : memref<552x8xf32, #tpu.memory_space<vmem>>, vector<512x8xf32>
    %c0_10 = arith.constant 0 : index
    %c0_11 = arith.constant 0 : index
    %c0_12 = arith.constant 0 : index
    %8 = vector.load %arg2[%c0_10, %c0_11, %c0_12] : memref<9x1x8xf32, #tpu.memory_space<vmem>>, vector<1x1x8xf32>
    %9 = vector.shape_cast %8 : vector<1x1x8xf32> to vector<1x8xf32>
    %10 = vector.broadcast %9 : vector<1x8xf32> to vector<512x8xf32>
    %11 = arith.mulf %7, %10 : vector<512x8xf32>
    %c1 = arith.constant 1 : index
    %c0_13 = arith.constant 0 : index
    %12 = vector.load %arg5[%c1, %c0_13] : memref<552x8xf32, #tpu.memory_space<vmem>>, vector<512x8xf32>
    %c1_14 = arith.constant 1 : index
    %c0_15 = arith.constant 0 : index
    %c0_16 = arith.constant 0 : index
    %13 = vector.load %arg2[%c1_14, %c0_15, %c0_16] : memref<9x1x8xf32, #tpu.memory_space<vmem>>, vector<1x1x8xf32>
    %14 = vector.shape_cast %13 : vector<1x1x8xf32> to vector<1x8xf32>
    %15 = vector.broadcast %14 : vector<1x8xf32> to vector<512x8xf32>
    %16 = arith.mulf %12, %15 : vector<512x8xf32>
    %c2 = arith.constant 2 : index
    %c0_17 = arith.constant 0 : index
    %17 = vector.load %arg5[%c2, %c0_17] : memref<552x8xf32, #tpu.memory_space<vmem>>, vector<512x8xf32>
    %c2_18 = arith.constant 2 : index
    %c0_19 = arith.constant 0 : index
    %c0_20 = arith.constant 0 : index
    %18 = vector.load %arg2[%c2_18, %c0_19, %c0_20] : memref<9x1x8xf32, #tpu.memory_space<vmem>>, vector<1x1x8xf32>
    %19 = vector.shape_cast %18 : vector<1x1x8xf32> to vector<1x8xf32>
    %20 = vector.broadcast %19 : vector<1x8xf32> to vector<512x8xf32>
    %21 = arith.mulf %17, %20 : vector<512x8xf32>
    %c16 = arith.constant 16 : index
    %c0_21 = arith.constant 0 : index
    %22 = vector.load %arg5[%c16, %c0_21] : memref<552x8xf32, #tpu.memory_space<vmem>>, vector<512x8xf32>
    %c3 = arith.constant 3 : index
    %c0_22 = arith.constant 0 : index
    %c0_23 = arith.constant 0 : index
    %23 = vector.load %arg2[%c3, %c0_22, %c0_23] : memref<9x1x8xf32, #tpu.memory_space<vmem>>, vector<1x1x8xf32>
    %24 = vector.shape_cast %23 : vector<1x1x8xf32> to vector<1x8xf32>
    %25 = vector.broadcast %24 : vector<1x8xf32> to vector<512x8xf32>
    %26 = arith.mulf %22, %25 : vector<512x8xf32>
    %c17 = arith.constant 17 : index
    %c0_24 = arith.constant 0 : index
    %27 = vector.load %arg5[%c17, %c0_24] : memref<552x8xf32, #tpu.memory_space<vmem>>, vector<512x8xf32>
    %c4 = arith.constant 4 : index
    %c0_25 = arith.constant 0 : index
    %c0_26 = arith.constant 0 : index
    %28 = vector.load %arg2[%c4, %c0_25, %c0_26] : memref<9x1x8xf32, #tpu.memory_space<vmem>>, vector<1x1x8xf32>
    %29 = vector.shape_cast %28 : vector<1x1x8xf32> to vector<1x8xf32>
    %30 = vector.broadcast %29 : vector<1x8xf32> to vector<512x8xf32>
    %31 = arith.mulf %27, %30 : vector<512x8xf32>
    %c18 = arith.constant 18 : index
    %c0_27 = arith.constant 0 : index
    %32 = vector.load %arg5[%c18, %c0_27] : memref<552x8xf32, #tpu.memory_space<vmem>>, vector<512x8xf32>
    %c5 = arith.constant 5 : index
    %c0_28 = arith.constant 0 : index
    %c0_29 = arith.constant 0 : index
    %33 = vector.load %arg2[%c5, %c0_28, %c0_29] : memref<9x1x8xf32, #tpu.memory_space<vmem>>, vector<1x1x8xf32>
    %34 = vector.shape_cast %33 : vector<1x1x8xf32> to vector<1x8xf32>
    %35 = vector.broadcast %34 : vector<1x8xf32> to vector<512x8xf32>
    %36 = arith.mulf %32, %35 : vector<512x8xf32>
    %c32 = arith.constant 32 : index
    %c0_30 = arith.constant 0 : index
    %37 = vector.load %arg5[%c32, %c0_30] : memref<552x8xf32, #tpu.memory_space<vmem>>, vector<512x8xf32>
    %c6 = arith.constant 6 : index
    %c0_31 = arith.constant 0 : index
    %c0_32 = arith.constant 0 : index
    %38 = vector.load %arg2[%c6, %c0_31, %c0_32] : memref<9x1x8xf32, #tpu.memory_space<vmem>>, vector<1x1x8xf32>
    %39 = vector.shape_cast %38 : vector<1x1x8xf32> to vector<1x8xf32>
    %40 = vector.broadcast %39 : vector<1x8xf32> to vector<512x8xf32>
    %41 = arith.mulf %37, %40 : vector<512x8xf32>
    %c33 = arith.constant 33 : index
    %c0_33 = arith.constant 0 : index
    %42 = vector.load %arg5[%c33, %c0_33] : memref<552x8xf32, #tpu.memory_space<vmem>>, vector<512x8xf32>
    %c7 = arith.constant 7 : index
    %c0_34 = arith.constant 0 : index
    %c0_35 = arith.constant 0 : index
    %43 = vector.load %arg2[%c7, %c0_34, %c0_35] : memref<9x1x8xf32, #tpu.memory_space<vmem>>, vector<1x1x8xf32>
    %44 = vector.shape_cast %43 : vector<1x1x8xf32> to vector<1x8xf32>
    %45 = vector.broadcast %44 : vector<1x8xf32> to vector<512x8xf32>
    %46 = arith.mulf %42, %45 : vector<512x8xf32>
    %c34 = arith.constant 34 : index
    %c0_36 = arith.constant 0 : index
    %47 = vector.load %arg5[%c34, %c0_36] : memref<552x8xf32, #tpu.memory_space<vmem>>, vector<512x8xf32>
    %c8 = arith.constant 8 : index
    %c0_37 = arith.constant 0 : index
    %c0_38 = arith.constant 0 : index
    %48 = vector.load %arg2[%c8, %c0_37, %c0_38] : memref<9x1x8xf32, #tpu.memory_space<vmem>>, vector<1x1x8xf32>
    %49 = vector.shape_cast %48 : vector<1x1x8xf32> to vector<1x8xf32>
    %50 = vector.broadcast %49 : vector<1x8xf32> to vector<512x8xf32>
    %51 = arith.mulf %47, %50 : vector<512x8xf32>
    %52 = arith.addf %11, %16 : vector<512x8xf32>
    %53 = arith.addf %21, %26 : vector<512x8xf32>
    %54 = arith.addf %52, %53 : vector<512x8xf32>
    %55 = arith.addf %31, %36 : vector<512x8xf32>
    %56 = arith.addf %41, %46 : vector<512x8xf32>
    %57 = arith.addf %55, %56 : vector<512x8xf32>
    %58 = arith.addf %54, %57 : vector<512x8xf32>
    %59 = arith.addf %58, %51 : vector<512x8xf32>
    %60 = math.tanh %59 : vector<512x8xf32>
    %c0_39 = arith.constant 0 : index
    %c0_40 = arith.constant 0 : index
    %61 = vector.load %arg3[%c0_39, %c0_40] : memref<8x8xf32, #tpu.memory_space<vmem>>, vector<8x8xf32>
    %cst_41 = arith.constant dense<0.000000e+00> : vector<512x8xf32>
    %62 = tpu.matmul %60, %61, %cst_41 {dimension_numbers = #tpu.dot_dimension_numbers<[1], [0], [0], [1], [0, 0, 1, 1], [], []>} : vector<512x8xf32>, vector<8x8xf32>, vector<512x8xf32> -> vector<512x8xf32>
    %c0_42 = arith.constant 0 : index
    %c0_43 = arith.constant 0 : index
    %63 = vector.load %arg4[%c0_42, %c0_43] : memref<512x8xf32, #tpu.memory_space<vmem>>, vector<512x8xf32>
    tpu.vector_store %arg4[%c0_42, %c0_43], %62 {strides = array<i32>} : memref<512x8xf32, #tpu.memory_space<vmem>>, vector<512x8xf32>,
    return
  }
}

</mosaic_0001>

<bundles_post_ra>
// kernel: _lambda_.1
= control target key start
LH: loop header
LB: loop body
LE: loop exit
PB: predicated region body
PF: predicated region fallthrough
CT: control target
= control target key end

     0   :  { %vm275_vm0 = vcmask 1043456   ;;  %vm82_vm1 = vcmask 31744   ;;  %vm552_vm2 = vcmask 64512   ;;  %v2994_v27 = vmov 0.0   ;;  %s5564_s1 = inlined_call_operand.vmem [shape: f32[4,8], index: 1, kind: input, shape index: {}]   ;;  %s5565_s0 = inlined_call_operand.vmem [shape: f32[512,4], index: 0, kind: input, shape index: {}]   ;;  %s5566_s2 = inlined_call_operand.vmem [shape: f32[9,1,8], index: 2, kind: input, shape index: {}]   ;;  %s5567_s3 = inlined_call_operand.vmem [shape: f32[8,8], index: 3, kind: input, shape index: {}]   ;;  %s5568_s4 = inlined_call_operand.vmem [shape: f32[512,8], index: 4, kind: output, shape index: {}]  }
   0x1   :  { %v81_v0 = vld [vmem:[%s5564_s1] sm:$0xf]  ;;  %v18_v3 = vld [vmem:[%s5565_s0 + $0x8] sm:$0xff]  ;;  %v19_v5 = vld [vmem:[%s5565_s0 + $0x10] sm:$0xff]  ;;  %553 = vst.msk [vmem:[#allocation2] sm:$0xff] %vm552_vm2, %v2994_v27 }
   0x2   :  { %v17_v1 = vld [vmem:[%s5565_s0] sm:$0xff]  ;;  %2556 = vmatpush.msk.msra.mxu0 %vm275_vm0, %v81_v0  ;;  %2693 = vmatpush.msk.msra.mxu2 %vm275_vm0, %v81_v0  ;;  %v50_v4 = vld [vmem:[%s5565_s0 + $0x108] sm:$0xff]  ;;  %v51_v6 = vld [vmem:[%s5565_s0 + $0x110] sm:$0xff]  ;;  %554 = vst.msk [vmem:[#allocation2 + $0x8] sm:$0xff] %vm552_vm2, %v2994_v27 }
   0x3   :  { %v49_v2 = vld [vmem:[%s5565_s0 + $0x100] sm:$0xff]  ;;  %2557 = vmatmul.msk.f32.vlgmr.msra.gmra.mxu0 %vm82_vm1, %v17_v1  ;;  %v20_v7 = vld [vmem:[%s5565_s0 + $0x18] sm:$0xff]  ;;  %v22_v11 = vld [vmem:[%s5565_s0 + $0x28] sm:$0xff]  ;;  %555 = vst.msk [vmem:[#allocation2 + $0x10] sm:$0xff] %vm552_vm2, %v2994_v27 }
   0x4   :  { %2589 = vmatmul.msk.f32.vlgmr.msra.gmra.mxu2 %vm82_vm1, %v49_v2  ;;  %v52_v8 = vld [vmem:[%s5565_s0 + $0x118] sm:$0xff]  ;;  %v21_v9 = vld [vmem:[%s5565_s0 + $0x20] sm:$0xff]  ;;  %v54_v12 = vld [vmem:[%s5565_s0 + $0x128] sm:$0xff]  ;;  %556 = vst.msk [vmem:[#allocation2 + $0x18] sm:$0xff] %vm552_vm2, %v2994_v27 }
   0x5   :  { %v53_v10 = vld [vmem:[%s5565_s0 + $0x120] sm:$0xff]  ;;  %v23_v13 = vld [vmem:[%s5565_s0 + $0x30] sm:$0xff]  ;;  %v24_v15 = vld [vmem:[%s5565_s0 + $0x38] sm:$0xff]  ;;  %557 = vst.msk [vmem:[#allocation2 + $0x20] sm:$0xff] %vm552_vm2, %v2994_v27 }
   0x6   :  { %v55_v14 = vld [vmem:[%s5565_s0 + $0x130] sm:$0xff]  ;;  %v56_v16 = vld [vmem:[%s5565_s0 + $0x138] sm:$0xff]  ;;  %v25_v17 = vld [vmem:[%s5565_s0 + $0x40] sm:$0xff]  ;;  %558 = vst.msk [vmem:[#allocation2 + $0x28] sm:$0xff] %vm552_vm2, %v2994_v27 }
   0x7   :  { %v57_v18 = vld [vmem:[%s5565_s0 + $0x140] sm:$0xff]  ;;  %v26_v19 = vld [vmem:[%s5565_s0 + $0x48] sm:$0xff]  ;;  %v27_v21 = vld [vmem:[%s5565_s0 + $0x50] sm:$0xff]  ;;  %559 = vst.msk [vmem:[#allocation2 + $0x30] sm:$0xff] %vm552_vm2, %v2994_v27 }
   0x8   :  { %v58_v20 = vld [vmem:[%s5565_s0 + $0x148] sm:$0xff]  ;;  %v59_v22 = vld [vmem:[%s5565_s0 + $0x150] sm:$0xff]  ;;  %v28_v23 = vld [vmem:[%s5565_s0 + $0x58] sm:$0xff]  ;;  %560 = vst.msk [vmem:[#allocation2 + $0x38] sm:$0xff] %vm552_vm2, %v2994_v27 }
   0x9   :  { %v60_v24 = vld [vmem:[%s5565_s0 + $0x158] sm:$0xff]  ;;  %v29_v25 = vld [vmem:[%s5565_s0 + $0x60] sm:$0xff]  ;;  %v30_v28 = vld [vmem:[%s5565_s0 + $0x68] sm:$0xff]  ;;  %561 = vst.msk [vmem:[#allocation2 + $0x40] sm:$0xff] %vm552_vm2, %v2994_v27 }
   0xa   :  { %v61_v26 = vld [vmem:[%s5565_s0 + $0x160] sm:$0xff]  ;;  %v62_v29 = vld [vmem:[%s5565_s0 + $0x168] sm:$0xff]  ;;  %562 = vst.msk [vmem:[#allocation2 + $0x48] sm:$0xff] %vm552_vm2, %v2994_v27  ;;  %v31_v30 = vld [vmem:[%s5565_s0 + $0x70] sm:$0xff] }
   0xb   :  { %2558 = vmatmul.msk.f32.gmra.mxu0 %vm82_vm1, %v18_v3  ;;  %563 = vst.msk [vmem:[#allocation2 + $0x50] sm:$0xff] %vm552_vm2, %v2994_v27  ;;  %v63_v31 = vld [vmem:[%s5565_s0 + $0x170] sm:$0xff]  ;;  %v32_v32 = vld [vmem:[%s5565_s0 + $0x78] sm:$0xff]  ;;  %v33_v35 = vld [vmem:[%s5565_s0 + $0x80] sm:$0xff] }
   0xc   :  { %2590 = vmatmul.msk.f32.gmra.mxu2 %vm82_vm1, %v50_v4  ;;  %564 = vst.msk [vmem:[#allocation2 + $0x58] sm:$0xff] %vm552_vm2, %v2994_v27  ;;  %v64_v33 = vld [vmem:[%s5565_s0 + $0x178] sm:$0xff]  ;;  %v65_v36 = vld [vmem:[%s5565_s0 + $0x180] sm:$0xff]  ;;  %v34_v40 = vld [vmem:[%s5565_s0 + $0x88] sm:$0xff] }
   0xd   :  { %565 = vst.msk [vmem:[#allocation2 + $0x60] sm:$0xff] %vm552_vm2, %v2994_v27  ;;  %v66_v41 = vld [vmem:[%s5565_s0 + $0x188] sm:$0xff]  ;;  %v35_v44 = vld [vmem:[%s5565_s0 + $0x90] sm:$0xff]  ;;  %v36_v48 = vld [vmem:[%s5565_s0 + $0x98] sm:$0xff] }
   0xe   :  { %566 = vst.msk [vmem:[#allocation2 + $0x68] sm:$0xff] %vm552_vm2, %v2994_v27  ;;  %v67_v45 = vld [vmem:[%s5565_s0 + $0x190] sm:$0xff]  ;;  %v68_v49 = vld [vmem:[%s5565_s0 + $0x198] sm:$0xff]  ;;  %v37_v52 = vld [vmem:[%s5565_s0 + $0xa0] sm:$0xff] }
   0xf   :  { %567 = vst.msk [vmem:[#allocation2 + $0x70] sm:$0xff] %vm552_vm2, %v2994_v27  ;;  %v69_v53 = vld [vmem:[%s5565_s0 + $0x1a0] sm:$0xff]  ;;  %v38_v60 = vld [vmem:[%s5565_s0 + $0xa8] sm:$0xff] }
  0x10   :  { %568 = vst.msk [vmem:[#allocation2 + $0x78] sm:$0xff] %vm552_vm2, %v2994_v27  ;;  %v70_v61 = vld [vmem:[%s5565_s0 + $0x1a8] sm:$0xff] }
  0x11   :  { %569 = vst.msk [vmem:[#allocation2 + $0x80] sm:$0xff] %vm552_vm2, %v2994_v27 }
  0x12   :  { %570 = vst.msk [vmem:[#allocation2 + $0x88] sm:$0xff] %vm552_vm2, %v2994_v27 }
  0x13   :  { %2559 = vmatmul.msk.f32.gmra.mxu0 %vm82_vm1, %v19_v5  ;;  %571 = vst.msk [vmem:[#allocation2 + $0x90] sm:$0xff] %vm552_vm2, %v2994_v27  ;;  %v3349_v5 = vld [vmem:[%s5566_s2] ss:$0 sm:$0xff] }
  0x14   :  { %2591 = vmatmul.msk.f32.gmra.mxu2 %vm82_vm1, %v51_v6  ;;  %572 = vst.msk [vmem:[#allocation2 + $0x98] sm:$0xff] %vm552_vm2, %v2994_v27  ;;  %v3354_v6 = vld [vmem:[%s5566_s2 + $0x1] ss:$0 sm:$0xff] }
  0x15   :  { %573 = vst.msk [vmem:[#allocation2 + $0xa0] sm:$0xff] %vm552_vm2, %v2994_v27 }
  0x16   :  { %574 = vst.msk [vmem:[#allocation2 + $0xa8] sm:$0xff] %vm552_vm2, %v2994_v27 }
  0x17   :  { %575 = vst.msk [vmem:[#allocation2 + $0xb0] sm:$0xff] %vm552_vm2, %v2994_v27 }
  0x18   :  { %576 = vst.msk [vmem:[#allocation2 + $0xb8] sm:$0xff] %vm552_vm2, %v2994_v27 }
  0x19   :  { %577 = vst.msk [vmem:[#allocation2 + $0xc0] sm:$0xff] %vm552_vm2, %v2994_v27 }
  0x1a   :  { %578 = vst.msk [vmem:[#allocation2 + $0xc8] sm:$0xff] %vm552_vm2, %v2994_v27 }
  0x1b   :  { %2560 = vmatmul.msk.f32.gmra.mxu0 %vm82_vm1, %v20_v7  ;;  %579 = vst.msk [vmem:[#allocation2 + $0xd0] sm:$0xff] %vm552_vm2, %v2994_v27  ;;  %v3359_v7 = vld [vmem:[%s5566_s2 + $0x4] ss:$0 sm:$0xff] }
  0x1c   :  { %2592 = vmatmul.msk.f32.gmra.mxu2 %vm82_vm1, %v52_v8  ;;  %580 = vst.msk [vmem:[#allocation2 + $0xd8] sm:$0xff] %vm552_vm2, %v2994_v27  ;;  %v3364_v8 = vld [vmem:[%s5566_s2 + $0x5] ss:$0 sm:$0xff] }
  0x1d   :  { %581 = vst.msk [vmem:[#allocation2 + $0xe0] sm:$0xff] %vm552_vm2, %v2994_v27 }
  0x1e   :  { %582 = vst.msk [vmem:[#allocation2 + $0xe8] sm:$0xff] %vm552_vm2, %v2994_v27 }
  0x1f   :  { %583 = vst.msk [vmem:[#allocation2 + $0xf0] sm:$0xff] %vm552_vm2, %v2994_v27 }
  0x20   :  { %584 = vst.msk [vmem:[#allocation2 + $0xf8] sm:$0xff] %vm552_vm2, %v2994_v27 }
  0x21   :  { %585 = vst.msk [vmem:[#allocation2 + $0x100] sm:$0xff] %vm552_vm2, %v2994_v27 }
  0x22   :  { %586 = vst.msk [vmem:[#allocation2 + $0x108] sm:$0xff] %vm552_vm2, %v2994_v27 }
  0x23   :  { %2561 = vmatmul.msk.f32.gmra.mxu0 %vm82_vm1, %v21_v9  ;;  %587 = vst.msk [vmem:[#allocation2 + $0x110] sm:$0xff] %vm552_vm2, %v2994_v27 }
  0x24   :  { %2593 = vmatmul.msk.f32.gmra.mxu2 %vm82_vm1, %v53_v10  ;;  %588 = vst.msk [vmem:[#allocation2 + $0x118] sm:$0xff] %vm552_vm2, %v2994_v27  ;;  %v39_v10 = vld [vmem:[%s5565_s0 + $0xb0] sm:$0xff] }
  0x25   :  { %589 = vst.msk [vmem:[#allocation2 + $0x120] sm:$0xff] %vm552_vm2, %v2994_v27 }
  0x26   :  { %590 = vst.msk [vmem:[#allocation2 + $0x128] sm:$0xff] %vm552_vm2, %v2994_v27 }
  0x27   :  { %591 = vst.msk [vmem:[#allocation2 + $0x130] sm:$0xff] %vm552_vm2, %v2994_v27 }
  0x28   :  { %592 = vst.msk [vmem:[#allocation2 + $0x138] sm:$0xff] %vm552_vm2, %v2994_v27 }
  0x29   :  { %593 = vst.msk [vmem:[#allocation2 + $0x140] sm:$0xff] %vm552_vm2, %v2994_v27 }
  0x2a   :  { %594 = vst.msk [vmem:[#allocation2 + $0x148] sm:$0xff] %vm552_vm2, %v2994_v27 }
  0x2b   :  { %2562 = vmatmul.msk.f32.gmra.mxu0 %vm82_vm1, %v22_v11  ;;  %595 = vst.msk [vmem:[#allocation2 + $0x150] sm:$0xff] %vm552_vm2, %v2994_v27  ;;  %v71_v11 = vld [vmem:[%s5565_s0 + $0x1b0] sm:$0xff] }
  0x2c   :  { %2594 = vmatmul.msk.f32.gmra.mxu2 %vm82_vm1, %v54_v12  ;;  %596 = vst.msk [vmem:[#allocation2 + $0x158] sm:$0xff] %vm552_vm2, %v2994_v27  ;;  %v2086_v12 = vld [vmem:[%s5567_s3] sm:$0xff] }
  0x2d   :  { %597 = vst.msk [vmem:[#allocation2 + $0x160] sm:$0xff] %vm552_vm2, %v2994_v27  ;;  %2294 = vmatpush.msra.mxu1 %v2086_v12  ;;  %2694 = vmatpush.msra.mxu3 %v2086_v12 }
  0x2e   :  { %598 = vst.msk [vmem:[#allocation2 + $0x168] sm:$0xff] %vm552_vm2, %v2994_v27 }
  0x2f   :  { %599 = vst.msk [vmem:[#allocation2 + $0x170] sm:$0xff] %vm552_vm2, %v2994_v27 }
  0x30   :  { %600 = vst.msk [vmem:[#allocation2 + $0x178] sm:$0xff] %vm552_vm2, %v2994_v27 }
  0x31   :  { %601 = vst.msk [vmem:[#allocation2 + $0x180] sm:$0xff] %vm552_vm2, %v2994_v27 }
  0x32   :  { %602 = vst.msk [vmem:[#allocation2 + $0x188] sm:$0xff] %vm552_vm2, %v2994_v27 }
  0x33   :  { %2563 = vmatmul.msk.f32.gmra.mxu0 %vm82_vm1, %v23_v13  ;;  %603 = vst.msk [vmem:[#allocation2 + $0x190] sm:$0xff] %vm552_vm2, %v2994_v27 }
  0x34   :  { %2595 = vmatmul.msk.f32.gmra.mxu2 %vm82_vm1, %v55_v14  ;;  %604 = vst.msk [vmem:[#allocation2 + $0x198] sm:$0xff] %vm552_vm2, %v2994_v27  ;;  %v3379_v14 = vld [vmem:[%s5566_s2 + $0x2] ss:$0 sm:$0xff] }
  0x35   :  { %605 = vst.msk [vmem:[#allocation2 + $0x1a0] sm:$0xff] %vm552_vm2, %v2994_v27 }
  0x36   :  { %606 = vst.msk [vmem:[#allocation2 + $0x1a8] sm:$0xff] %vm552_vm2, %v2994_v27 }
  0x37   :  { %607 = vst.msk [vmem:[#allocation2 + $0x1b0] sm:$0xff] %vm552_vm2, %v2994_v27 }
  0x38   :  { %608 = vst.msk [vmem:[#allocation2 + $0x1b8] sm:$0xff] %vm552_vm2, %v2994_v27 }
  0x39   :  { %609 = vst.msk [vmem:[#allocation2 + $0x1c0] sm:$0xff] %vm552_vm2, %v2994_v27 }
  0x3a   :  { %610 = vst.msk [vmem:[#allocation2 + $0x1c8] sm:$0xff] %vm552_vm2, %v2994_v27 }
  0x3b   :  { %2564 = vmatmul.msk.f32.gmra.mxu0 %vm82_vm1, %v24_v15  ;;  %611 = vst.msk [vmem:[#allocation2 + $0x1d0] sm:$0xff] %vm552_vm2, %v2994_v27  ;;  %v3384_v15 = vld [vmem:[%s5566_s2 + $0x3] ss:$0 sm:$0xff] }
  0x3c   :  { %2596 = vmatmul.msk.f32.gmra.mxu2 %vm82_vm1, %v56_v16  ;;  %612 = vst.msk [vmem:[#allocation2 + $0x1d8] sm:$0xff] %vm552_vm2, %v2994_v27  ;;  %v3389_v16 = vld [vmem:[%s5566_s2 + $0x6] ss:$0 sm:$0xff] }
  0x3d   :  { %613 = vst.msk [vmem:[#allocation2 + $0x1e0] sm:$0xff] %vm552_vm2, %v2994_v27 }
  0x3e   :  { %614 = vst.msk [vmem:[#allocation2 + $0x1e8] sm:$0xff] %vm552_vm2, %v2994_v27 }
  0x3f   :  { %615 = vst.msk [vmem:[#allocation2 + $0x1f0] sm:$0xff] %vm552_vm2, %v2994_v27 }
  0x40   :  { %616 = vst.msk [vmem:[#allocation2 + $0x1f8] sm:$0xff] %vm552_vm2, %v2994_v27 }
  0x41   :  { %617 = vst.msk [vmem:[#allocation2 + $0x200] sm:$0xff] %vm552_vm2, %v2994_v27 }
  0x42   :  { %618 = vst.msk [vmem:[#allocation2 + $0x208] sm:$0xff] %vm552_vm2, %v2994_v27 }
  0x43   :  { %2565 = vmatmul.msk.f32.gmra.mxu0 %vm82_vm1, %v25_v17  ;;  %619 = vst.msk [vmem:[#allocation2 + $0x210] sm:$0xff] %vm552_vm2, %v2994_v27  ;;  %v3395_v17 = vld [vmem:[%s5566_s2 + $0x7] ss:$0 sm:$0xff] }
  0x44   :  { %2597 = vmatmul.msk.f32.gmra.mxu2 %vm82_vm1, %v57_v18  ;;  %620 = vst.msk [vmem:[#allocation2 + $0x218] sm:$0xff] %vm552_vm2, %v2994_v27 }
  0x45   :  { %621 = vst.msk [vmem:[#allocation2 + $0x220] sm:$0xff] %vm552_vm2, %v2994_v27 }
  0x4b   :  { %2566 = vmatmul.msk.f32.gmra.mxu0 %vm82_vm1, %v26_v19 }
  0x4c   :  { %2598 = vmatmul.msk.f32.gmra.mxu2 %vm82_vm1, %v58_v20 }
  0x53   :  { %2567 = vmatmul.msk.f32.gmra.mxu0 %vm82_vm1, %v27_v21 }
  0x54   :  { %2599 = vmatmul.msk.f32.gmra.mxu2 %vm82_vm1, %v59_v22 }
  0x5b   :  { %2568 = vmatmul.msk.f32.gmra.mxu0 %vm82_vm1, %v28_v23 }
  0x5c   :  { %2600 = vmatmul.msk.f32.gmra.mxu2 %vm82_vm1, %v60_v24 }
  0x63   :  { %2569 = vmatmul.msk.f32.gmra.mxu0 %vm82_vm1, %v29_v25 }
  0x64   :  { %2601 = vmatmul.msk.f32.gmra.mxu2 %vm82_vm1, %v61_v26 }
  0x6b   :  { %2570 = vmatmul.msk.f32.gmra.mxu0 %vm82_vm1, %v30_v28 }
  0x6c   :  { %2602 = vmatmul.msk.f32.gmra.mxu2 %vm82_vm1, %v62_v29 }
  0x73   :  { %2571 = vmatmul.msk.f32.gmra.mxu0 %vm82_vm1, %v31_v30 }
  0x74   :  { %2603 = vmatmul.msk.f32.gmra.mxu2 %vm82_vm1, %v63_v31 }
  0x7b   :  { %2572 = vmatmul.msk.f32.gmra.mxu0 %vm82_vm1, %v32_v32 }
  0x7c   :  { %2604 = vmatmul.msk.f32.gmra.mxu2 %vm82_vm1, %v64_v33 }
  0x80   :  { %v296_v34 = vpop.f32.mrf.mxu0 }
  0x81   :  { %2705 = vtanh.f32 %v296_v34 }
  0x83   :  { %2573 = vmatmul.msk.f32.gmra.mxu0 %vm82_vm1, %v33_v35 }
  0x84   :  { %2605 = vmatmul.msk.f32.gmra.mxu2 %vm82_vm1, %v65_v36 }
  0x87   :  { %v392_v37 = vpop.f32.mrf.mxu2  ;;  %v2706_v38 = vpop.eup %2705 }
  0x88   :  { %622 = vst.msk [vmem:[#allocation2] sm:$0xff] %vm552_vm2, %v2706_v38  ;;  %v299_v39 = vpop.f32.mrf.mxu0  ;;  %2707 = vtanh.f32 %v392_v37 }
  0x89   :  { %2709 = vtanh.f32 %v299_v39 }
  0x8b   :  { %2574 = vmatmul.msk.f32.gmra.mxu0 %vm82_vm1, %v34_v40 }
  0x8c   :  { %2606 = vmatmul.msk.f32.gmra.mxu2 %vm82_vm1, %v66_v41 }
  0x8e   :  { %v2708_v54 = vpop.eup %2707 }
  0x8f   :  { %v395_v42 = vpop.f32.mrf.mxu2  ;;  %v2710_v55 = vpop.eup %2709  ;;  %654 = vst.msk [vmem:[#allocation2 + $0x100] sm:$0xff] %vm552_vm2, %v2708_v54  ;;  %v686_v13 = vld [vmem:[#allocation2] sm:$0xff] }
  0x90   :  { %v302_v43 = vpop.f32.mrf.mxu0  ;;  %2711 = vtanh.f32 %v395_v42  ;;  %623 = vst.msk [vmem:[#allocation2 + $0x8] sm:$0xff] %vm552_vm2, %v2710_v55  ;;  %v754_v30 = vmul.f32 %v3349_v5, %v686_v13  ;;  %v40_v42 = vld [vmem:[%s5565_s0 + $0xb8] sm:$0xff] }
  0x91   :  { %2713 = vtanh.f32 %v302_v43 }
  0x93   :  { %2575 = vmatmul.msk.f32.gmra.mxu0 %vm82_vm1, %v35_v44 }
  0x94   :  { %2607 = vmatmul.msk.f32.gmra.mxu2 %vm82_vm1, %v67_v45 }
  0x96   :  { %v2712_v57 = vpop.eup %2711  ;;  %v718_v18 = vld [vmem:[#allocation2 + $0x100] sm:$0xff] }
  0x97   :  { %v398_v46 = vpop.f32.mrf.mxu2  ;;  %v2714_v58 = vpop.eup %2713  ;;  %655 = vst.msk [vmem:[#allocation2 + $0x108] sm:$0xff] %vm552_vm2, %v2712_v57  ;;  %v818_v21 = vld [vmem:[#allocation2 + $0x1] sm:$0xff]  ;;  %v3414_v33 = vmul.f32 %v3349_v5, %v718_v18  ;;  %v1332_v38 = vmul.f32 %v3389_v16, %v718_v18 }
  0x98   :  { %v305_v47 = vpop.f32.mrf.mxu0  ;;  %2715 = vtanh.f32 %v398_v46  ;;  %624 = vst.msk [vmem:[#allocation2 + $0x10] sm:$0xff] %vm552_vm2, %v2714_v58  ;;  %v951_v23 = vld [vmem:[#allocation2 + $0x2] sm:$0xff]  ;;  %v887_v31 = vmul.f32 %v3354_v6, %v818_v21 }
  0x99   :  { %2717 = vtanh.f32 %v305_v47  ;;  %v1020_v37 = vmul.f32 %v3379_v14, %v951_v23  ;;  %v72_v47 = vld [vmem:[%s5565_s0 + $0x1b8] sm:$0xff] }
  0x9a   :  { %v1510_v55 = vadd.f32 %v887_v31, %v754_v30 }
  0x9b   :  { %2576 = vmatmul.msk.f32.gmra.mxu0 %vm82_vm1, %v36_v48 }
  0x9c   :  { %2608 = vmatmul.msk.f32.gmra.mxu2 %vm82_vm1, %v68_v49 }
  0x9e   :  { %v2716_v62 = vpop.eup %2715  ;;  %v850_v19 = vld [vmem:[#allocation2 + $0x101] sm:$0xff] }
  0x9f   :  { %v401_v50 = vpop.f32.mrf.mxu2  ;;  %v2718_v63 = vpop.eup %2717  ;;  %656 = vst.msk [vmem:[#allocation2 + $0x110] sm:$0xff] %vm552_vm2, %v2716_v62  ;;  %v3397_v20 = vld [vmem:[#allocation2 + $0x10] sm:$0xff]  ;;  %v983_v22 = vld [vmem:[#allocation2 + $0x102] sm:$0xff]  ;;  %v1192_v27 = vmul.f32 %v3359_v7, %v850_v19  ;;  %v1403_v39 = vmul.f32 %v3395_v17, %v850_v19  ;;  %v919_v57 = vmul.f32 %v3354_v6, %v850_v19 }
  0xa0   :  { %v308_v51 = vpop.f32.mrf.mxu0  ;;  %2719 = vtanh.f32 %v401_v50  ;;  %625 = vst.msk [vmem:[#allocation2 + $0x18] sm:$0xff] %vm552_vm2, %v2718_v63  ;;  %v1091_v26 = vmul.f32 %v3384_v15, %v3397_v20  ;;  %v1263_v28 = vmul.f32 %v3364_v8, %v983_v22  ;;  %v687_v63 = vld [vmem:[#allocation2 + $0x8] sm:$0xff] }
  0xa1   :  { %2721 = vtanh.f32 %v308_v51 }
  0xa2   :  { %v1574_v49 = vadd.f32 %v1091_v26, %v1020_v37 }
  0xa3   :  { %2577 = vmatmul.msk.f32.gmra.mxu0 %vm82_vm1, %v37_v52 }
  0xa4   :  { %2609 = vmatmul.msk.f32.gmra.mxu2 %vm82_vm1, %v69_v53  ;;  %v3447_v53 = vadd.f32 %v1263_v28, %v1192_v27  ;;  %v1638_v12 = vadd.f32 %v1574_v49, %v1510_v55  ;;  %v755_v28 = vmul.f32 %v3349_v5, %v687_v63 }
  0xa6   :  { %v2720_v0 = vpop.eup %2719  ;;  %v3411_v32 = vld [vmem:[#allocation2 + $0x110] sm:$0xff] }
  0xa7   :  { %v404_v56 = vpop.f32.mrf.mxu2  ;;  %v2722_v1 = vpop.eup %2721  ;;  %657 = vst.msk [vmem:[#allocation2 + $0x118] sm:$0xff] %vm552_vm2, %v2720_v0  ;;  %v3401_v24 = vld [vmem:[#allocation2 + $0x11] sm:$0xff]  ;;  %v1123_v51 = vmul.f32 %v3384_v15, %v3411_v32  ;;  %v1334_v52 = vmul.f32 %v3389_v16, %v3411_v32  ;;  %v819_v0 = vld [vmem:[#allocation2 + $0x9] sm:$0xff] }
  0xa8   :  { %2723 = vtanh.f32 %v404_v56  ;;  %v311_v59 = vpop.f32.mrf.mxu0  ;;  %626 = vst.msk [vmem:[#allocation2 + $0x20] sm:$0xff] %vm552_vm2, %v2722_v1  ;;  %v3403_v25 = vld [vmem:[#allocation2 + $0x12] sm:$0xff]  ;;  %v1162_v43 = vmul.f32 %v3359_v7, %v3401_v24  ;;  %v952_v1 = vld [vmem:[#allocation2 + $0xa] sm:$0xff] }
  0xa9   :  { %2725 = vtanh.f32 %v311_v59  ;;  %v1233_v44 = vmul.f32 %v3364_v8, %v3403_v25  ;;  %v3454_v58 = vld [vmem:[#allocation2 + $0x18] sm:$0xff]  ;;  %v1052_v59 = vmul.f32 %v3379_v14, %v983_v22  ;;  %v3480_v22 = vld [vmem:[%s5566_s2 + $0x8] ss:$0 sm:$0xff]  ;;  %v1021_v30 = vmul.f32 %v3379_v14, %v952_v1  ;;  %v851_v63 = vld [vmem:[#allocation2 + $0x109] sm:$0xff] }
  0xaa   :  { %v1092_v19 = vmul.f32 %v3384_v15, %v3454_v58 }
  0xab   :  { %2578 = vmatmul.msk.f32.gmra.mxu0 %vm82_vm1, %v38_v60  ;;  %v1606_v18 = vadd.f32 %v1123_v51, %v1052_v59 }
  0xac   :  { %2610 = vmatmul.msk.f32.gmra.mxu2 %vm82_vm1, %v70_v61  ;;  %v3459_v61 = vadd.f32 %v1403_v39, %v1332_v38  ;;  %v1575_v59 = vadd.f32 %v1092_v19, %v1021_v30 }
  0xae   :  { %v2724_v2 = vpop.eup %2723  ;;  %v3416_v34 = vld [vmem:[#allocation2 + $0x111] sm:$0xff]  ;;  %5573 = vst [vmem:[#allocation3_spill] sm:$0xff] %v3459_v61 }
  0xaf   :  { %v407_v3 = vpop.f32.mrf.mxu2  ;;  %v2726_v4 = vpop.eup %2725  ;;  %658 = vst.msk [vmem:[#allocation2 + $0x120] sm:$0xff] %vm552_vm2, %v2724_v2  ;;  %v3419_v36 = vld [vmem:[#allocation2 + $0x20] sm:$0xff]  ;;  %v1405_v40 = vmul.f32 %v3395_v17, %v3416_v34  ;;  %v3441_v50 = vld [vmem:[#allocation2 + $0x112] sm:$0xff]  ;;  %v1194_v60 = vmul.f32 %v3359_v7, %v3416_v34  ;;  %v1702_v2 = vadd.f32 %v1233_v44, %v1162_v43  ;;  %v1542_v44 = vadd.f32 %v919_v57, %v3414_v33 }
  0xb0   :  { %2727 = vtanh.f32 %v407_v3  ;;  %v314_v9 = vpop.f32.mrf.mxu0  ;;  %627 = vst.msk [vmem:[#allocation2 + $0x28] sm:$0xff] %vm552_vm2, %v2726_v4  ;;  %v1304_v45 = vmul.f32 %v3389_v16, %v3419_v36  ;;  %v1265_v4 = vmul.f32 %v3364_v8, %v3441_v50 }
  0xb1   :  { %2729 = vtanh.f32 %v314_v9  ;;  %v3461_v62 = vadd.f32 %v1405_v40, %v1334_v52  ;;  %v3467_v9 = vld [vmem:[#allocation2 + $0x19] sm:$0xff]  ;;  %v1670_v57 = vadd.f32 %v1606_v18, %v1542_v44 }
  0xb2   :  { %v1163_v37 = vmul.f32 %v3359_v7, %v3467_v9  ;;  %v1734_v51 = vadd.f32 %v1265_v4, %v1194_v60  ;;  %v984_v60 = vld [vmem:[#allocation2 + $0x10a] sm:$0xff] }
  0xb3   :  { %2579 = vmatmul.msk.f32.gmra.mxu0 %vm82_vm1, %v39_v10  ;;  %v3469_v10 = vld [vmem:[#allocation2 + $0x1a] sm:$0xff] }
  0xb4   :  { %2611 = vmatmul.msk.f32.gmra.mxu2 %vm82_vm1, %v71_v11  ;;  %v1234_v38 = vmul.f32 %v3364_v8, %v3469_v10 }
  0xb6   :  { %v2728_v29 = vpop.eup %2727  ;;  %v3451_v56 = vld [vmem:[#allocation2 + $0x120] sm:$0xff] }
  0xb7   :  { %659 = vst.msk [vmem:[#allocation2 + $0x128] sm:$0xff] %vm552_vm2, %v2728_v29  ;;  %v410_v35 = vpop.f32.mrf.mxu2  ;;  %v2730_v41 = vpop.eup %2729  ;;  %v3439_v48 = vld [vmem:[#allocation2 + $0x21] sm:$0xff]  ;;  %v1336_v13 = vmul.f32 %v3389_v16, %v3451_v56  ;;  %v888_v29 = vmul.f32 %v3354_v6, %v819_v0 }
  0xb8   :  { %2731 = vtanh.f32 %v410_v35  ;;  %628 = vst.msk [vmem:[#allocation2 + $0x30] sm:$0xff] %vm552_vm2, %v2730_v41  ;;  %v317_v46 = vpop.f32.mrf.mxu0  ;;  %v1375_v54 = vmul.f32 %v3395_v17, %v3439_v48  ;;  %v3471_v11 = vld [vmem:[#allocation2 + $0x22] sm:$0xff]  ;;  %v3526_v18 = vld [vmem:[#allocation2 + $0x11a] sm:$0xff] }
  0xb9   :  { %2733 = vtanh.f32 %v317_v46  ;;  %v3484_v27 = vld [vmem:[#allocation2 + $0x28] sm:$0xff]  ;;  %v41_v41 = vld [vmem:[%s5565_s0 + $0xc0] sm:$0xff]  ;;  %v1511_v1 = vadd.f32 %v888_v29, %v755_v28  ;;  %v920_v29 = vmul.f32 %v3354_v6, %v851_v63 }
  0xba   :  { %v1766_v3 = vadd.f32 %v1375_v54, %v1304_v45  ;;  %v1305_v39 = vmul.f32 %v3389_v16, %v3484_v27 }
  0xbb   :  { %2580 = vmatmul.msk.f32.gmra.mxu0 %vm82_vm1, %v40_v42  ;;  %v1446_v42 = vmul.f32 %v3480_v22, %v3471_v11 }
  0xbc   :  { %2612 = vmatmul.msk.f32.gmra.mxu2 %vm82_vm1, %v72_v47  ;;  %v1830_v23 = vadd.f32 %v1766_v3, %v1702_v2  ;;  %v73_v47 = vld [vmem:[%s5565_s0 + $0x1c0] sm:$0xff]  ;;  %v1703_v2 = vadd.f32 %v1234_v38, %v1163_v37  ;;  %v1053_v37 = vmul.f32 %v3379_v14, %v984_v60 }
  0xbe   :  { %v2732_v21 = vpop.eup %2731  ;;  %v3482_v26 = vld [vmem:[#allocation2 + $0x121] sm:$0xff]  ;;  %v1894_v43 = vadd.f32 %v1830_v23, %v1638_v12  ;;  %v3516_v12 = vld [vmem:[#allocation2 + $0x118] sm:$0xff]  ;;  %v1639_v23 = vadd.f32 %v1575_v59, %v1511_v1 }
  0xbf   :  { %660 = vst.msk [vmem:[#allocation2 + $0x130] sm:$0xff] %vm552_vm2, %v2732_v21  ;;  %v413_v31 = vpop.f32.mrf.mxu2  ;;  %v1407_v35 = vmul.f32 %v3395_v17, %v3482_v26  ;;  %v2734_v40 = vpop.eup %2733  ;;  %v3504_v45 = vld [vmem:[#allocation2 + $0x29] sm:$0xff]  ;;  %v3518_v21 = vld [vmem:[#allocation2 + $0x119] sm:$0xff]  ;;  %v1124_v38 = vmul.f32 %v3384_v15, %v3516_v12 }
  0xc0   :  { %2735 = vtanh.f32 %v413_v31  ;;  %629 = vst.msk [vmem:[#allocation2 + $0x38] sm:$0xff] %vm552_vm2, %v2734_v40  ;;  %v320_v46 = vpop.f32.mrf.mxu0  ;;  %v3510_v49 = vld [vmem:[#allocation2 + $0x122] sm:$0xff]  ;;  %v3512_v54 = vld [vmem:[#allocation2 + $0x2a] sm:$0xff]  ;;  %v1376_v55 = vmul.f32 %v3395_v17, %v3504_v45  ;;  %v1958_v33 = vadd.f32 %v1894_v43, %v1446_v42  ;;  %v1195_v40 = vmul.f32 %v3359_v7, %v3518_v21 }
  0xc1   :  { %v1798_v52 = vadd.f32 %v1407_v35, %v1336_v13  ;;  %2737 = vtanh.f32 %v320_v46  ;;  %v1478_v4 = vmul.f32 %v3480_v22, %v3510_v49  ;;  %v1447_v13 = vmul.f32 %v3480_v22, %v3512_v54  ;;  %v719_v31 = vld [vmem:[#allocation2 + $0x108] sm:$0xff] }
  0xc2   :  { %v1767_v3 = vadd.f32 %v1376_v55, %v1305_v39  ;;  %2739 = vtanh.f32 %v1958_v33  ;;  %v1193_v39 = vmul.f32 %v3359_v7, %v851_v63  ;;  %v3538_v44 = vld [vmem:[#allocation2 + $0x128] sm:$0xff]  ;;  %v1264_v46 = vmul.f32 %v3364_v8, %v984_v60 }
  0xc3   :  { %v1862_v0 = vadd.f32 %v1798_v52, %v1734_v51  ;;  %2581 = vmatmul.msk.f32.gmra.mxu0 %vm82_vm1, %v41_v41  ;;  %v1404_v52 = vmul.f32 %v3395_v17, %v851_v63  ;;  %v1406_v55 = vmul.f32 %v3395_v17, %v3518_v21  ;;  %v787_v63 = vmul.f32 %v3349_v5, %v719_v31 }
  0xc4   :  { %2613 = vmatmul.msk.f32.gmra.mxu2 %vm82_vm1, %v73_v47  ;;  %v1831_v28 = vadd.f32 %v1767_v3, %v1703_v2  ;;  %v1266_v47 = vmul.f32 %v3364_v8, %v3526_v18  ;;  %v1333_v2 = vmul.f32 %v3389_v16, %v719_v31  ;;  %v1335_v60 = vmul.f32 %v3389_v16, %v3516_v12 }
  0xc5   :  { %v1926_v19 = vadd.f32 %v1862_v0, %v1670_v57  ;;  %v42_v57 = vld [vmem:[%s5565_s0 + $0xc8] sm:$0xff] }
  0xc6   :  { %v2736_v30 = vpop.eup %2735  ;;  %v3529_v35 = vld [vmem:[#allocation2 + $0x129] sm:$0xff]  ;;  %v1895_v43 = vadd.f32 %v1831_v28, %v1639_v23  ;;  %v1543_v23 = vadd.f32 %v920_v29, %v787_v63  ;;  %v3562_v28 = vadd.f32 %v1264_v46, %v1193_v39  ;;  %v3568_v31 = vadd.f32 %v1406_v55, %v1335_v60 }
  0xc7   :  { %661 = vst.msk [vmem:[#allocation2 + $0x138] sm:$0xff] %vm552_vm2, %v2736_v30  ;;  %v416_v41 = vpop.f32.mrf.mxu2  ;;  %v1990_v42 = vadd.f32 %v1926_v19, %v1478_v4  ;;  %v2738_v51 = vpop.eup %2737  ;;  %v1408_v59 = vmul.f32 %v3395_v17, %v3529_v35  ;;  %v74_v0 = vld [vmem:[%s5565_s0 + $0x1c8] sm:$0xff]  ;;  %v1337_v4 = vmul.f32 %v3389_v16, %v3538_v44  ;;  %v1607_v19 = vadd.f32 %v1124_v38, %v1053_v37 }
  0xc8   :  { %2741 = vtanh.f32 %v416_v41  ;;  %630 = vst.msk [vmem:[#allocation2 + $0x40] sm:$0xff] %vm552_vm2, %v2738_v51  ;;  %v323_v33 = vpop.f32.mrf.mxu0  ;;  %v1959_v1 = vadd.f32 %v1895_v43, %v1447_v13  ;;  %v2740_v3 = vpop.eup %2739  ;;  %v3564_v13 = vadd.f32 %v1404_v52, %v1333_v2  ;;  %v1735_v30 = vadd.f32 %v1266_v47, %v1195_v40  ;;  %v3574_v38 = vld [vmem:[#allocation2 + $0x12a] sm:$0xff] }
  0xc9   :  { %2743 = vtanh.f32 %v1990_v42  ;;  %2629 = vmatmul.msk.f32.vlgmr.msra.gmra.mxu1 %vm552_vm2, %v2740_v3  ;;  %v1799_v41 = vadd.f32 %v1408_v59, %v1337_v4  ;;  %v3570_v42 = vld [vmem:[#allocation2 + $0x31] sm:$0xff]  ;;  %v1235_v37 = vmul.f32 %v3364_v8, %v3471_v11  ;;  %v1671_v29 = vadd.f32 %v1607_v19, %v1543_v23 }
  0xca   :  { %2745 = vtanh.f32 %v323_v33  ;;  %5574 = vst [vmem:[#allocation4_spill] sm:$0xff] %v3564_v13  ;;  %v756_v39 = vmul.f32 %v3349_v5, %v3397_v20  ;;  %v889_v43 = vmul.f32 %v3354_v6, %v3401_v24  ;;  %v3580_v40 = vld [vmem:[#allocation2 + $0x30] sm:$0xff]  ;;  %v1022_v47 = vmul.f32 %v3379_v14, %v3403_v25 }
  0xcb   :  { %2747 = vtanh.f32 %v1959_v1  ;;  %2582 = vmatmul.msk.f32.gmra.mxu0 %vm82_vm1, %v42_v57  ;;  %v1863_v51 = vadd.f32 %v1799_v41, %v1735_v30  ;;  %v1093_v52 = vmul.f32 %v3384_v15, %v3419_v36  ;;  %v1164_v55 = vmul.f32 %v3359_v7, %v3439_v48  ;;  %v75_v4 = vld [vmem:[%s5565_s0 + $0x1d0] sm:$0xff] }
  0xcc   :  { %2614 = vmatmul.msk.f32.gmra.mxu2 %vm82_vm1, %v74_v0  ;;  %v1267_v24 = vmul.f32 %v3364_v8, %v3510_v49  ;;  %v1306_v33 = vmul.f32 %v3389_v16, %v3580_v40  ;;  %v1377_v57 = vmul.f32 %v3395_v17, %v3570_v42  ;;  %v43_v0 = vld [vmem:[%s5565_s0 + $0xd0] sm:$0xff]  ;;  %v1479_v1 = vmul.f32 %v3480_v22, %v3574_v38 }
  0xcd   :  { %v1927_v63 = vadd.f32 %v1863_v51, %v1671_v29  ;;  %v1576_v2 = vadd.f32 %v1093_v52, %v1022_v47  ;;  %v1512_v19 = vadd.f32 %v889_v43, %v756_v39  ;;  %v1704_v23 = vadd.f32 %v1235_v37, %v1164_v55  ;;  %v3605_v41 = vld [vmem:[#allocation2 + $0x130] sm:$0xff] }
  0xce   :  { %v2742_v46 = vpop.eup %2741  ;;  %v1768_v30 = vadd.f32 %v1377_v57, %v1306_v33  ;;  %v3611_v51 = vld [vmem:[#allocation2 + $0x32] sm:$0xff]  ;;  %v788_v47 = vmul.f32 %v3349_v5, %v3411_v32  ;;  %v1054_v52 = vmul.f32 %v3379_v14, %v3441_v50  ;;  %v1125_v43 = vmul.f32 %v3384_v15, %v3451_v56 }
  0xcf   :  { %v2744_v59 = vpop.eup %2743  ;;  %662 = vst.msk [vmem:[#allocation2 + $0x140] sm:$0xff] %vm552_vm2, %v2742_v46  ;;  %v419_v20 = vpop.f32.mrf.mxu2  ;;  %v3607_v46 = vld [vmem:[#allocation2 + $0x131] sm:$0xff]  ;;  %v1991_v29 = vadd.f32 %v1927_v63, %v1479_v1  ;;  %v1640_v37 = vadd.f32 %v1576_v2, %v1512_v19  ;;  %v1338_v32 = vmul.f32 %v3389_v16, %v3605_v41  ;;  %v1448_v55 = vmul.f32 %v3480_v22, %v3611_v51 }
  0xd0   :  { %v2746_v25 = vpop.eup %2745  ;;  %2749 = vtanh.f32 %v419_v20  ;;  %2661 = vmatmul.msk.f32.vlgmr.msra.gmra.mxu3 %vm552_vm2, %v2744_v59  ;;  %v326_v60 = vpop.f32.mrf.mxu0  ;;  %v921_v59 = vmul.f32 %v3354_v6, %v3416_v34  ;;  %v1832_v39 = vadd.f32 %v1768_v30, %v1704_v23  ;;  %v1196_v34 = vmul.f32 %v3359_v7, %v3482_v26  ;;  %v3630_v1 = vld [vmem:[#allocation2 + $0x132] sm:$0xff] }
  0xd1   :  { %v2748_v3 = vpop.eup %2747  ;;  %631 = vst.msk [vmem:[#allocation2 + $0x48] sm:$0xff] %vm552_vm2, %v2746_v25  ;;  %2751 = vtanh.f32 %v326_v60  ;;  %v1409_v50 = vmul.f32 %v3395_v17, %v3607_v46  ;;  %v1608_v57 = vadd.f32 %v1125_v43, %v1054_v52  ;;  %v757_v2 = vmul.f32 %v3349_v5, %v3454_v58 }
  0xd2   :  { %2630 = vmatmul.msk.f32.gmra.mxu1 %vm552_vm2, %v2748_v3  ;;  %2753 = vtanh.f32 %v1991_v29  ;;  %v1896_v20 = vadd.f32 %v1832_v39, %v1640_v37  ;;  %v1544_v33 = vadd.f32 %v921_v59, %v788_v47  ;;  %v1736_v63 = vadd.f32 %v1267_v24, %v1196_v34  ;;  %v3634_v3 = vld [vmem:[#allocation2 + $0x39] sm:$0xff] }
  0xd3   :  { %2583 = vmatmul.msk.f32.gmra.mxu0 %vm82_vm1, %v43_v0  ;;  %v1800_v0 = vadd.f32 %v1409_v50, %v1338_v32  ;;  %v890_v60 = vmul.f32 %v3354_v6, %v3467_v9  ;;  %v1023_v30 = vmul.f32 %v3379_v14, %v3469_v10  ;;  %v1094_v24 = vmul.f32 %v3384_v15, %v3484_v27  ;;  %v3645_v47 = vld [vmem:[#allocation2 + $0x38] sm:$0xff] }
  0xd4   :  { %2615 = vmatmul.msk.f32.gmra.mxu2 %vm82_vm1, %v75_v4  ;;  %v1236_v4 = vmul.f32 %v3364_v8, %v3512_v54  ;;  %v1960_v23 = vadd.f32 %v1896_v20, %v1448_v55  ;;  %v1672_v58 = vadd.f32 %v1608_v57, %v1544_v33  ;;  %v1165_v9 = vmul.f32 %v3359_v7, %v3504_v45  ;;  %v44_v10 = vld [vmem:[%s5565_s0 + $0xd8] sm:$0xff] }
  0xd5   :  { %v1864_v29 = vadd.f32 %v1800_v0, %v1736_v63  ;;  %v76_v37 = vld [vmem:[%s5565_s0 + $0x1d8] sm:$0xff]  ;;  %v1480_v39 = vmul.f32 %v3480_v22, %v3630_v1  ;;  %v1307_v43 = vmul.f32 %v3389_v16, %v3645_v47  ;;  %v1378_v34 = vmul.f32 %v3395_v17, %v3634_v3 }
  0xd6   :  { %v2750_v25 = vpop.eup %2749  ;;  %v1513_v55 = vadd.f32 %v890_v60, %v757_v2  ;;  %v1577_v20 = vadd.f32 %v1094_v24, %v1023_v30  ;;  %v1268_v33 = vmul.f32 %v3364_v8, %v3574_v38  ;;  %v1705_v57 = vadd.f32 %v1236_v4, %v1165_v9  ;;  %v3665_v63 = vld [vmem:[#allocation2 + $0x138] sm:$0xff] }
  0xd7   :  { %663 = vst.msk [vmem:[#allocation2 + $0x148] sm:$0xff] %vm552_vm2, %v2750_v25  ;;  %v422_v19 = vpop.f32.mrf.mxu2  ;;  %v2752_v59 = vpop.eup %2751  ;;  %v1928_v50 = vadd.f32 %v1864_v29, %v1672_v58  ;;  %v1769_v25 = vadd.f32 %v1378_v34, %v1307_v43  ;;  %v3667_v0 = vld [vmem:[#allocation2 + $0x139] sm:$0xff]  ;;  %v789_v30 = vmul.f32 %v3349_v5, %v3516_v12  ;;  %v1055_v24 = vmul.f32 %v3379_v14, %v3526_v18 }
  0xd8   :  { %2755 = vtanh.f32 %v422_v19  ;;  %632 = vst.msk [vmem:[#allocation2 + $0x50] sm:$0xff] %vm552_vm2, %v2752_v59  ;;  %v329_v52 = vpop.f32.mrf.mxu0  ;;  %v2754_v32 = vpop.eup %2753  ;;  %v922_v19 = vmul.f32 %v3354_v6, %v3518_v21  ;;  %v3673_v60 = vld [vmem:[#allocation2 + $0x3a] sm:$0xff]  ;;  %v1126_v59 = vmul.f32 %v3384_v15, %v3538_v44  ;;  %v1197_v21 = vmul.f32 %v3359_v7, %v3529_v35 }
  0xd9   :  { %2757 = vtanh.f32 %v1960_v23  ;;  %2662 = vmatmul.msk.f32.gmra.mxu3 %vm552_vm2, %v2754_v32  ;;  %v1992_v2 = vadd.f32 %v1928_v50, %v1480_v39  ;;  %v1641_v23 = vadd.f32 %v1577_v20, %v1513_v55  ;;  %v1833_v4 = vadd.f32 %v1769_v25, %v1705_v57  ;;  %v3695_v55 = vld [vmem:[#allocation2 + $0x41] sm:$0xff] }
  0xda   :  { %2759 = vtanh.f32 %v329_v52  ;;  %v1024_v29 = vmul.f32 %v3379_v14, %v3471_v11  ;;  %v1339_v9 = vmul.f32 %v3389_v16, %v3665_v63  ;;  %v1410_v12 = vmul.f32 %v3395_v17, %v3667_v0  ;;  %v45_v25 = vld [vmem:[%s5565_s0 + $0xe0] sm:$0xff] }
  0xdb   :  { %2584 = vmatmul.msk.f32.gmra.mxu0 %vm82_vm1, %v44_v10  ;;  %2761 = vtanh.f32 %v1992_v2  ;;  %v1449_v10 = vmul.f32 %v3480_v22, %v3673_v60  ;;  %v1545_v39 = vadd.f32 %v922_v19, %v789_v30  ;;  %v1609_v43 = vadd.f32 %v1126_v59, %v1055_v24  ;;  %v77_v19 = vld [vmem:[%s5565_s0 + $0x1e0] sm:$0xff] }
  0xdc   :  { %2616 = vmatmul.msk.f32.gmra.mxu2 %vm82_vm1, %v76_v37  ;;  %v1897_v37 = vadd.f32 %v1833_v4, %v1641_v23  ;;  %v1237_v11 = vmul.f32 %v3364_v8, %v3611_v51  ;;  %v1737_v32 = vadd.f32 %v1268_v33, %v1197_v21  ;;  %v1801_v50 = vadd.f32 %v1410_v12, %v1339_v9  ;;  %v3704_v2 = vld [vmem:[#allocation2 + $0x13a] sm:$0xff] }
  0xdd   :  { %v1673_v23 = vadd.f32 %v1609_v43, %v1545_v39  ;;  %v758_v33 = vmul.f32 %v3349_v5, %v3419_v36  ;;  %v891_v30 = vmul.f32 %v3354_v6, %v3439_v48  ;;  %v3710_v24 = vld [vmem:[#allocation2 + $0x40] sm:$0xff]  ;;  %v1095_v59 = vmul.f32 %v3384_v15, %v3580_v40 }
  0xde   :  { %v2756_v58 = vpop.eup %2755  ;;  %v1961_v57 = vadd.f32 %v1897_v37, %v1449_v10  ;;  %v1865_v4 = vadd.f32 %v1801_v50, %v1737_v32  ;;  %v1166_v21 = vmul.f32 %v3359_v7, %v3570_v42  ;;  %v1308_v36 = vmul.f32 %v3389_v16, %v3710_v24 }
  0xdf   :  { %v2758_v52 = vpop.eup %2757  ;;  %664 = vst.msk [vmem:[#allocation2 + $0x150] sm:$0xff] %vm552_vm2, %v2756_v58  ;;  %v425_v18 = vpop.f32.mrf.mxu2  ;;  %v1056_v58 = vmul.f32 %v3379_v14, %v3510_v49  ;;  %v1379_v48 = vmul.f32 %v3395_v17, %v3695_v55  ;;  %v3724_v12 = vmul.f32 %v3379_v14, %v3512_v54  ;;  %v1514_v10 = vadd.f32 %v891_v30, %v758_v33  ;;  %v3735_v54 = vld [vmem:[#allocation2 + $0x141] sm:$0xff] }
  0xe0   :  { %v2760_v34 = vpop.eup %2759  ;;  %2631 = vmatmul.msk.f32.gmra.mxu1 %vm552_vm2, %v2758_v52  ;;  %2763 = vtanh.f32 %v425_v18  ;;  %v332_v20 = vpop.f32.mrf.mxu0  ;;  %v1481_v52 = vmul.f32 %v3480_v22, %v3704_v2  ;;  %v1929_v49 = vadd.f32 %v1865_v4, %v1673_v23  ;;  %v3731_v18 = vld [vmem:[#allocation2 + $0x42] sm:$0xff]  ;;  %v1578_v37 = vadd.f32 %v1095_v59, %v1024_v29 }
  0xe1   :  { %633 = vst.msk [vmem:[#allocation2 + $0x58] sm:$0xff] %vm552_vm2, %v2760_v34  ;;  %2765 = vtanh.f32 %v332_v20  ;;  %v2762_v9 = vpop.eup %2761  ;;  %v1706_v39 = vadd.f32 %v1237_v11, %v1166_v21  ;;  %v1770_v43 = vadd.f32 %v1379_v48, %v1308_v36  ;;  %v3733_v34 = vld [vmem:[#allocation2 + $0x140] sm:$0xff]  ;;  %v1269_v50 = vmul.f32 %v3364_v8, %v3630_v1  ;;  %v46_v48 = vld [vmem:[%s5565_s0 + $0xe8] sm:$0xff] }
  0xe2   :  { %2767 = vtanh.f32 %v1961_v57  ;;  %2663 = vmatmul.msk.f32.gmra.mxu3 %vm552_vm2, %v2762_v9  ;;  %v1993_v20 = vadd.f32 %v1929_v49, %v1481_v52  ;;  %v923_v57 = vmul.f32 %v3354_v6, %v3482_v26  ;;  %v1642_v11 = vadd.f32 %v1578_v37, %v1514_v10  ;;  %v78_v9 = vld [vmem:[%s5565_s0 + $0x1e8] sm:$0xff] }
  0xe3   :  { %2585 = vmatmul.msk.f32.gmra.mxu0 %vm82_vm1, %v45_v25  ;;  %v1127_v25 = vmul.f32 %v3384_v15, %v3605_v41  ;;  %v790_v23 = vmul.f32 %v3349_v5, %v3451_v56  ;;  %v1198_v33 = vmul.f32 %v3359_v7, %v3607_v46  ;;  %v1450_v4 = vmul.f32 %v3480_v22, %v3731_v18 }
  0xe4   :  { %2617 = vmatmul.msk.f32.gmra.mxu2 %vm82_vm1, %v77_v19  ;;  %v1834_v19 = vadd.f32 %v1770_v43, %v1706_v39  ;;  %v1340_v26 = vmul.f32 %v3389_v16, %v3733_v34  ;;  %v1411_v59 = vmul.f32 %v3395_v17, %v3735_v54  ;;  %v1238_v10 = vmul.f32 %v3364_v8, %v3673_v60  ;;  %v3764_v43 = vld [vmem:[#allocation2 + $0x49] sm:$0xff] }
  0xe5   :  { %v1546_v52 = vadd.f32 %v923_v57, %v790_v23  ;;  %v1610_v49 = vadd.f32 %v1127_v25, %v1056_v58  ;;  %v1738_v37 = vadd.f32 %v1269_v50, %v1198_v33  ;;  %v892_v58 = vmul.f32 %v3354_v6, %v3504_v45  ;;  %v3774_v25 = vld [vmem:[#allocation2 + $0x48] sm:$0xff] }
  0xe6   :  { %v2764_v32 = vpop.eup %2763  ;;  %v1898_v56 = vadd.f32 %v1834_v19, %v1642_v11  ;;  %v1802_v39 = vadd.f32 %v1411_v59, %v1340_v26  ;;  %v759_v11 = vmul.f32 %v3349_v5, %v3484_v27  ;;  %v1096_v50 = vmul.f32 %v3384_v15, %v3645_v47 }
  0xe7   :  { %665 = vst.msk [vmem:[#allocation2 + $0x158] sm:$0xff] %vm552_vm2, %v2764_v32  ;;  %v428_v29 = vpop.f32.mrf.mxu2  ;;  %v2766_v30 = vpop.eup %2765  ;;  %v1167_v19 = vmul.f32 %v3359_v7, %v3634_v3  ;;  %v1057_v23 = vmul.f32 %v3379_v14, %v3574_v38  ;;  %v1309_v27 = vmul.f32 %v3389_v16, %v3774_v25  ;;  %v1380_v45 = vmul.f32 %v3395_v17, %v3764_v43 }
  0xe8   :  { %2769 = vtanh.f32 %v428_v29  ;;  %v2768_v21 = vpop.eup %2767  ;;  %634 = vst.msk [vmem:[#allocation2 + $0x60] sm:$0xff] %vm552_vm2, %v2766_v30  ;;  %v335_v36 = vpop.f32.mrf.mxu0  ;;  %v1962_v32 = vadd.f32 %v1898_v56, %v1450_v4  ;;  %v1674_v29 = vadd.f32 %v1610_v49, %v1546_v52  ;;  %v1866_v57 = vadd.f32 %v1802_v39, %v1738_v37  ;;  %v3798_v52 = vld [vmem:[#allocation2 + $0x148] sm:$0xff] }
  0xe9   :  { %2771 = vtanh.f32 %v1993_v20  ;;  %2632 = vmatmul.msk.f32.gmra.mxu1 %vm552_vm2, %v2768_v21  ;;  %v3766_v20 = vld [vmem:[#allocation2 + $0x142] sm:$0xff]  ;;  %v3788_v30 = vmul.f32 %v3379_v14, %v3611_v51  ;;  %v1579_v59 = vadd.f32 %v1096_v50, %v3724_v12  ;;  %v3795_v38 = vmul.f32 %v3379_v14, %v3630_v1  ;;  %v3805_v1 = vld [vmem:[#allocation2 + $0x4a] sm:$0xff] }
  0xea   :  { %2773 = vtanh.f32 %v335_v36  ;;  %v1482_v4 = vmul.f32 %v3480_v22, %v3766_v20  ;;  %v1930_v26 = vadd.f32 %v1866_v57, %v1674_v29  ;;  %v1515_v56 = vadd.f32 %v892_v58, %v759_v11  ;;  %v3800_v51 = vld [vmem:[#allocation2 + $0x149] sm:$0xff] }
  0xeb   :  { %2586 = vmatmul.msk.f32.gmra.mxu0 %vm82_vm1, %v46_v48  ;;  %2775 = vtanh.f32 %v1962_v32  ;;  %v1707_v48 = vadd.f32 %v1238_v10, %v1167_v19  ;;  %v1270_v37 = vmul.f32 %v3364_v8, %v3704_v2  ;;  %v924_v39 = vmul.f32 %v3354_v6, %v3529_v35  ;;  %v47_v11 = vld [vmem:[%s5565_s0 + $0xf0] sm:$0xff] }
  0xec   :  { %2618 = vmatmul.msk.f32.gmra.mxu2 %vm82_vm1, %v78_v9  ;;  %v1771_v9 = vadd.f32 %v1380_v45, %v1309_v27  ;;  %v1994_v12 = vadd.f32 %v1930_v26, %v1482_v4  ;;  %v1643_v32 = vadd.f32 %v1579_v59, %v1515_v56  ;;  %v1128_v58 = vmul.f32 %v3384_v15, %v3665_v63  ;;  %v79_v35 = vld [vmem:[%s5565_s0 + $0x1f0] sm:$0xff] }
  0xed   :  { %v1199_v57 = vmul.f32 %v3359_v7, %v3667_v0  ;;  %v791_v50 = vmul.f32 %v3349_v5, %v3538_v44  ;;  %v1341_v19 = vmul.f32 %v3389_v16, %v3798_v52  ;;  %v1412_v27 = vmul.f32 %v3395_v17, %v3800_v51 }
  0xee   :  { %v2770_v33 = vpop.eup %2769  ;;  %v1835_v29 = vadd.f32 %v1771_v9, %v1707_v48  ;;  %v1611_v26 = vadd.f32 %v1128_v58, %v1057_v23  ;;  %v1239_v56 = vmul.f32 %v3364_v8, %v3731_v18  ;;  %v3835_v9 = vld [vmem:[#allocation2 + $0x14a] sm:$0xff]  ;;  %v760_v23 = vmul.f32 %v3349_v5, %v3580_v40 }
  0xef   :  { %v2772_v21 = vpop.eup %2771  ;;  %666 = vst.msk [vmem:[#allocation2 + $0x160] sm:$0xff] %vm552_vm2, %v2770_v33  ;;  %v431_v36 = vpop.f32.mrf.mxu2  ;;  %v1451_v33 = vmul.f32 %v3480_v22, %v3805_v1  ;;  %v1547_v59 = vadd.f32 %v924_v39, %v791_v50  ;;  %v1803_v44 = vadd.f32 %v1412_v27, %v1341_v19  ;;  %v3861_v27 = vmul.f32 %v3379_v14, %v3704_v2 }
  0xf0   :  { %v2774_v49 = vpop.eup %2773  ;;  %2664 = vmatmul.msk.f32.gmra.mxu3 %vm552_vm2, %v2772_v21  ;;  %2777 = vtanh.f32 %v431_v36  ;;  %v338_v10 = vpop.f32.mrf.mxu0  ;;  %v1899_v4 = vadd.f32 %v1835_v29, %v1643_v32  ;;  %v1739_v21 = vadd.f32 %v1270_v37, %v1199_v57  ;;  %v3830_v36 = vld [vmem:[#allocation2 + $0x51] sm:$0xff]  ;;  %v1097_v32 = vmul.f32 %v3384_v15, %v3710_v24 }
  0xf1   :  { %635 = vst.msk [vmem:[#allocation2 + $0x68] sm:$0xff] %vm552_vm2, %v2774_v49  ;;  %2779 = vtanh.f32 %v1994_v12  ;;  %v2776_v45 = vpop.eup %2775  ;;  %v893_v49 = vmul.f32 %v3354_v6, %v3570_v42  ;;  %v1675_v39 = vadd.f32 %v1611_v26, %v1547_v59  ;;  %v1168_v29 = vmul.f32 %v3359_v7, %v3695_v55  ;;  %v48_v59 = vld [vmem:[%s5565_s0 + $0xf8] sm:$0xff] }
  0xf2   :  { %2781 = vtanh.f32 %v338_v10  ;;  %2633 = vmatmul.msk.f32.gmra.mxu1 %vm552_vm2, %v2776_v45  ;;  %v1963_v48 = vadd.f32 %v1899_v4, %v1451_v33  ;;  %v1867_v37 = vadd.f32 %v1803_v44, %v1739_v21  ;;  %v3841_v10 = vld [vmem:[#allocation2 + $0x50] sm:$0xff]  ;;  %v1381_v58 = vmul.f32 %v3395_v17, %v3830_v36 }
  0xf3   :  { %2587 = vmatmul.msk.f32.gmra.mxu0 %vm82_vm1, %v47_v11  ;;  %v3849_v11 = vmul.f32 %v3379_v14, %v3673_v60  ;;  %v1310_v42 = vmul.f32 %v3389_v16, %v3841_v10  ;;  %v1580_v19 = vadd.f32 %v1097_v32, %v3788_v30  ;;  %v1516_v33 = vadd.f32 %v893_v49, %v760_v23  ;;  %v3867_v21 = vld [vmem:[#allocation2 + $0x150] sm:$0xff] }
  0xf4   :  { %2619 = vmatmul.msk.f32.gmra.mxu2 %vm82_vm1, %v79_v35  ;;  %2783 = vtanh.f32 %v1963_v48  ;;  %v1483_v35 = vmul.f32 %v3480_v22, %v3835_v9  ;;  %v1931_v50 = vadd.f32 %v1867_v37, %v1675_v39  ;;  %v1708_v4 = vadd.f32 %v1239_v56, %v1168_v29  ;;  %v3869_v44 = vld [vmem:[#allocation2 + $0x151] sm:$0xff] }
  0xf5   :  { %v1772_v26 = vadd.f32 %v1381_v58, %v1310_v42  ;;  %v1271_v30 = vmul.f32 %v3364_v8, %v3766_v20  ;;  %v3874_v48 = vld [vmem:[#allocation2 + $0x52] sm:$0xff]  ;;  %v925_v23 = vmul.f32 %v3354_v6, %v3607_v46  ;;  %v1644_v49 = vadd.f32 %v1580_v19, %v1516_v33 }
  0xf6   :  { %v2778_v12 = vpop.eup %2777  ;;  %v1995_v2 = vadd.f32 %v1931_v50, %v1483_v35  ;;  %v80_v56 = vld [vmem:[%s5565_s0 + $0x1f8] sm:$0xff]  ;;  %v1129_v39 = vmul.f32 %v3384_v15, %v3733_v34  ;;  %v1200_v37 = vmul.f32 %v3359_v7, %v3735_v54  ;;  %v792_v32 = vmul.f32 %v3349_v5, %v3605_v41 }
  0xf7   :  { %667 = vst.msk [vmem:[#allocation2 + $0x168] sm:$0xff] %vm552_vm2, %v2778_v12  ;;  %v434_v40 = vpop.f32.mrf.mxu2  ;;  %v2780_v57 = vpop.eup %2779  ;;  %v1836_v12 = vadd.f32 %v1772_v26, %v1708_v4  ;;  %v1342_v29 = vmul.f32 %v3389_v16, %v3867_v21  ;;  %v1413_v46 = vmul.f32 %v3395_v17, %v3869_v44  ;;  %v1240_v42 = vmul.f32 %v3364_v8, %v3805_v1  ;;  %v3901_v33 = vld [vmem:[#allocation2 + $0x59] sm:$0xff] }
  0xf8   :  { %2785 = vtanh.f32 %v434_v40  ;;  %v2782_v60 = vpop.eup %2781  ;;  %2665 = vmatmul.msk.f32.gmra.mxu3 %vm552_vm2, %v2780_v57  ;;  %v341_v45 = vpop.f32.mrf.mxu0  ;;  %v1452_v58 = vmul.f32 %v3480_v22, %v3874_v48  ;;  %v1612_v35 = vadd.f32 %v1129_v39, %v3795_v38  ;;  %v1548_v41 = vadd.f32 %v925_v23, %v792_v32 }
  0xf9   :  { %636 = vst.msk [vmem:[#allocation2 + $0x70] sm:$0xff] %vm552_vm2, %v2782_v60  ;;  %2787 = vtanh.f32 %v341_v45  ;;  %v1900_v57 = vadd.f32 %v1836_v12, %v1644_v49  ;;  %v1740_v19 = vadd.f32 %v1271_v30, %v1200_v37  ;;  %v1804_v60 = vadd.f32 %v1413_v46, %v1342_v29 }
  0xfa   :  { %2789 = vtanh.f32 %v1995_v2  ;;  %v2784_v40 = vpop.eup %2783  ;;  %v761_v45 = vmul.f32 %v3349_v5, %v3645_v47  ;;  %v3906_v2 = vld [vmem:[#allocation2 + $0x58] sm:$0xff]  ;;  %v894_v38 = vmul.f32 %v3354_v6, %v3634_v3  ;;  %v1098_v30 = vmul.f32 %v3384_v15, %v3774_v25 }
  0xfb   :  { %2588 = vmatmul.msk.f32.gmra.mxu0 %vm82_vm1, %v48_v59  ;;  %2634 = vmatmul.msk.f32.gmra.mxu1 %vm552_vm2, %v2784_v40  ;;  %v1964_v4 = vadd.f32 %v1900_v57, %v1452_v58  ;;  %v3904_v59 = vld [vmem:[#allocation2 + $0x152] sm:$0xff]  ;;  %v1676_v47 = vadd.f32 %v1612_v35, %v1548_v41  ;;  %v1868_v23 = vadd.f32 %v1804_v60, %v1740_v19  ;;  %v3936_v58 = vld [vmem:[%s5566_s2 + $0x1] ss:$0 sm:$0xff]  ;;  %v3954_v19 = vld [vmem:[%s5566_s2 + $0x4] ss:$0 sm:$0xff] }
  0xfc   :  { %2620 = vmatmul.msk.f32.gmra.mxu2 %vm82_vm1, %v80_v56  ;;  %v1169_v56 = vmul.f32 %v3359_v7, %v3764_v43  ;;  %v1311_v49 = vmul.f32 %v3389_v16, %v3906_v2  ;;  %v3918_v12 = vmul.f32 %v3379_v14, %v3731_v18  ;;  %v1272_v6 = vmul.f32 %v3364_v8, %v3835_v9  ;;  %v3928_v14 = vld [vmem:[#allocation2 + $0x158] sm:$0xff] }
  0xfd   :  { %v1382_v7 = vmul.f32 %v3395_v17, %v3901_v33  ;;  %v1484_v37 = vmul.f32 %v3480_v22, %v3904_v59  ;;  %v1932_v32 = vadd.f32 %v1868_v23, %v1676_v47  ;;  %v1581_v29 = vadd.f32 %v1098_v30, %v3849_v11  ;;  %v3930_v18 = vld [vmem:[#allocation2 + $0x159] sm:$0xff] }
  0xfe   :  { %v2786_v50 = vpop.eup %2785  ;;  %v1517_v8 = vadd.f32 %v894_v38, %v761_v45  ;;  %v1709_v46 = vadd.f32 %v1240_v42, %v1169_v56  ;;  %v926_v57 = vmul.f32 %v3936_v58, %v3667_v0  ;;  %v3945_v11 = vld [vmem:[%s5566_s2] ss:$0 sm:$0xff]  ;;  %v1130_v41 = vmul.f32 %v3384_v15, %v3798_v52  ;;  %v3965_v15 = vld [vmem:[%s5566_s2 + $0x5] ss:$0 sm:$0xff] }
  0xff   :  { %668 = vst.msk [vmem:[#allocation2 + $0x170] sm:$0xff] %vm552_vm2, %v2786_v50  ;;  %v437_v26 = vpop.f32.mrf.mxu2  ;;  %v2788_v5 = vpop.eup %2787  ;;  %v1773_v40 = vadd.f32 %v1382_v7, %v1311_v49  ;;  %v1996_v35 = vadd.f32 %v1932_v32, %v1484_v37  ;;  %v3940_v50 = vld [vmem:[#allocation2 + $0x5a] sm:$0xff]  ;;  %v793_v42 = vmul.f32 %v3945_v11, %v3665_v63  ;;  %v1201_v0 = vmul.f32 %v3954_v19, %v3800_v51 }
 0x100   :  { %2791 = vtanh.f32 %v437_v26  ;;  %637 = vst.msk [vmem:[#allocation2 + $0x78] sm:$0xff] %vm552_vm2, %v2788_v5  ;;  %v344_v3 = vpop.f32.mrf.mxu0  ;;  %v2790_v39 = vpop.eup %2789  ;;  %v1645_v60 = vadd.f32 %v1581_v29, %v1517_v8  ;;  %v1414_v26 = vmul.f32 %v3395_v17, %v3930_v18  ;;  %v1241_v38 = vmul.f32 %v3965_v15, %v3874_v48 }
 0x101   :  { %2793 = vtanh.f32 %v1964_v4  ;;  %2666 = vmatmul.msk.f32.gmra.mxu3 %vm552_vm2, %v2790_v39  ;;  %v1837_v45 = vadd.f32 %v1773_v40, %v1709_v46  ;;  %v1343_v4 = vmul.f32 %v3389_v16, %v3928_v14  ;;  %v1549_v30 = vadd.f32 %v926_v57, %v793_v42  ;;  %v3976_v39 = vld [vmem:[#allocation2 + $0x15a] sm:$0xff]  ;;  %v3988_v40 = vld [vmem:[%s5566_s2 + $0x3] ss:$0 sm:$0xff]  ;;  %v4004_v42 = vld [vmem:[%s5566_s2 + $0x6] ss:$0 sm:$0xff] }
 0x102   :  { %2795 = vtanh.f32 %v344_v3  ;;  %v1613_v56 = vadd.f32 %v1130_v41, %v3861_v27  ;;  %v1453_v16 = vmul.f32 %v3480_v22, %v3940_v50  ;;  %v1741_v23 = vadd.f32 %v1272_v6, %v1201_v0  ;;  %v3973_v3 = vld [vmem:[#allocation2 + $0x61] sm:$0xff] }
 0x103   :  { %2797 = vtanh.f32 %v1996_v35  ;;  %v1901_v17 = vadd.f32 %v1837_v45, %v1645_v60  ;;  %v1805_v49 = vadd.f32 %v1414_v26, %v1343_v4  ;;  %v762_v27 = vmul.f32 %v3945_v11, %v3710_v24  ;;  %v3983_v46 = vld [vmem:[#allocation2 + $0x60] sm:$0xff] }
 0x104   :  { %v1677_v37 = vadd.f32 %v1613_v56, %v1549_v30  ;;  %v895_v32 = vmul.f32 %v3936_v58, %v3695_v55  ;;  %v1099_v57 = vmul.f32 %v3988_v40, %v3841_v10  ;;  %v1170_v24 = vmul.f32 %v3954_v19, %v3830_v36  ;;  %v3997_v55 = vld [vmem:[%s5566_s2 + $0x2] ss:$0 sm:$0xff]  ;;  %v4011_v0 = vld [vmem:[%s5566_s2 + $0x7] ss:$0 sm:$0xff] }
 0x105   :  { %v1965_v29 = vadd.f32 %v1901_v17, %v1453_v16  ;;  %v1869_v6 = vadd.f32 %v1805_v49, %v1741_v23  ;;  %v1060_v35 = vmul.f32 %v3997_v55, %v3766_v20  ;;  %v1312_v41 = vmul.f32 %v4004_v42, %v3983_v46  ;;  %v4020_v16 = vld [vmem:[#allocation2 + $0x160] sm:$0xff] }
 0x106   :  { %v2792_v63 = vpop.eup %2791  ;;  %v1383_v60 = vmul.f32 %v4011_v0, %v3973_v3  ;;  %v1029_v20 = vmul.f32 %v3997_v55, %v3805_v1  ;;  %v1485_v45 = vmul.f32 %v3480_v22, %v3976_v39  ;;  %v1582_v30 = vadd.f32 %v1099_v57, %v3918_v12  ;;  %v4022_v17 = vld [vmem:[#allocation2 + $0x161] sm:$0xff] }
 0x107   :  { %v2794_v5 = vpop.eup %2793  ;;  %669 = vst.msk [vmem:[#allocation2 + $0x178] sm:$0xff] %vm552_vm2, %v2792_v63  ;;  %v440_v47 = vpop.f32.mrf.mxu2  ;;  %v1933_v4 = vadd.f32 %v1869_v6, %v1677_v37  ;;  %v1518_v63 = vadd.f32 %v895_v32, %v762_v27  ;;  %v1710_v56 = vadd.f32 %v1241_v38, %v1170_v24  ;;  %v4027_v23 = vld [vmem:[#allocation2 + $0x62] sm:$0xff]  ;;  %v927_v49 = vmul.f32 %v3936_v58, %v3735_v54 }
 0x108   :  { %v2796_v7 = vpop.eup %2795  ;;  %2635 = vmatmul.msk.f32.gmra.mxu1 %vm552_vm2, %v2794_v5  ;;  %2799 = vtanh.f32 %v440_v47  ;;  %v347_v8 = vpop.f32.mrf.mxu0  ;;  %v1774_v5 = vadd.f32 %v1383_v60, %v1312_v41  ;;  %v1273_v47 = vmul.f32 %v3965_v15, %v3904_v59  ;;  %v1131_v12 = vmul.f32 %v3988_v40, %v3867_v21 }
 0x109   :  { %638 = vst.msk [vmem:[#allocation2 + $0x80] sm:$0xff] %vm552_vm2, %v2796_v7  ;;  %2801 = vtanh.f32 %v347_v8  ;;  %v2798_v26 = vpop.eup %2797  ;;  %v1997_v1 = vadd.f32 %v1933_v4, %v1485_v45  ;;  %v4035_v7 = vmul.f32 %v3997_v55, %v3835_v9  ;;  %v1646_v37 = vadd.f32 %v1582_v30, %v1518_v63  ;;  %v4051_v30 = vld [vmem:[#allocation2 + $0x69] sm:$0xff] }
 0x10a   :  { %2803 = vtanh.f32 %v1965_v29  ;;  %2667 = vmatmul.msk.f32.gmra.mxu3 %vm552_vm2, %v2798_v26  ;;  %v1838_v27 = vadd.f32 %v1774_v5, %v1710_v56  ;;  %v1202_v32 = vmul.f32 %v3954_v19, %v3869_v44  ;;  %v794_v54 = vmul.f32 %v3945_v11, %v3733_v34  ;;  %v4054_v5 = vld [vmem:[#allocation2 + $0x162] sm:$0xff] }
 0x10b   :  { %2805 = vtanh.f32 %v1997_v1  ;;  %v1344_v6 = vmul.f32 %v4004_v42, %v4020_v16  ;;  %v1415_v8 = vmul.f32 %v4011_v0, %v4022_v17  ;;  %v1454_v57 = vmul.f32 %v3480_v22, %v4027_v23 }
 0x10c   :  { %v1902_v24 = vadd.f32 %v1838_v27, %v1646_v37  ;;  %v1614_v41 = vadd.f32 %v1131_v12, %v1060_v35  ;;  %v1242_v45 = vmul.f32 %v3965_v15, %v3940_v50  ;;  %v1550_v34 = vadd.f32 %v927_v49, %v794_v54  ;;  %v4060_v49 = vld [vmem:[#allocation2 + $0x68] sm:$0xff] }
 0x10d   :  { %v1742_v4 = vadd.f32 %v1273_v47, %v1202_v32  ;;  %v1806_v26 = vadd.f32 %v1415_v8, %v1344_v6  ;;  %v763_v22 = vmul.f32 %v3945_v11, %v3774_v25  ;;  %v896_v35 = vmul.f32 %v3936_v58, %v3764_v43 }
 0x10e   :  { %v2800_v38 = vpop.eup %2799  ;;  %v1966_v56 = vadd.f32 %v1902_v24, %v1454_v57  ;;  %v1678_v1 = vadd.f32 %v1614_v41, %v1550_v34  ;;  %v1100_v47 = vmul.f32 %v3988_v40, %v3906_v2  ;;  %v1030_v37 = vmul.f32 %v3997_v55, %v3874_v48  ;;  %v4086_v34 = vld [vmem:[#allocation2 + $0x169] sm:$0xff] }
 0x10f   :  { %670 = vst.msk [vmem:[#allocation2 + $0x180] sm:$0xff] %vm552_vm2, %v2800_v38  ;;  %v443_v29 = vpop.f32.mrf.mxu2  ;;  %v2802_v9 = vpop.eup %2801  ;;  %v1870_v12 = vadd.f32 %v1806_v26, %v1742_v4  ;;  %v1171_v38 = vmul.f32 %v3954_v19, %v3901_v33  ;;  %v1313_v25 = vmul.f32 %v4004_v42, %v4060_v49  ;;  %v1384_v43 = vmul.f32 %v4011_v0, %v4051_v30 }
 0x110   :  { %2807 = vtanh.f32 %v443_v29  ;;  %v2804_v60 = vpop.eup %2803  ;;  %639 = vst.msk [vmem:[#allocation2 + $0x88] sm:$0xff] %vm552_vm2, %v2802_v9  ;;  %v350_v63 = vpop.f32.mrf.mxu0  ;;  %v1274_v32 = vmul.f32 %v3965_v15, %v3976_v39  ;;  %v4077_v29 = vld [vmem:[%s5566_s2 + $0x8] ss:$0 sm:$0xff]  ;;  %v1583_v6 = vadd.f32 %v1100_v47, %v1029_v20  ;;  %v4082_v9 = vld [vmem:[#allocation2 + $0x6a] sm:$0xff]  ;;  %v1519_v57 = vadd.f32 %v896_v35, %v763_v22 }
 0x111   :  { %2636 = vmatmul.msk.f32.gmra.mxu1 %vm552_vm2, %v2804_v60  ;;  %2809 = vtanh.f32 %v350_v63  ;;  %v2806_v27 = vpop.eup %2805  ;;  %v1486_v54 = vmul.f32 %v4077_v29, %v4054_v5  ;;  %v1934_v48 = vadd.f32 %v1870_v12, %v1678_v1  ;;  %v1711_v24 = vadd.f32 %v1242_v45, %v1171_v38  ;;  %v4084_v60 = vld [vmem:[#allocation2 + $0x168] sm:$0xff] }
 0x112   :  { %2811 = vtanh.f32 %v1966_v56  ;;  %2668 = vmatmul.msk.f32.gmra.mxu3 %vm552_vm2, %v2806_v27  ;;  %v1775_v41 = vadd.f32 %v1384_v43, %v1313_v25  ;;  %v928_v4 = vmul.f32 %v3936_v58, %v3800_v51  ;;  %v1243_v26 = vmul.f32 %v3965_v15, %v4027_v23 }
 0x113   :  { %v1998_v20 = vadd.f32 %v1934_v48, %v1486_v54  ;;  %v1132_v56 = vmul.f32 %v3988_v40, %v3928_v14  ;;  %v1203_v45 = vmul.f32 %v3954_v19, %v3930_v18  ;;  %v1647_v35 = vadd.f32 %v1583_v6, %v1519_v57 }
 0x114   :  { %v1839_v1 = vadd.f32 %v1775_v41, %v1711_v24  ;;  %v795_v51 = vmul.f32 %v3945_v11, %v3798_v52  ;;  %v1455_v12 = vmul.f32 %v4077_v29, %v4082_v9  ;;  %v1345_v47 = vmul.f32 %v4004_v42, %v4084_v60  ;;  %v4107_v52 = vld [vmem:[#allocation2 + $0x71] sm:$0xff] }
 0x115   :  { %v1416_v38 = vmul.f32 %v4011_v0, %v4086_v34  ;;  %v1615_v48 = vadd.f32 %v1132_v56, %v4035_v7  ;;  %v1743_v6 = vadd.f32 %v1274_v32, %v1203_v45  ;;  %v764_v57 = vmul.f32 %v3945_v11, %v3841_v10  ;;  %v4118_v7 = vld [vmem:[#allocation2 + $0x70] sm:$0xff] }
 0x116   :  { %v2808_v8 = vpop.eup %2807  ;;  %v1903_v27 = vadd.f32 %v1839_v1, %v1647_v35  ;;  %v1551_v54 = vadd.f32 %v928_v4, %v795_v51  ;;  %v897_v24 = vmul.f32 %v3936_v58, %v3830_v36  ;;  %v1062_v41 = vmul.f32 %v3997_v55, %v3904_v59  ;;  %v4116_v4 = vld [vmem:[#allocation2 + $0x16a] sm:$0xff] }
 0x117   :  { %671 = vst.msk [vmem:[#allocation2 + $0x188] sm:$0xff] %vm552_vm2, %v2808_v8  ;;  %v446_v63 = vpop.f32.mrf.mxu2  ;;  %v2810_v22 = vpop.eup %2809  ;;  %v1807_v8 = vadd.f32 %v1416_v38, %v1345_v47  ;;  %v1172_v32 = vmul.f32 %v3954_v19, %v3973_v3  ;;  %v1314_v10 = vmul.f32 %v4004_v42, %v4118_v7  ;;  %v1385_v36 = vmul.f32 %v4011_v0, %v4107_v52  ;;  %v4133_v38 = vld [vmem:[#allocation2 + $0x72] sm:$0xff] }
 0x118   :  { %2813 = vtanh.f32 %v446_v63  ;;  %640 = vst.msk [vmem:[#allocation2 + $0x90] sm:$0xff] %vm552_vm2, %v2810_v22  ;;  %v353_v25 = vpop.f32.mrf.mxu0  ;;  %v2812_v43 = vpop.eup %2811  ;;  %v1101_v63 = vmul.f32 %v3988_v40, %v3983_v46  ;;  %v1679_v56 = vadd.f32 %v1615_v48, %v1551_v54  ;;  %v1275_v22 = vmul.f32 %v3965_v15, %v4054_v5  ;;  %v4135_v54 = vld [vmem:[#allocation2 + $0x170] sm:$0xff] }
 0x119   :  { %2815 = vtanh.f32 %v1998_v20  ;;  %2637 = vmatmul.msk.f32.gmra.mxu1 %vm552_vm2, %v2812_v43  ;;  %v1967_v20 = vadd.f32 %v1903_v27, %v1455_v12  ;;  %v1871_v45 = vadd.f32 %v1807_v8, %v1743_v6  ;;  %v1520_v35 = vadd.f32 %v897_v24, %v764_v57  ;;  %v4137_v48 = vld [vmem:[#allocation2 + $0x171] sm:$0xff] }
 0x11a   :  { %2817 = vtanh.f32 %v353_v25  ;;  %v1584_v1 = vadd.f32 %v1101_v63, %v1030_v37  ;;  %v1487_v12 = vmul.f32 %v4077_v29, %v4116_v4  ;;  %v1712_v25 = vadd.f32 %v1243_v26, %v1172_v32 }
 0x11b   :  { %2819 = vtanh.f32 %v1967_v20  ;;  %v1935_v47 = vadd.f32 %v1871_v45, %v1679_v56  ;;  %v1776_v43 = vadd.f32 %v1385_v36, %v1314_v10  ;;  %v796_v8 = vmul.f32 %v3945_v11, %v3867_v21 }
 0x11c   :  { %v1648_v37 = vadd.f32 %v1584_v1, %v1520_v35  ;;  %v929_v57 = vmul.f32 %v3936_v58, %v3869_v44  ;;  %v1133_v20 = vmul.f32 %v3988_v40, %v4020_v16  ;;  %v1204_v63 = vmul.f32 %v3954_v19, %v4022_v17 }
 0x11d   :  { %v1999_v24 = vadd.f32 %v1935_v47, %v1487_v12  ;;  %v1840_v26 = vadd.f32 %v1776_v43, %v1712_v25  ;;  %v1031_v56 = vmul.f32 %v3997_v55, %v3940_v50  ;;  %v1456_v21 = vmul.f32 %v4077_v29, %v4133_v38  ;;  %v4159_v12 = vld [vmem:[#allocation2 + $0x79] sm:$0xff] }
 0x11e   :  { %v2814_v59 = vpop.eup %2813  ;;  %v1346_v44 = vmul.f32 %v4004_v42, %v4135_v54  ;;  %v1417_v45 = vmul.f32 %v4011_v0, %v4137_v48  ;;  %v1552_v36 = vadd.f32 %v929_v57, %v796_v8  ;;  %v1744_v1 = vadd.f32 %v1275_v22, %v1204_v63 }
 0x11f   :  { %v2816_v51 = vpop.eup %2815  ;;  %672 = vst.msk [vmem:[#allocation2 + $0x190] sm:$0xff] %vm552_vm2, %v2814_v59  ;;  %v449_v27 = vpop.f32.mrf.mxu2  ;;  %v1904_v10 = vadd.f32 %v1840_v26, %v1648_v37  ;;  %v1616_v59 = vadd.f32 %v1133_v20, %v1062_v41  ;;  %v765_v50 = vmul.f32 %v3945_v11, %v3906_v2  ;;  %v1063_v47 = vmul.f32 %v3997_v55, %v3976_v39  ;;  %v4170_v2 = vld [vmem:[#allocation2 + $0x78] sm:$0xff] }
 0x120   :  { %v2818_v6 = vpop.eup %2817  ;;  %2669 = vmatmul.msk.f32.gmra.mxu3 %vm552_vm2, %v2816_v51  ;;  %2821 = vtanh.f32 %v449_v27  ;;  %v356_v32 = vpop.f32.mrf.mxu0  ;;  %v1808_v51 = vadd.f32 %v1417_v45, %v1346_v44  ;;  %v1244_v25 = vmul.f32 %v3965_v15, %v4082_v9  ;;  %v4166_v27 = vld [vmem:[#allocation2 + $0x172] sm:$0xff]  ;;  %v898_v41 = vmul.f32 %v3936_v58, %v3901_v33  ;;  %v4185_v45 = vld [vmem:[#allocation2 + $0x7a] sm:$0xff] }
 0x121   :  { %641 = vst.msk [vmem:[#allocation2 + $0x98] sm:$0xff] %vm552_vm2, %v2818_v6  ;;  %2823 = vtanh.f32 %v1999_v24  ;;  %v2820_v35 = vpop.eup %2819  ;;  %v1968_v43 = vadd.f32 %v1904_v10, %v1456_v21  ;;  %v1680_v6 = vadd.f32 %v1616_v59, %v1552_v36  ;;  %v1102_v8 = vmul.f32 %v3988_v40, %v4060_v49  ;;  %v4187_v36 = vld [vmem:[#allocation2 + $0x178] sm:$0xff] }
 0x122   :  { %2825 = vtanh.f32 %v356_v32  ;;  %2638 = vmatmul.msk.f32.gmra.mxu1 %vm552_vm2, %v2820_v35  ;;  %v1872_v37 = vadd.f32 %v1808_v51, %v1744_v1  ;;  %v1173_v39 = vmul.f32 %v3954_v19, %v4051_v30  ;;  %v1032_v57 = vmul.f32 %v3997_v55, %v4027_v23  ;;  %v4189_v59 = vld [vmem:[#allocation2 + $0x179] sm:$0xff] }
 0x123   :  { %2827 = vtanh.f32 %v1968_v43  ;;  %v1315_v33 = vmul.f32 %v4004_v42, %v4170_v2  ;;  %v1386_v24 = vmul.f32 %v4011_v0, %v4159_v12  ;;  %v1488_v20 = vmul.f32 %v4077_v29, %v4166_v27 }
 0x124   :  { %v1936_v63 = vadd.f32 %v1872_v37, %v1680_v6  ;;  %v1521_v32 = vadd.f32 %v898_v41, %v765_v50  ;;  %v1585_v21 = vadd.f32 %v1102_v8, %v1031_v56  ;;  %v1713_v23 = vadd.f32 %v1244_v25, %v1173_v39 }
 0x125   :  { %v1777_v10 = vadd.f32 %v1386_v24, %v1315_v33  ;;  %v930_v35 = vmul.f32 %v3936_v58, %v3930_v18  ;;  %v1276_v43 = vmul.f32 %v3965_v15, %v4116_v4  ;;  %v1245_v56 = vmul.f32 %v3965_v15, %v4133_v38 }
 0x126   :  { %v2822_v22 = vpop.eup %2821  ;;  %v2000_v50 = vadd.f32 %v1936_v63, %v1488_v20  ;;  %v1134_v25 = vmul.f32 %v3988_v40, %v4084_v60  ;;  %v1649_v41 = vadd.f32 %v1585_v21, %v1521_v32  ;;  %v797_v18 = vmul.f32 %v3945_v11, %v3928_v14  ;;  %v4211_v63 = vld [vmem:[#allocation2 + $0x81] sm:$0xff] }
 0x127   :  { %673 = vst.msk [vmem:[#allocation2 + $0x198] sm:$0xff] %vm552_vm2, %v2822_v22  ;;  %v452_v26 = vpop.f32.mrf.mxu2  ;;  %v2824_v44 = vpop.eup %2823  ;;  %v1841_v22 = vadd.f32 %v1777_v10, %v1713_v23  ;;  %v1205_v6 = vmul.f32 %v3954_v19, %v4086_v34  ;;  %v1457_v37 = vmul.f32 %v4077_v29, %v4185_v45  ;;  %v1347_v8 = vmul.f32 %v4004_v42, %v4187_v36  ;;  %v4214_v14 = vld [vmem:[#allocation2 + $0x17a] sm:$0xff] }
 0x128   :  { %2829 = vtanh.f32 %v452_v26  ;;  %v359_v1 = vpop.f32.mrf.mxu0  ;;  %v2826_v51 = vpop.eup %2825  ;;  %2670 = vmatmul.msk.f32.gmra.mxu3 %vm552_vm2, %v2824_v44  ;;  %v1418_v39 = vmul.f32 %v4011_v0, %v4189_v59  ;;  %v1553_v26 = vadd.f32 %v930_v35, %v797_v18  ;;  %v1617_v20 = vadd.f32 %v1134_v25, %v1063_v47 }
 0x129   :  { %642 = vst.msk [vmem:[#allocation2 + $0xa0] sm:$0xff] %vm552_vm2, %v2826_v51  ;;  %2831 = vtanh.f32 %v2000_v50  ;;  %v2828_v33 = vpop.eup %2827  ;;  %v1905_v24 = vadd.f32 %v1841_v22, %v1649_v41  ;;  %v1745_v32 = vadd.f32 %v1276_v43, %v1205_v6  ;;  %v766_v44 = vmul.f32 %v3945_v11, %v3983_v46 }
 0x12a   :  { %2833 = vtanh.f32 %v359_v1  ;;  %2639 = vmatmul.msk.f32.gmra.mxu1 %vm552_vm2, %v2828_v33  ;;  %v1809_v21 = vadd.f32 %v1418_v39, %v1347_v8  ;;  %v899_v23 = vmul.f32 %v3936_v58, %v3973_v3  ;;  %v1064_v35 = vmul.f32 %v3997_v55, %v4054_v5  ;;  %v4222_v1 = vld [vmem:[#allocation2 + $0x80] sm:$0xff] }
 0x12b   :  { %v1969_v47 = vadd.f32 %v1905_v24, %v1457_v37  ;;  %v1103_v51 = vmul.f32 %v3988_v40, %v4118_v7  ;;  %v1174_v43 = vmul.f32 %v3954_v19, %v4107_v52  ;;  %v1681_v46 = vadd.f32 %v1617_v20, %v1553_v26  ;;  %v4235_v39 = vld [vmem:[#allocation2 + $0x82] sm:$0xff] }
 0x12c   :  { %v1873_v25 = vadd.f32 %v1809_v21, %v1745_v32  ;;  %v1316_v3 = vmul.f32 %v4004_v42, %v4222_v1  ;;  %v1387_v5 = vmul.f32 %v4011_v0, %v4211_v63  ;;  %v1489_v41 = vmul.f32 %v4077_v29, %v4214_v14  ;;  %v4237_v26 = vld [vmem:[#allocation2 + $0x180] sm:$0xff] }
 0x12d   :  { %2835 = vtanh.f32 %v1969_v47  ;;  %v1522_v22 = vadd.f32 %v899_v23, %v766_v44  ;;  %v1586_v18 = vadd.f32 %v1103_v51, %v1032_v57  ;;  %v1714_v33 = vadd.f32 %v1245_v56, %v1174_v43  ;;  %v4239_v20 = vld [vmem:[#allocation2 + $0x181] sm:$0xff] }
 0x12e   :  { %v2830_v10 = vpop.eup %2829  ;;  %v1937_v8 = vadd.f32 %v1873_v25, %v1681_v46  ;;  %v1778_v24 = vadd.f32 %v1387_v5, %v1316_v3  ;;  %v1277_v21 = vmul.f32 %v3965_v15, %v4166_v27  ;;  %v798_v57 = vmul.f32 %v3945_v11, %v4020_v16 }
 0x12f   :  { %v455_v50 = vpop.f32.mrf.mxu2  ;;  %674 = vst.msk [vmem:[#allocation2 + $0x1a0] sm:$0xff] %vm552_vm2, %v2830_v10  ;;  %v2832_v37 = vpop.eup %2831  ;;  %v1650_v44 = vadd.f32 %v1586_v18, %v1522_v22  ;;  %v931_v23 = vmul.f32 %v3936_v58, %v4022_v17  ;;  %v1135_v47 = vmul.f32 %v3988_v40, %v4135_v54  ;;  %v1206_v51 = vmul.f32 %v3954_v19, %v4137_v48  ;;  %v4263_v18 = vld [vmem:[#allocation2 + $0x89] sm:$0xff] }
 0x130   :  { %v362_v6 = vpop.f32.mrf.mxu0  ;;  %2837 = vtanh.f32 %v455_v50  ;;  %v2834_v32 = vpop.eup %2833  ;;  %2671 = vmatmul.msk.f32.gmra.mxu3 %vm552_vm2, %v2832_v37  ;;  %v2001_v56 = vadd.f32 %v1937_v8, %v1489_v41  ;;  %v1842_v10 = vadd.f32 %v1778_v24, %v1714_v33  ;;  %v1033_v43 = vmul.f32 %v3997_v55, %v4082_v9 }
 0x131   :  { %643 = vst.msk [vmem:[#allocation2 + $0xa8] sm:$0xff] %vm552_vm2, %v2834_v32  ;;  %v1458_v50 = vmul.f32 %v4077_v29, %v4235_v39  ;;  %v1348_v16 = vmul.f32 %v4004_v42, %v4237_v26  ;;  %v1419_v17 = vmul.f32 %v4011_v0, %v4239_v20  ;;  %v1554_v25 = vadd.f32 %v931_v23, %v798_v57  ;;  %v4270_v32 = vld [vmem:[#allocation2 + $0x182] sm:$0xff] }
 0x132   :  { %2839 = vtanh.f32 %v2001_v56  ;;  %v1906_v46 = vadd.f32 %v1842_v10, %v1650_v44  ;;  %v1618_v3 = vadd.f32 %v1135_v47, %v1064_v35  ;;  %v1746_v41 = vadd.f32 %v1277_v21, %v1206_v51  ;;  %v4275_v44 = vld [vmem:[#allocation2 + $0x88] sm:$0xff] }
 0x133   :  { %v2836_v5 = vpop.eup %2835  ;;  %v1810_v22 = vadd.f32 %v1419_v17, %v1348_v16  ;;  %2841 = vtanh.f32 %v362_v6  ;;  %v767_v9 = vmul.f32 %v3945_v11, %v4060_v49  ;;  %v1065_v33 = vmul.f32 %v3997_v55, %v4116_v4 }
 0x134   :  { %v1246_v24 = vmul.f32 %v3965_v15, %v4185_v45  ;;  %2640 = vmatmul.msk.f32.gmra.mxu1 %vm552_vm2, %v2836_v5  ;;  %v1970_v35 = vadd.f32 %v1906_v46, %v1458_v50  ;;  %v900_v6 = vmul.f32 %v3936_v58, %v4051_v30  ;;  %v1682_v49 = vadd.f32 %v1618_v3, %v1554_v25  ;;  %v4289_v46 = vld [vmem:[#allocation2 + $0x8a] sm:$0xff] }
 0x135   :  { %v1874_v21 = vadd.f32 %v1810_v22, %v1746_v41  ;;  %v1104_v4 = vmul.f32 %v3988_v40, %v4170_v2  ;;  %v1175_v57 = vmul.f32 %v3954_v19, %v4159_v12  ;;  %v1034_v23 = vmul.f32 %v3997_v55, %v4133_v38  ;;  %v4291_v38 = vld [vmem:[#allocation2 + $0x188] sm:$0xff] }
 0x136   :  { %v2838_v8 = vpop.eup %2837  ;;  %2843 = vtanh.f32 %v1970_v35  ;;  %v1317_v56 = vmul.f32 %v4004_v42, %v4275_v44  ;;  %v1388_v30 = vmul.f32 %v4011_v0, %v4263_v18  ;;  %v1490_v47 = vmul.f32 %v4077_v29, %v4270_v32  ;;  %v4293_v5 = vld [vmem:[#allocation2 + $0x189] sm:$0xff] }
 0x137   :  { %v458_v37 = vpop.f32.mrf.mxu2  ;;  %675 = vst.msk [vmem:[#allocation2 + $0x1a8] sm:$0xff] %vm552_vm2, %v2838_v8  ;;  %v1938_v51 = vadd.f32 %v1874_v21, %v1682_v49  ;;  %v1523_v50 = vadd.f32 %v900_v6, %v767_v9  ;;  %v1587_v16 = vadd.f32 %v1104_v4, %v1033_v43  ;;  %v1715_v25 = vadd.f32 %v1246_v24, %v1175_v57 }
 0x138   :  { %v365_v10 = vpop.f32.mrf.mxu0  ;;  %v2840_v17 = vpop.eup %2839  ;;  %v1779_v3 = vadd.f32 %v1388_v30, %v1317_v56  ;;  %2845 = vtanh.f32 %v458_v37  ;;  %v932_v41 = vmul.f32 %v3936_v58, %v4086_v34  ;;  %v1278_v8 = vmul.f32 %v3965_v15, %v4214_v14 }
 0x139   :  { %v2842_v22 = vpop.eup %2841  ;;  %2672 = vmatmul.msk.f32.gmra.mxu3 %vm552_vm2, %v2840_v17  ;;  %v1247_v43 = vmul.f32 %v3965_v15, %v4235_v39  ;;  %v2002_v9 = vadd.f32 %v1938_v51, %v1490_v47  ;;  %v1136_v37 = vmul.f32 %v3988_v40, %v4187_v36  ;;  %v1651_v24 = vadd.f32 %v1587_v16, %v1523_v50  ;;  %v4315_v51 = vld [vmem:[#allocation2 + $0x91] sm:$0xff] }
 0x13a   :  { %644 = vst.msk [vmem:[#allocation2 + $0xb0] sm:$0xff] %vm552_vm2, %v2842_v22  ;;  %v1843_v35 = vadd.f32 %v1779_v3, %v1715_v25  ;;  %v799_v34 = vmul.f32 %v3945_v11, %v4084_v60  ;;  %v1207_v6 = vmul.f32 %v3954_v19, %v4189_v59  ;;  %v1459_v49 = vmul.f32 %v4077_v29, %v4289_v46  ;;  %v4318_v50 = vld [vmem:[#allocation2 + $0x18a] sm:$0xff] }
 0x13b   :  { %2847 = vtanh.f32 %v2002_v9  ;;  %v1349_v21 = vmul.f32 %v4004_v42, %v4291_v38  ;;  %v1420_v4 = vmul.f32 %v4011_v0, %v4293_v5  ;;  %v1619_v47 = vadd.f32 %v1136_v37, %v1065_v33 }
 0x13c   :  { %v2844_v57 = vpop.eup %2843  ;;  %v1907_v56 = vadd.f32 %v1843_v35, %v1651_v24  ;;  %v1555_v30 = vadd.f32 %v932_v41, %v799_v34  ;;  %2849 = vtanh.f32 %v365_v10  ;;  %v1747_v16 = vadd.f32 %v1278_v8, %v1207_v6  ;;  %v4326_v41 = vld [vmem:[#allocation2 + $0x90] sm:$0xff] }
 0x13d   :  { %2641 = vmatmul.msk.f32.gmra.mxu1 %vm552_vm2, %v2844_v57  ;;  %v1811_v17 = vadd.f32 %v1420_v4, %v1349_v21  ;;  %v768_v25 = vmul.f32 %v3945_v11, %v4118_v7  ;;  %v901_v3 = vmul.f32 %v3936_v58, %v4107_v52  ;;  %v1066_v33 = vmul.f32 %v3997_v55, %v4166_v27  ;;  %v4339_v4 = vld [vmem:[#allocation2 + $0x92] sm:$0xff] }
 0x13e   :  { %v2846_v22 = vpop.eup %2845  ;;  %v1971_v10 = vadd.f32 %v1907_v56, %v1459_v49  ;;  %v1105_v9 = vmul.f32 %v3988_v40, %v4222_v1  ;;  %v1176_v8 = vmul.f32 %v3954_v19, %v4211_v63  ;;  %v1683_v37 = vadd.f32 %v1619_v47, %v1555_v30  ;;  %v4341_v30 = vld [vmem:[#allocation2 + $0x190] sm:$0xff] }
 0x13f   :  { %v461_v60 = vpop.f32.mrf.mxu2  ;;  %676 = vst.msk [vmem:[#allocation2 + $0x1b0] sm:$0xff] %vm552_vm2, %v2846_v22  ;;  %v1875_v7 = vadd.f32 %v1811_v17, %v1747_v16  ;;  %v1318_v52 = vmul.f32 %v4004_v42, %v4326_v41  ;;  %v1389_v24 = vmul.f32 %v4011_v0, %v4315_v51  ;;  %v1491_v27 = vmul.f32 %v4077_v29, %v4318_v50  ;;  %v4343_v47 = vld [vmem:[#allocation2 + $0x191] sm:$0xff] }
 0x140   :  { %2851 = vtanh.f32 %v1971_v10  ;;  %v1524_v35 = vadd.f32 %v901_v3, %v768_v25  ;;  %v1588_v34 = vadd.f32 %v1105_v9, %v1034_v23  ;;  %v368_v6 = vpop.f32.mrf.mxu0  ;;  %v1716_v57 = vadd.f32 %v1247_v43, %v1176_v8 }
 0x141   :  { %v2848_v49 = vpop.eup %2847  ;;  %v1939_v21 = vadd.f32 %v1875_v7, %v1683_v37  ;;  %v1780_v56 = vadd.f32 %v1389_v24, %v1318_v52  ;;  %2853 = vtanh.f32 %v461_v60  ;;  %v1279_v17 = vmul.f32 %v3965_v15, %v4270_v32 }
 0x142   :  { %v2850_v16 = vpop.eup %2849  ;;  %2673 = vmatmul.msk.f32.gmra.mxu3 %vm552_vm2, %v2848_v49  ;;  %v1652_v25 = vadd.f32 %v1588_v34, %v1524_v35  ;;  %v800_v23 = vmul.f32 %v3945_v11, %v4135_v54  ;;  %v933_v3 = vmul.f32 %v3936_v58, %v4137_v48  ;;  %v1137_v22 = vmul.f32 %v3988_v40, %v4237_v26  ;;  %v4371_v49 = vld [vmem:[#allocation2 + $0x99] sm:$0xff] }
 0x143   :  { %v2003_v43 = vadd.f32 %v1939_v21, %v1491_v27  ;;  %645 = vst.msk [vmem:[#allocation2 + $0xb8] sm:$0xff] %vm552_vm2, %v2850_v16  ;;  %v1844_v60 = vadd.f32 %v1780_v56, %v1716_v57  ;;  %v1208_v10 = vmul.f32 %v3954_v19, %v4239_v20  ;;  %v1035_v9 = vmul.f32 %v3997_v55, %v4185_v45 }
 0x144   :  { %v1460_v8 = vmul.f32 %v4077_v29, %v4339_v4  ;;  %v1350_v54 = vmul.f32 %v4004_v42, %v4341_v30  ;;  %v1421_v48 = vmul.f32 %v4011_v0, %v4343_v47  ;;  %v1556_v52 = vadd.f32 %v933_v3, %v800_v23  ;;  %v4383_v23 = vld [vmem:[#allocation2 + $0x98] sm:$0xff] }
 0x145   :  { %2855 = vtanh.f32 %v2003_v43  ;;  %v1908_v7 = vadd.f32 %v1844_v60, %v1652_v25  ;;  %v1620_v24 = vadd.f32 %v1137_v22, %v1066_v33  ;;  %v1748_v27 = vadd.f32 %v1279_v17, %v1208_v10  ;;  %v4378_v25 = vld [vmem:[#allocation2 + $0x192] sm:$0xff] }
 0x146   :  { %v2296_v37 = vpop.f32.mrf.mxu1  ;;  %v2852_v45 = vpop.eup %2851  ;;  %v1812_v35 = vadd.f32 %v1421_v48, %v1350_v54  ;;  %2857 = vtanh.f32 %v368_v6  ;;  %v769_v34 = vmul.f32 %v3945_v11, %v4170_v2  ;;  %v1067_v56 = vmul.f32 %v3997_v55, %v4214_v14 }
 0x147   :  { %2488 = vst.msk [vmem:[%s5568_s4] sm:$0xff] %vm552_vm2, %v2296_v37  ;;  %v464_v21 = vpop.f32.mrf.mxu2  ;;  %v2854_v57 = vpop.eup %2853  ;;  %v1248_v33 = vmul.f32 %v3965_v15, %v4289_v46  ;;  %2642 = vmatmul.msk.f32.gmra.mxu1 %vm552_vm2, %v2852_v45  ;;  %v1972_v16 = vadd.f32 %v1908_v7, %v1460_v8  ;;  %v902_v6 = vmul.f32 %v3936_v58, %v4159_v12  ;;  %v4399_v7 = vld [vmem:[#allocation2 + $0x9a] sm:$0xff] }
 0x148   :  { %677 = vst.msk [vmem:[#allocation2 + $0x1b8] sm:$0xff] %vm552_vm2, %v2854_v57  ;;  %v1684_v2 = vadd.f32 %v1620_v24, %v1556_v52  ;;  %v1876_v17 = vadd.f32 %v1812_v35, %v1748_v27  ;;  %v1106_v14 = vmul.f32 %v3988_v40, %v4275_v44  ;;  %v1177_v3 = vmul.f32 %v3954_v19, %v4263_v18  ;;  %v371_v48 = vpop.f32.mrf.mxu0  ;;  %v4401_v24 = vld [vmem:[#allocation2 + $0x198] sm:$0xff] }
 0x149   :  { %v4391_v43 = vmul.f32 %v3997_v55, %v4235_v39  ;;  %2859 = vtanh.f32 %v1972_v16  ;;  %v1319_v12 = vmul.f32 %v4004_v42, %v4383_v23  ;;  %v1390_v60 = vmul.f32 %v4011_v0, %v4371_v49  ;;  %v4403_v45 = vld [vmem:[#allocation2 + $0x199] sm:$0xff] }
 0x14a   :  { %v1492_v22 = vmul.f32 %v4077_v29, %v4378_v25  ;;  %v1940_v10 = vadd.f32 %v1876_v17, %v1684_v2  ;;  %v1525_v8 = vadd.f32 %v902_v6, %v769_v34  ;;  %v1589_v54 = vadd.f32 %v1106_v14, %v1035_v9 }
 0x14b   :  { %v2856_v37 = vpop.eup %2855  ;;  %v1717_v52 = vadd.f32 %v1248_v33, %v1177_v3  ;;  %v1781_v39 = vadd.f32 %v1390_v60, %v1319_v12  ;;  %2861 = vtanh.f32 %v464_v21  ;;  %v934_v27 = vmul.f32 %v3936_v58, %v4189_v59 }
 0x14c   :  { %v2858_v35 = vpop.eup %2857  ;;  %v1280_v57 = vmul.f32 %v3965_v15, %v4318_v50  ;;  %2674 = vmatmul.msk.f32.gmra.mxu3 %vm552_vm2, %v2856_v37  ;;  %v1249_v9 = vmul.f32 %v3965_v15, %v4339_v4  ;;  %v2004_v34 = vadd.f32 %v1940_v10, %v1492_v22  ;;  %v1138_v21 = vmul.f32 %v3988_v40, %v4291_v38  ;;  %v4429_v10 = vld [vmem:[#allocation2 + $0xa1] sm:$0xff] }
 0x14d   :  { %646 = vst.msk [vmem:[#allocation2 + $0xc0] sm:$0xff] %vm552_vm2, %v2858_v35  ;;  %v1653_v16 = vadd.f32 %v1589_v54, %v1525_v8  ;;  %v1845_v6 = vadd.f32 %v1781_v39, %v1717_v52  ;;  %v801_v59 = vmul.f32 %v3945_v11, %v4187_v36  ;;  %v1209_v2 = vmul.f32 %v3954_v19, %v4293_v5  ;;  %v4432_v54 = vld [vmem:[#allocation2 + $0x19a] sm:$0xff] }
 0x14e   :  { %2863 = vtanh.f32 %v2004_v34  ;;  %v1461_v17 = vmul.f32 %v4077_v29, %v4399_v7  ;;  %v1351_v14 = vmul.f32 %v4004_v42, %v4401_v24  ;;  %v1422_v3 = vmul.f32 %v4011_v0, %v4403_v45 }
 0x14f   :  { %v2299_v33 = vpop.f32.mrf.mxu1  ;;  %v2860_v12 = vpop.eup %2859  ;;  %v1909_v36 = vadd.f32 %v1845_v6, %v1653_v16  ;;  %v1557_v60 = vadd.f32 %v934_v27, %v801_v59  ;;  %v1621_v22 = vadd.f32 %v1138_v21, %v1067_v56  ;;  %2865 = vtanh.f32 %v371_v48  ;;  %v4440_v27 = vld [vmem:[#allocation2 + $0xa0] sm:$0xff] }
 0x150   :  { %2489 = vst.msk [vmem:[%s5568_s4 + $0x8] sm:$0xff] %vm552_vm2, %v2299_v33  ;;  %2643 = vmatmul.msk.f32.gmra.mxu1 %vm552_vm2, %v2860_v12  ;;  %v1749_v37 = vadd.f32 %v1280_v57, %v1209_v2  ;;  %v1813_v52 = vadd.f32 %v1422_v3, %v1351_v14  ;;  %v770_v39 = vmul.f32 %v3945_v11, %v4222_v1  ;;  %v467_v34 = vpop.f32.mrf.mxu2  ;;  %v4458_v3 = vld [vmem:[#allocation2 + $0xa2] sm:$0xff] }
 0x151   :  { %v903_v35 = vmul.f32 %v3936_v58, %v4211_v63  ;;  %v2862_v33 = vpop.eup %2861  ;;  %v1068_v56 = vmul.f32 %v3997_v55, %v4270_v32  ;;  %v1973_v48 = vadd.f32 %v1909_v36, %v1461_v17  ;;  %v1107_v21 = vmul.f32 %v3988_v40, %v4326_v41 }
 0x152   :  { %v1178_v57 = vmul.f32 %v3954_v19, %v4315_v51  ;;  %678 = vst.msk [vmem:[#allocation2 + $0x1c0] sm:$0xff] %vm552_vm2, %v2862_v33  ;;  %v1685_v63 = vadd.f32 %v1621_v22, %v1557_v60  ;;  %v1877_v1 = vadd.f32 %v1813_v52, %v1749_v37  ;;  %v1320_v32 = vmul.f32 %v4004_v42, %v4440_v27  ;;  %v4460_v60 = vld [vmem:[#allocation2 + $0x1a0] sm:$0xff] }
 0x153   :  { %v2392_v8 = vpop.f32.mrf.mxu3  ;;  %v1391_v16 = vmul.f32 %v4011_v0, %v4429_v10  ;;  %2867 = vtanh.f32 %v1973_v48  ;;  %v1493_v6 = vmul.f32 %v4077_v29, %v4432_v54  ;;  %v1526_v59 = vadd.f32 %v903_v35, %v770_v39  ;;  %v4462_v22 = vld [vmem:[#allocation2 + $0x1a1] sm:$0xff] }
 0x154   :  { %2520 = vst.msk [vmem:[%s5568_s4 + $0x100] sm:$0xff] %vm552_vm2, %v2392_v8  ;;  %v1590_v2 = vadd.f32 %v1107_v21, %v4391_v43  ;;  %v2864_v17 = vpop.eup %2863  ;;  %v1941_v14 = vadd.f32 %v1877_v1, %v1685_v63  ;;  %v1718_v12 = vadd.f32 %v1249_v9, %v1178_v57  ;;  %2869 = vtanh.f32 %v467_v34  ;;  %v374_v8 = vpop.f32.mrf.mxu0 }
 0x155   :  { %v1782_v36 = vadd.f32 %v1391_v16, %v1320_v32  ;;  %v2866_v37 = vpop.eup %2865  ;;  %v1281_v52 = vmul.f32 %v3965_v15, %v4378_v25  ;;  %2675 = vmatmul.msk.f32.gmra.mxu3 %vm552_vm2, %v2864_v17  ;;  %v802_v43 = vmul.f32 %v3945_v11, %v4237_v26  ;;  %v935_v9 = vmul.f32 %v3936_v58, %v4239_v20  ;;  %v4489_v16 = vld [vmem:[#allocation2 + $0xa9] sm:$0xff] }
 0x156   :  { %v1654_v39 = vadd.f32 %v1590_v2, %v1526_v59  ;;  %v2005_v35 = vadd.f32 %v1941_v14, %v1493_v6  ;;  %647 = vst.msk [vmem:[#allocation2 + $0xc8] sm:$0xff] %vm552_vm2, %v2866_v37  ;;  %v1139_v33 = vmul.f32 %v3988_v40, %v4341_v30  ;;  %v1210_v48 = vmul.f32 %v3954_v19, %v4343_v47  ;;  %v4485_v19 = vld [vmem:[%s5566_s2] ss:$0 sm:$0xff] }
 0x157   :  { %v1846_v34 = vadd.f32 %v1782_v36, %v1718_v12  ;;  %v1462_v15 = vmul.f32 %v4077_v29, %v4458_v3  ;;  %v1352_v21 = vmul.f32 %v4004_v42, %v4460_v60  ;;  %v1423_v11 = vmul.f32 %v4011_v0, %v4462_v22  ;;  %v4501_v12 = vld [vmem:[#allocation2 + $0x1a2] sm:$0xff] }
 0x158   :  { %2871 = vtanh.f32 %v2005_v35  ;;  %v1558_v26 = vadd.f32 %v935_v9, %v802_v43  ;;  %v1622_v20 = vadd.f32 %v1139_v33, %v1068_v56  ;;  %v1750_v63 = vadd.f32 %v1281_v52, %v1210_v48  ;;  %v4496_v56 = vld [vmem:[%s5566_s2 + $0x5] ss:$0 sm:$0xff]  ;;  %v470_v36 = vpop.f32.mrf.mxu2  ;;  %v4518_v9 = vld [vmem:[%s5566_s2 + $0x4] ss:$0 sm:$0xff] }
 0x159   :  { %v1910_v58 = vadd.f32 %v1846_v34, %v1654_v39  ;;  %v2868_v57 = vpop.eup %2867  ;;  %v1814_v1 = vadd.f32 %v1423_v11, %v1352_v21  ;;  %2873 = vtanh.f32 %v374_v8  ;;  %v771_v32 = vmul.f32 %v4485_v19, %v4275_v44  ;;  %v4506_v44 = vld [vmem:[%s5566_s2 + $0x1] ss:$0 sm:$0xff]  ;;  %v4511_v39 = vld [vmem:[#allocation2 + $0xa8] sm:$0xff] }
 0x15a   :  { %v2870_v59 = vpop.eup %2869  ;;  %v1037_v2 = vmul.f32 %v3997_v55, %v4289_v46  ;;  %v1250_v17 = vmul.f32 %v4496_v56, %v4399_v7  ;;  %2644 = vmatmul.msk.f32.gmra.mxu1 %vm552_vm2, %v2868_v57  ;;  %v904_v46 = vmul.f32 %v4506_v44, %v4263_v18  ;;  %v1686_v37 = vadd.f32 %v1622_v20, %v1558_v26  ;;  %v4540_v11 = vld [vmem:[#allocation2 + $0x1a8] sm:$0xff] }
 0x15b   :  { %v1974_v14 = vadd.f32 %v1910_v58, %v1462_v15  ;;  %679 = vst.msk [vmem:[#allocation2 + $0x1c8] sm:$0xff] %vm552_vm2, %v2870_v59  ;;  %v1878_v52 = vadd.f32 %v1814_v1, %v1750_v63  ;;  %v1108_v43 = vmul.f32 %v3988_v40, %v4383_v23  ;;  %v1179_v35 = vmul.f32 %v4518_v9, %v4371_v49  ;;  %v4542_v58 = vld [vmem:[#allocation2 + $0x1a9] sm:$0xff] }
 0x15c   :  { %v2395_v8 = vpop.f32.mrf.mxu3  ;;  %v1069_v18 = vmul.f32 %v3997_v55, %v4318_v50  ;;  %v1321_v34 = vmul.f32 %v4004_v42, %v4511_v39  ;;  %v1392_v33 = vmul.f32 %v4011_v0, %v4489_v16  ;;  %v1494_v40 = vmul.f32 %v4077_v29, %v4501_v12  ;;  %v4538_v42 = vld [vmem:[#allocation2 + $0xaa] sm:$0xff]  ;;  %v377_v20 = vpop.f32.mrf.mxu0 }
 0x15d   :  { %v2302_v6 = vpop.f32.mrf.mxu1  ;;  %2875 = vtanh.f32 %v1974_v14  ;;  %v1942_v48 = vadd.f32 %v1878_v52, %v1686_v37  ;;  %v1527_v15 = vadd.f32 %v904_v46, %v771_v32  ;;  %v1591_v21 = vadd.f32 %v1108_v43, %v1037_v2  ;;  %2521 = vst.msk [vmem:[%s5568_s4 + $0x108] sm:$0xff] %vm552_vm2, %v2395_v8  ;;  %v4575_v37 = vld [vmem:[%s5566_s2 + $0x7] ss:$0 sm:$0xff] }
 0x15e   :  { %2490 = vst.msk [vmem:[%s5568_s4 + $0x10] sm:$0xff] %vm552_vm2, %v2302_v6  ;;  %v2872_v55 = vpop.eup %2871  ;;  %v1719_v0 = vadd.f32 %v1250_v17, %v1179_v35  ;;  %v1783_v50 = vadd.f32 %v1392_v33, %v1321_v34  ;;  %2877 = vtanh.f32 %v470_v36  ;;  %v936_v26 = vmul.f32 %v4506_v44, %v4293_v5  ;;  %v4554_v6 = vld [vmem:[%s5566_s2 + $0x3] ss:$0 sm:$0xff]  ;;  %v4568_v36 = vld [vmem:[%s5566_s2 + $0x6] ss:$0 sm:$0xff]  ;;  %v4579_v33 = vld [vmem:[#allocation2 + $0xb1] sm:$0xff] }
 0x15f   :  { %v2874_v57 = vpop.eup %2873  ;;  %v1282_v63 = vmul.f32 %v4496_v56, %v4432_v54  ;;  %2676 = vmatmul.msk.f32.gmra.mxu3 %vm552_vm2, %v2872_v55  ;;  %v1251_v1 = vmul.f32 %v4496_v56, %v4458_v3  ;;  %v2006_v32 = vadd.f32 %v1942_v48, %v1494_v40  ;;  %v1140_v59 = vmul.f32 %v4554_v6, %v4401_v24  ;;  %v4582_v40 = vld [vmem:[#allocation2 + $0x1aa] sm:$0xff] }
 0x160   :  { %648 = vst.msk [vmem:[#allocation2 + $0xd0] sm:$0xff] %vm552_vm2, %v2874_v57  ;;  %v1655_v5 = vadd.f32 %v1591_v21, %v1527_v15  ;;  %v1847_v2 = vadd.f32 %v1783_v50, %v1719_v0  ;;  %v803_v17 = vmul.f32 %v4485_v19, %v4291_v38  ;;  %v1211_v14 = vmul.f32 %v4518_v9, %v4403_v45  ;;  %v4595_v57 = vld [vmem:[#allocation2 + $0xb0] sm:$0xff] }
 0x161   :  { %2879 = vtanh.f32 %v2006_v32  ;;  %v1463_v46 = vmul.f32 %v4077_v29, %v4538_v42  ;;  %v1353_v8 = vmul.f32 %v4568_v36, %v4540_v11  ;;  %v1424_v38 = vmul.f32 %v4575_v37, %v4542_v58 }
 0x162   :  { %v1911_v43 = vadd.f32 %v1847_v2, %v1655_v5  ;;  %v1559_v35 = vadd.f32 %v936_v26, %v803_v17  ;;  %v1623_v34 = vadd.f32 %v1140_v59, %v1069_v18  ;;  %2881 = vtanh.f32 %v377_v20  ;;  %v4591_v18 = vld [vmem:[%s5566_s2 + $0x2] ss:$0 sm:$0xff] }
 0x163   :  { %v2876_v52 = vpop.eup %2875  ;;  %v1751_v48 = vadd.f32 %v1282_v63, %v1211_v14  ;;  %v1815_v15 = vadd.f32 %v1424_v38, %v1353_v8  ;;  %v772_v21 = vmul.f32 %v4485_v19, %v4326_v41  ;;  %v905_v55 = vmul.f32 %v4506_v44, %v4315_v51  ;;  %v473_v51 = vpop.f32.mrf.mxu2 }
 0x164   :  { %2645 = vmatmul.msk.f32.gmra.mxu1 %vm552_vm2, %v2876_v52  ;;  %v2878_v50 = vpop.eup %2877  ;;  %v1038_v26 = vmul.f32 %v4591_v18, %v4339_v4  ;;  %v1975_v20 = vadd.f32 %v1911_v43, %v1463_v46  ;;  %v1109_v63 = vmul.f32 %v4554_v6, %v4440_v27  ;;  %v1180_v41 = vmul.f32 %v4518_v9, %v4429_v10 }
 0x165   :  { %v2398_v32 = vpop.f32.mrf.mxu3  ;;  %680 = vst.msk [vmem:[#allocation2 + $0x1d0] sm:$0xff] %vm552_vm2, %v2878_v50  ;;  %v1687_v59 = vadd.f32 %v1623_v34, %v1559_v35  ;;  %v1879_v4 = vadd.f32 %v1815_v15, %v1751_v48  ;;  %v1322_v5 = vmul.f32 %v4568_v36, %v4595_v57  ;;  %v1393_v2 = vmul.f32 %v4575_v37, %v4579_v33  ;;  %v4616_v35 = vld [vmem:[#allocation2 + $0x1b0] sm:$0xff] }
 0x166   :  { %v2305_v0 = vpop.f32.mrf.mxu1  ;;  %2883 = vtanh.f32 %v1975_v20  ;;  %v1495_v17 = vmul.f32 %v4077_v29, %v4582_v40  ;;  %v1528_v14 = vadd.f32 %v905_v55, %v772_v21  ;;  %v1592_v46 = vadd.f32 %v1109_v63, %v1038_v26  ;;  %2522 = vst.msk [vmem:[%s5568_s4 + $0x110] sm:$0xff] %vm552_vm2, %v2398_v32  ;;  %v4618_v34 = vld [vmem:[#allocation2 + $0x1b1] sm:$0xff]  ;;  %v4645_v32 = vld [vmem:[%s5566_s2 + $0x8] ss:$0 sm:$0xff] }
 0x167   :  { %2491 = vst.msk [vmem:[%s5568_s4 + $0x18] sm:$0xff] %vm552_vm2, %v2305_v0  ;;  %v2880_v8 = vpop.eup %2879  ;;  %v1943_v38 = vadd.f32 %v1879_v4, %v1687_v59  ;;  %v1720_v52 = vadd.f32 %v1251_v1, %v1180_v41  ;;  %v1784_v43 = vadd.f32 %v1393_v2, %v1322_v5  ;;  %2885 = vtanh.f32 %v473_v51  ;;  %v4625_v21 = vld [vmem:[#allocation2 + $0xb2] sm:$0xff]  ;;  %v380_v0 = vpop.f32.mrf.mxu0 }
 0x168   :  { %v2882_v48 = vpop.eup %2881  ;;  %v1070_v29 = vmul.f32 %v4591_v18, %v4378_v25  ;;  %v1283_v15 = vmul.f32 %v4496_v56, %v4501_v12  ;;  %2677 = vmatmul.msk.f32.gmra.mxu3 %vm552_vm2, %v2880_v8  ;;  %v1656_v55 = vadd.f32 %v1592_v46, %v1528_v14  ;;  %v937_v1 = vmul.f32 %v4506_v44, %v4343_v47  ;;  %v4649_v14 = vld [vmem:[#allocation2 + $0xb9] sm:$0xff] }
 0x169   :  { %v2007_v50 = vadd.f32 %v1943_v38, %v1495_v17  ;;  %649 = vst.msk [vmem:[#allocation2 + $0xd8] sm:$0xff] %vm552_vm2, %v2882_v48  ;;  %v1848_v26 = vadd.f32 %v1784_v43, %v1720_v52  ;;  %v1141_v20 = vmul.f32 %v4554_v6, %v4460_v60  ;;  %v1212_v25 = vmul.f32 %v4518_v9, %v4462_v22  ;;  %v4654_v52 = vld [vmem:[#allocation2 + $0x1b2] sm:$0xff] }
 0x16a   :  { %v1039_v63 = vmul.f32 %v4591_v18, %v4399_v7  ;;  %v804_v41 = vmul.f32 %v4485_v19, %v4341_v30  ;;  %v1354_v47 = vmul.f32 %v4568_v36, %v4616_v35  ;;  %v1425_v51 = vmul.f32 %v4575_v37, %v4618_v34 }
 0x16b   :  { %2887 = vtanh.f32 %v2007_v50  ;;  %v1464_v59 = vmul.f32 %v4645_v32, %v4625_v21  ;;  %v1912_v4 = vadd.f32 %v1848_v26, %v1656_v55  ;;  %v1624_v7 = vadd.f32 %v1141_v20, %v1070_v29  ;;  %v476_v26 = vpop.f32.mrf.mxu2 }
 0x16c   :  { %v2884_v5 = vpop.eup %2883  ;;  %v1560_v2 = vadd.f32 %v937_v1, %v804_v41  ;;  %v1752_v30 = vadd.f32 %v1283_v15, %v1212_v25  ;;  %v1816_v17 = vadd.f32 %v1425_v51, %v1354_v47  ;;  %2889 = vtanh.f32 %v380_v0  ;;  %v4661_v1 = vld [vmem:[#allocation2 + $0xb8] sm:$0xff] }
 0x16d   :  { %v2886_v46 = vpop.eup %2885  ;;  %v1252_v8 = vmul.f32 %v4496_v56, %v4538_v42  ;;  %2646 = vmatmul.msk.f32.gmra.mxu1 %vm552_vm2, %v2884_v5  ;;  %v1976_v38 = vadd.f32 %v1912_v4, %v1464_v59  ;;  %v773_v43 = vmul.f32 %v4485_v19, %v4383_v23  ;;  %v906_v48 = vmul.f32 %v4506_v44, %v4371_v49  ;;  %v4681_v5 = vld [vmem:[#allocation2 + $0x1b8] sm:$0xff] }
 0x16e   :  { %681 = vst.msk [vmem:[#allocation2 + $0x1d8] sm:$0xff] %vm552_vm2, %v2886_v46  ;;  %v1688_v15 = vadd.f32 %v1624_v7, %v1560_v2  ;;  %v1880_v55 = vadd.f32 %v1816_v17, %v1752_v30  ;;  %v1110_v0 = vmul.f32 %v4554_v6, %v4511_v39  ;;  %v1181_v50 = vmul.f32 %v4518_v9, %v4489_v16  ;;  %v4683_v2 = vld [vmem:[#allocation2 + $0x1b9] sm:$0xff] }
 0x16f   :  { %v2308_v29 = vpop.f32.mrf.mxu1  ;;  %2891 = vtanh.f32 %v1976_v38  ;;  %v1323_v23 = vmul.f32 %v4568_v36, %v4661_v1  ;;  %v1394_v49 = vmul.f32 %v4575_v37, %v4649_v14  ;;  %v1496_v25 = vmul.f32 %v4645_v32, %v4654_v52  ;;  %v4688_v46 = vld [vmem:[#allocation2 + $0xba] sm:$0xff] }
 0x170   :  { %2492 = vst.msk [vmem:[%s5568_s4 + $0x20] sm:$0xff] %vm552_vm2, %v2308_v29  ;;  %v1944_v41 = vadd.f32 %v1880_v55, %v1688_v15  ;;  %v1593_v47 = vadd.f32 %v1110_v0, %v1039_v63  ;;  %v1529_v59 = vadd.f32 %v906_v48, %v773_v43  ;;  %v1721_v4 = vadd.f32 %v1252_v8, %v1181_v50  ;;  %v383_v43 = vpop.f32.mrf.mxu0 }
 0x171   :  { %v2888_v51 = vpop.eup %2887  ;;  %v1785_v7 = vadd.f32 %v1394_v49, %v1323_v23  ;;  %2893 = vtanh.f32 %v476_v26  ;;  %v1284_v17 = vmul.f32 %v4496_v56, %v4582_v40  ;;  %v938_v38 = vmul.f32 %v4506_v44, %v4403_v45 }
 0x172   :  { %v2890_v30 = vpop.eup %2889  ;;  %2678 = vmatmul.msk.f32.gmra.mxu3 %vm552_vm2, %v2888_v51  ;;  %v2008_v63 = vadd.f32 %v1944_v41, %v1496_v25  ;;  %v1142_v8 = vmul.f32 %v4554_v6, %v4540_v11  ;;  %v1071_v48 = vmul.f32 %v4591_v18, %v4432_v54  ;;  %v1657_v29 = vadd.f32 %v1593_v47, %v1529_v59  ;;  %v4708_v47 = vld [vmem:[#allocation2 + $0xc1] sm:$0xff] }
 0x173   :  { %v2401_v20 = vpop.f32.mrf.mxu3  ;;  %650 = vst.msk [vmem:[#allocation2 + $0xe0] sm:$0xff] %vm552_vm2, %v2890_v30  ;;  %v1849_v15 = vadd.f32 %v1785_v7, %v1721_v4  ;;  %v1213_v55 = vmul.f32 %v4518_v9, %v4542_v58  ;;  %v805_v0 = vmul.f32 %v4485_v19, %v4401_v24  ;;  %v1355_v45 = vmul.f32 %v4568_v36, %v4681_v5  ;;  %v4712_v4 = vld [vmem:[#allocation2 + $0x1ba] sm:$0xff] }
 0x174   :  { %2523 = vst.msk [vmem:[%s5568_s4 + $0x118] sm:$0xff] %vm552_vm2, %v2401_v20  ;;  %2895 = vtanh.f32 %v2008_v63  ;;  %v1426_v50 = vmul.f32 %v4575_v37, %v4683_v2  ;;  %v1465_v54 = vmul.f32 %v4645_v32, %v4688_v46  ;;  %v1625_v49 = vadd.f32 %v1142_v8, %v1071_v48  ;;  %v4719_v8 = vld [vmem:[#allocation2 + $0xc0] sm:$0xff] }
 0x175   :  { %v2892_v26 = vpop.eup %2891  ;;  %v1913_v23 = vadd.f32 %v1849_v15, %v1657_v29  ;;  %2897 = vtanh.f32 %v383_v43  ;;  %v1561_v20 = vadd.f32 %v938_v38, %v805_v0  ;;  %v1753_v25 = vadd.f32 %v1284_v17, %v1213_v55  ;;  %v479_v55 = vpop.f32.mrf.mxu2 }
 0x176   :  { %2647 = vmatmul.msk.f32.gmra.mxu1 %vm552_vm2, %v2892_v26  ;;  %v1817_v41 = vadd.f32 %v1426_v50, %v1355_v45  ;;  %v1253_v51 = vmul.f32 %v4496_v56, %v4625_v21  ;;  %v774_v7 = vmul.f32 %v4485_v19, %v4440_v27  ;;  %v907_v30 = vmul.f32 %v4506_v44, %v4429_v10 }
 0x177   :  { %v2894_v24 = vpop.eup %2893  ;;  %v1977_v59 = vadd.f32 %v1913_v23, %v1465_v54  ;;  %v1689_v17 = vadd.f32 %v1625_v49, %v1561_v20  ;;  %v1111_v43 = vmul.f32 %v4554_v6, %v4595_v57  ;;  %v1182_v48 = vmul.f32 %v4518_v9, %v4579_v33 }
 0x178   :  { %v2311_v63 = vpop.f32.mrf.mxu1  ;;  %682 = vst.msk [vmem:[#allocation2 + $0x1e0] sm:$0xff] %vm552_vm2, %v2894_v24  ;;  %v1881_v38 = vadd.f32 %v1817_v41, %v1753_v25  ;;  %v1040_v27 = vmul.f32 %v4591_v18, %v4458_v3  ;;  %v1324_v10 = vmul.f32 %v4568_v36, %v4719_v8  ;;  %v1395_v15 = vmul.f32 %v4575_v37, %v4708_v47  ;;  %v4743_v25 = vld [vmem:[#allocation2 + $0xc2] sm:$0xff] }
 0x179   :  { %2899 = vtanh.f32 %v1977_v59  ;;  %2493 = vst.msk [vmem:[%s5568_s4 + $0x28] sm:$0xff] %vm552_vm2, %v2311_v63  ;;  %v1497_v45 = vmul.f32 %v4645_v32, %v4712_v4  ;;  %v1530_v26 = vadd.f32 %v907_v30, %v774_v7  ;;  %v1722_v23 = vadd.f32 %v1253_v51, %v1182_v48  ;;  %v4745_v59 = vld [vmem:[#allocation2 + $0x1c0] sm:$0xff] }
 0x17a   :  { %v2896_v0 = vpop.eup %2895  ;;  %v1945_v50 = vadd.f32 %v1881_v38, %v1689_v17  ;;  %v1594_v54 = vadd.f32 %v1111_v43, %v1040_v27  ;;  %v1786_v49 = vadd.f32 %v1395_v15, %v1324_v10  ;;  %2901 = vtanh.f32 %v479_v55  ;;  %v4747_v63 = vld [vmem:[#allocation2 + $0x1c1] sm:$0xff]  ;;  %v386_v27 = vpop.f32.mrf.mxu0 }
 0x17b   :  { %v2404_v29 = vpop.f32.mrf.mxu3  ;;  %v2898_v3 = vpop.eup %2897  ;;  %2679 = vmatmul.msk.f32.gmra.mxu3 %vm552_vm2, %v2896_v0  ;;  %v1285_v17 = vmul.f32 %v4496_v56, %v4654_v52  ;;  %v939_v51 = vmul.f32 %v4506_v44, %v4462_v22  ;;  %v1143_v7 = vmul.f32 %v4554_v6, %v4616_v35  ;;  %v1072_v38 = vmul.f32 %v4591_v18, %v4501_v12 }
 0x17c   :  { %2524 = vst.msk [vmem:[%s5568_s4 + $0x120] sm:$0xff] %vm552_vm2, %v2404_v29  ;;  %v2009_v20 = vadd.f32 %v1945_v50, %v1497_v45  ;;  %v1658_v41 = vadd.f32 %v1594_v54, %v1530_v26  ;;  %v1850_v24 = vadd.f32 %v1786_v49, %v1722_v23  ;;  %v1466_v43 = vmul.f32 %v4645_v32, %v4743_v25  ;;  %v4777_v23 = vld [vmem:[#allocation2 + $0xc9] sm:$0xff] }
 0x17d   :  { %651 = vst.msk [vmem:[#allocation2 + $0xe8] sm:$0xff] %vm552_vm2, %v2898_v3  ;;  %v1214_v29 = vmul.f32 %v4518_v9, %v4618_v34  ;;  %v806_v22 = vmul.f32 %v4485_v19, %v4460_v60  ;;  %v1356_v10 = vmul.f32 %v4568_v36, %v4745_v59  ;;  %v1427_v15 = vmul.f32 %v4575_v37, %v4747_v63  ;;  %v4773_v60 = vld [vmem:[#allocation2 + $0x1c2] sm:$0xff] }
 0x17e   :  { %2903 = vtanh.f32 %v2009_v20  ;;  %v1914_v48 = vadd.f32 %v1850_v24, %v1658_v41  ;;  %v1626_v55 = vadd.f32 %v1143_v7, %v1072_v38  ;;  %v775_v54 = vmul.f32 %v4485_v19, %v4511_v39  ;;  %v4786_v7 = vld [vmem:[#allocation2 + $0xc8] sm:$0xff]  ;;  %v482_v38 = vpop.f32.mrf.mxu2 }
 0x17f   :  { %v2900_v30 = vpop.eup %2899  ;;  %v1562_v50 = vadd.f32 %v939_v51, %v806_v22  ;;  %v1754_v3 = vadd.f32 %v1285_v17, %v1214_v29  ;;  %v1818_v26 = vadd.f32 %v1427_v15, %v1356_v10  ;;  %2905 = vtanh.f32 %v386_v27 }
 0x180   :  { %2648 = vmatmul.msk.f32.gmra.mxu1 %vm552_vm2, %v2900_v30  ;;  %v1978_v12 = vadd.f32 %v1914_v48, %v1466_v43  ;;  %v2902_v45 = vpop.eup %2901  ;;  %v1254_v20 = vmul.f32 %v4496_v56, %v4688_v46  ;;  %v908_v17 = vmul.f32 %v4506_v44, %v4489_v16  ;;  %v1041_v51 = vmul.f32 %v4591_v18, %v4538_v42 }
 0x181   :  { %683 = vst.msk [vmem:[#allocation2 + $0x1e8] sm:$0xff] %vm552_vm2, %v2902_v45  ;;  %v1690_v41 = vadd.f32 %v1626_v55, %v1562_v50  ;;  %v1882_v24 = vadd.f32 %v1818_v26, %v1754_v3  ;;  %v1112_v39 = vmul.f32 %v4554_v6, %v4661_v1  ;;  %v1183_v30 = vmul.f32 %v4518_v9, %v4649_v14  ;;  %v4807_v3 = vld [vmem:[#allocation2 + $0x1c8] sm:$0xff] }
 0x182   :  { %2907 = vtanh.f32 %v1978_v12  ;;  %v1498_v43 = vmul.f32 %v4645_v32, %v4773_v60  ;;  %v1325_v16 = vmul.f32 %v4568_v36, %v4786_v7  ;;  %v1396_v42 = vmul.f32 %v4575_v37, %v4777_v23  ;;  %v4798_v12 = vld [vmem:[#allocation2 + $0xca] sm:$0xff] }
 0x183   :  { %v1946_v48 = vadd.f32 %v1882_v24, %v1690_v41  ;;  %v1531_v29 = vadd.f32 %v908_v17, %v775_v54  ;;  %v1595_v27 = vadd.f32 %v1112_v39, %v1041_v51  ;;  %v1723_v55 = vadd.f32 %v1254_v20, %v1183_v30  ;;  %v4809_v26 = vld [vmem:[#allocation2 + $0x1c9] sm:$0xff] }
 0x184   :  { %v2904_v49 = vpop.eup %2903  ;;  %v2407_v22 = vpop.f32.mrf.mxu3  ;;  %2909 = vtanh.f32 %v482_v38  ;;  %v1286_v50 = vmul.f32 %v4496_v56, %v4712_v4  ;;  %v940_v20 = vmul.f32 %v4506_v44, %v4542_v58  ;;  %v1073_v41 = vmul.f32 %v4591_v18, %v4582_v40 }
 0x185   :  { %v2314_v0 = vpop.f32.mrf.mxu1  ;;  %2680 = vmatmul.msk.f32.gmra.mxu3 %vm552_vm2, %v2904_v49  ;;  %v2906_v10 = vpop.eup %2905  ;;  %v2010_v15 = vadd.f32 %v1946_v48, %v1498_v43  ;;  %2525 = vst.msk [vmem:[%s5568_s4 + $0x128] sm:$0xff] %vm552_vm2, %v2407_v22  ;;  %v1659_v54 = vadd.f32 %v1595_v27, %v1531_v29  ;;  %v1467_v24 = vmul.f32 %v4645_v32, %v4798_v12 }
 0x186   :  { %2494 = vst.msk [vmem:[%s5568_s4 + $0x30] sm:$0xff] %vm552_vm2, %v2314_v0  ;;  %v1787_v0 = vadd.f32 %v1396_v42, %v1325_v16  ;;  %v1144_v17 = vmul.f32 %v4554_v6, %v4681_v5  ;;  %v1215_v51 = vmul.f32 %v4518_v9, %v4683_v2  ;;  %v807_v38 = vmul.f32 %v4485_v19, %v4540_v11  ;;  %v389_v43 = vpop.f32.mrf.mxu0  ;;  %v4833_v11 = vld [vmem:[#allocation2 + $0x1ca] sm:$0xff] }
 0x187   :  { %652 = vst.msk [vmem:[#allocation2 + $0xf0] sm:$0xff] %vm552_vm2, %v2906_v10  ;;  %2911 = vtanh.f32 %v2010_v15  ;;  %v1357_v58 = vmul.f32 %v4568_v36, %v4807_v3  ;;  %v1428_v40 = vmul.f32 %v4575_v37, %v4809_v26 }
 0x188   :  { %v2908_v45 = vpop.eup %2907  ;;  %v1851_v49 = vadd.f32 %v1787_v0, %v1723_v55  ;;  %v1627_v48 = vadd.f32 %v1144_v17, %v1073_v41  ;;  %v1563_v29 = vadd.f32 %v940_v20, %v807_v38  ;;  %v1755_v27 = vadd.f32 %v1286_v50, %v1215_v51  ;;  %v4844_v20 = vld [vmem:[#allocation2 + $0xd0] sm:$0xff] }
 0x189   :  { %2649 = vmatmul.msk.f32.gmra.mxu1 %vm552_vm2, %v2908_v45  ;;  %v1819_v22 = vadd.f32 %v1428_v40, %v1357_v58  ;;  %2913 = vtanh.f32 %v389_v43  ;;  %v1499_v0 = vmul.f32 %v4645_v32, %v4833_v11  ;;  %v1113_v50 = vmul.f32 %v4554_v6, %v4719_v8  ;;  %v485_v58 = vpop.f32.mrf.mxu2 }
 0x18a   :  { %v1915_v30 = vadd.f32 %v1851_v49, %v1659_v54  ;;  %v2910_v16 = vpop.eup %2909  ;;  %v1691_v15 = vadd.f32 %v1627_v48, %v1563_v29  ;;  %v4838_v54 = vld [vmem:[#allocation2 + $0xd1] sm:$0xff]  ;;  %v1042_v49 = vmul.f32 %v4591_v18, %v4625_v21  ;;  %v1255_v41 = vmul.f32 %v4496_v56, %v4743_v25 }
 0x18b   :  { %684 = vst.msk [vmem:[#allocation2 + $0x1f0] sm:$0xff] %vm552_vm2, %v2910_v16  ;;  %v1883_v55 = vadd.f32 %v1819_v22, %v1755_v27  ;;  %v909_v51 = vmul.f32 %v4506_v44, %v4579_v33  ;;  %v1397_v21 = vmul.f32 %v4575_v37, %v4838_v54  ;;  %v778_v43 = vmul.f32 %v4485_v19, %v4719_v8  ;;  %v2979_v27 = vld [vmem:[#allocation2 + $0x100] sm:$0xff]  ;;  %v4871_v8 = vld [vmem:[#allocation2 + $0x1d0] sm:$0xff] }
 0x18c   :  { %v1979_v42 = vadd.f32 %v1915_v30, %v1467_v24  ;;  %v776_v24 = vmul.f32 %v4485_v19, %v4595_v57  ;;  %v1326_v30 = vmul.f32 %v4568_v36, %v4844_v20  ;;  %v1596_v57 = vadd.f32 %v1113_v50, %v1042_v49 }
 0x18d   :  { %v2912_v10 = vpop.eup %2911  ;;  %v1947_v45 = vadd.f32 %v1883_v55, %v1691_v15  ;;  %v911_v33 = vmul.f32 %v4506_v44, %v4708_v47  ;;  %v1115_v48 = vmul.f32 %v4554_v6, %v4844_v20  ;;  %v4867_v22 = vmul.f32 %v2979_v27, %v4554_v6  ;;  %v4873_v15 = vld [vmem:[#allocation2 + $0xd2] sm:$0xff] }
 0x18e   :  { %v2317_v39 = vpop.f32.mrf.mxu1  ;;  %2915 = vtanh.f32 %v1979_v42  ;;  %2681 = vmatmul.msk.f32.gmra.mxu3 %vm552_vm2, %v2912_v10  ;;  %v1532_v16 = vadd.f32 %v909_v51, %v776_v24  ;;  %v1788_v29 = vadd.f32 %v1397_v21, %v1326_v30  ;;  %v1044_v10 = vmul.f32 %v4591_v18, %v4743_v25  ;;  %v4896_v21 = vld [vmem:[#allocation2 + $0x1d1] sm:$0xff] }
 0x18f   :  { %2495 = vst.msk [vmem:[%s5568_s4 + $0x38] sm:$0xff] %vm552_vm2, %v2317_v39  ;;  %v2011_v17 = vadd.f32 %v1947_v45, %v1499_v0  ;;  %v1184_v39 = vmul.f32 %v4518_v9, %v4708_v47  ;;  %v2914_v38 = vpop.eup %2913  ;;  %v2980_v47 = vld [vmem:[#allocation2 + $0x102] sm:$0xff]  ;;  %v1074_v0 = vmul.f32 %v4591_v18, %v4654_v52  ;;  %v4880_v45 = vld [vmem:[#allocation2 + $0xd8] sm:$0xff]  ;;  %v4888_v25 = vmul.f32 %v4591_v18, %v4712_v4 }
 0x190   :  { %653 = vst.msk [vmem:[#allocation2 + $0xf8] sm:$0xff] %vm552_vm2, %v2914_v38  ;;  %v4876_v55 = vmul.f32 %v2980_v47, %v4645_v32  ;;  %v1660_v50 = vadd.f32 %v1596_v57, %v1532_v16  ;;  %v1534_v24 = vadd.f32 %v911_v33, %v778_v43  ;;  %v1147_v52 = vmul.f32 %v4554_v6, %v4871_v8  ;;  %v4909_v16 = vld [vmem:[#allocation2 + $0x1d8] sm:$0xff] }
 0x191   :  { %2917 = vtanh.f32 %v2011_v17  ;;  %v1724_v42 = vadd.f32 %v1255_v41, %v1184_v39  ;;  %5575 = vst [vmem:[#allocation5_spill] sm:$0xff] %v4867_v22  ;;  %v4884_v41 = vmul.f32 %v4591_v18, %v4688_v46  ;;  %v1598_v17 = vadd.f32 %v1115_v48, %v1044_v10  ;;  %v2410_v46 = vpop.f32.mrf.mxu3 }
 0x192   :  { %2919 = vtanh.f32 %v485_v58  ;;  %5576 = vst [vmem:[#allocation6_spill] sm:$0xff] %v4876_v55  ;;  %v810_v39 = vmul.f32 %v4485_v19, %v4745_v59  ;;  %v1468_v30 = vmul.f32 %v4645_v32, %v4873_v15  ;;  %v943_v4 = vmul.f32 %v4506_v44, %v4747_v63 }
 0x193   :  { %v1852_v49 = vadd.f32 %v1788_v29, %v1724_v42  ;;  %v1076_v58 = vmul.f32 %v4591_v18, %v4773_v60  ;;  %v1145_v57 = vmul.f32 %v4554_v6, %v4745_v59  ;;  %v1287_v48 = vmul.f32 %v4496_v56, %v4773_v60  ;;  %2526 = vst.msk [vmem:[%s5568_s4 + $0x130] sm:$0xff] %vm552_vm2, %v2410_v46 }
 0x194   :  { %v2916_v40 = vpop.eup %2915  ;;  %v941_v29 = vmul.f32 %v4506_v44, %v4618_v34  ;;  %v1216_v27 = vmul.f32 %v4518_v9, %v4747_v63  ;;  %v779_v59 = vmul.f32 %v4485_v19, %v4786_v7  ;;  %v912_v60 = vmul.f32 %v4506_v44, %v4777_v23 }
 0x195   :  { %2650 = vmatmul.msk.f32.gmra.mxu1 %vm552_vm2, %v2916_v40  ;;  %v1916_v38 = vadd.f32 %v1852_v49, %v1660_v50  ;;  %v1116_v40 = vmul.f32 %v4554_v6, %v4880_v45  ;;  %v1045_v10 = vmul.f32 %v4591_v18, %v4798_v12  ;;  %v1429_v34 = vmul.f32 %v4575_v37, %v4896_v21 }
 0x196   :  { %v2320_v43 = vpop.f32.mrf.mxu1  ;;  %v1630_v63 = vadd.f32 %v1147_v52, %v1076_v58  ;;  %v808_v47 = vmul.f32 %v4485_v19, %v4616_v35  ;;  %v1358_v50 = vmul.f32 %v4568_v36, %v4871_v8  ;;  %v1628_v52 = vadd.f32 %v1145_v57, %v1074_v0 }
 0x197   :  { %v2918_v51 = vpop.eup %2917  ;;  %v1980_v42 = vadd.f32 %v1916_v38, %v1468_v30  ;;  %2496 = vst.msk [vmem:[%s5568_s4 + $0x40] sm:$0xff] %vm552_vm2, %v2320_v43  ;;  %v1599_v49 = vadd.f32 %v1116_v40, %v1045_v10  ;;  %v1148_v30 = vmul.f32 %v4554_v6, %v4909_v16  ;;  %v1566_v38 = vadd.f32 %v943_v4, %v810_v39  ;;  %v714_v43 = vld [vmem:[#allocation2 + $0xe0] sm:$0xff]  ;;  %v4946_v10 = vld [vmem:[#allocation2 + $0x1d2] sm:$0xff] }
 0x198   :  { %2682 = vmatmul.msk.f32.gmra.mxu3 %vm552_vm2, %v2918_v51  ;;  %v2920_v33 = vpop.eup %2919  ;;  %v944_v51 = vmul.f32 %v4506_v44, %v4809_v26  ;;  %v1564_v46 = vadd.f32 %v941_v29, %v808_v47  ;;  %v1756_v58 = vadd.f32 %v1287_v48, %v1216_v27  ;;  %v1820_v35 = vadd.f32 %v1429_v34, %v1358_v50  ;;  %v846_v29 = vld [vmem:[#allocation2 + $0xe1] sm:$0xff] }
 0x199   :  { %685 = vst.msk [vmem:[#allocation2 + $0x1f8] sm:$0xff] %vm552_vm2, %v2920_v33  ;;  %2921 = vtanh.f32 %v1980_v42  ;;  %v4940_v33 = vadd.f32 %v1598_v17, %v1534_v24  ;;  %v1535_v42 = vadd.f32 %v912_v60, %v779_v59  ;;  %v811_v22 = vmul.f32 %v4485_v19, %v4807_v3  ;;  %v4963_v47 = vld [vmem:[#allocation2 + $0xe2] sm:$0xff] }
 0x19a   :  { %v1077_v40 = vmul.f32 %v4591_v18, %v4833_v11  ;;  %v4948_v55 = vadd.f32 %v1630_v63, %v1566_v38  ;;  %v1256_v0 = vmul.f32 %v4496_v56, %v4798_v12  ;;  %v1692_v39 = vadd.f32 %v1628_v52, %v1564_v46  ;;  %v4961_v63 = vld [vmem:[#allocation2 + $0xd9] sm:$0xff] }
 0x19b   :  { %v1884_v4 = vadd.f32 %v1820_v35, %v1756_v58  ;;  %v4952_v57 = vadd.f32 %v1599_v49, %v1535_v42  ;;  %v1567_v24 = vadd.f32 %v944_v51, %v811_v22  ;;  %v780_v48 = vmul.f32 %v4485_v19, %v4844_v20  ;;  %v2413_v51 = vpop.f32.mrf.mxu3 }
 0x19c   :  { %v1631_v17 = vadd.f32 %v1148_v30, %v1077_v40  ;;  %v913_v59 = vmul.f32 %v4506_v44, %v4838_v54  ;;  %v1117_v60 = vmul.f32 %v4554_v6, %v714_v43  ;;  %v1500_v34 = vmul.f32 %v4645_v32, %v4946_v10  ;;  %2527 = vst.msk [vmem:[%s5568_s4 + $0x138] sm:$0xff] %vm552_vm2, %v2413_v51  ;;  %v5015_v51 = vld [vmem:[#allocation2 + $0xe9] sm:$0xff] }
 0x19d   :  { %v1948_v12 = vadd.f32 %v1884_v4, %v1692_v39  ;;  %v1046_v22 = vmul.f32 %v4591_v18, %v4873_v15  ;;  %v1186_v20 = vmul.f32 %v4518_v9, %v4838_v54  ;;  %v1257_v50 = vmul.f32 %v4496_v56, %v4873_v15  ;;  %v5003_v39 = vld [vmem:[#allocation2 + $0xf0] sm:$0xff] }
 0x19e   :  { %v1328_v49 = vmul.f32 %v4568_v36, %v714_v43  ;;  %v1399_v52 = vmul.f32 %v4575_v37, %v846_v29  ;;  %v777_v46 = vmul.f32 %v4485_v19, %v4661_v1  ;;  %v1114_v58 = vmul.f32 %v4554_v6, %v4786_v7 }
 0x19f   :  { %v2922_v27 = vpop.eup %2921  ;;  %v2323_v30 = vpop.f32.mrf.mxu1  ;;  %v2012_v38 = vadd.f32 %v1948_v12, %v1500_v34  ;;  %v910_v54 = vmul.f32 %v4506_v44, %v4649_v14  ;;  %v1185_v15 = vmul.f32 %v4518_v9, %v4777_v23  ;;  %v1327_v35 = vmul.f32 %v4568_v36, %v4880_v45 }
 0x1a0   :  { %2651 = vmatmul.msk.f32.gmra.mxu1 %vm552_vm2, %v2922_v27  ;;  %v1398_v1 = vmul.f32 %v4575_v37, %v4961_v63  ;;  %2497 = vst.msk [vmem:[%s5568_s4 + $0x48] sm:$0xff] %vm552_vm2, %v2323_v30  ;;  %v1188_v7 = vmul.f32 %v4518_v9, %v846_v29  ;;  %v1259_v42 = vmul.f32 %v4496_v56, %v4963_v47  ;;  %v5008_v27 = vld [vmem:[#allocation2 + $0xf1] sm:$0xff] }
 0x1a1   :  { %v1600_v14 = vadd.f32 %v1117_v60, %v1046_v22  ;;  %2923 = vtanh.f32 %v2012_v38  ;;  %v4999_v23 = vmul.f32 %v4496_v56, %v4833_v11  ;;  %v5001_v40 = vadd.f32 %v1631_v17, %v1567_v24  ;;  %5578 = vst [vmem:[#allocation8_spill] sm:$0xff] %v5008_v27  ;;  %v5018_v17 = vld [vmem:[#allocation2 + $0x1e0] sm:$0xff] }
 0x1a2   :  { %v5006_v4 = vmul.f32 %v4485_v19, %v714_v43  ;;  %v5011_v34 = vmul.f32 %v4506_v44, %v846_v29  ;;  %v1330_v60 = vmul.f32 %v4568_v36, %v5003_v39  ;;  %v1536_v12 = vadd.f32 %v913_v59, %v780_v48  ;;  %5579 = vst [vmem:[#allocation9_spill] sm:$0xff] %v5018_v17  ;;  %v5026_v59 = vld [vmem:[#allocation2 + $0xe8] sm:$0xff] }
 0x1a3   :  { %5577 = vst [vmem:[#allocation7_spill] sm:$0xff] %v5001_v40  ;;  %v1790_v22 = vadd.f32 %v1399_v52, %v1328_v49  ;;  %v1597_v11 = vadd.f32 %v1114_v58, %v4884_v41  ;;  %v1726_v24 = vadd.f32 %v1257_v50, %v1186_v20  ;;  %v1533_v30 = vadd.f32 %v910_v54, %v777_v46  ;;  %v5028_v49 = vld [vmem:[#allocation2 + $0xda] sm:$0xff]  ;;  %v2416_v46 = vpop.f32.mrf.mxu3 }
 0x1a4   :  { %v1725_v43 = vadd.f32 %v1256_v0, %v1185_v15  ;;  %v1789_v38 = vadd.f32 %v1398_v1, %v1327_v35  ;;  %v1401_v13 = vmul.f32 %v4575_v37, %v5008_v27  ;;  %v5022_v29 = vadd.f32 %v1600_v14, %v1536_v12  ;;  %v5030_v41 = vld [vmem:[#allocation2 + $0x1e1] sm:$0xff]  ;;  %2528 = vst.msk [vmem:[%s5568_s4 + $0x140] sm:$0xff] %vm552_vm2, %v2416_v46 }
 0x1a5   :  { %v1728_v61 = vadd.f32 %v1259_v42, %v1188_v7  ;;  %v812_v48 = vmul.f32 %v4485_v19, %v4871_v8  ;;  %5580 = vst [vmem:[#allocation10_spill] sm:$0xff] %v5030_v41  ;;  %v1329_v20 = vmul.f32 %v4568_v36, %v5026_v59  ;;  %v1400_v0 = vmul.f32 %v4575_v37, %v5015_v51 }
 0x1a6   :  { %v1661_v50 = vadd.f32 %v1597_v11, %v1533_v30  ;;  %v1853_v52 = vadd.f32 %v1789_v38, %v1725_v43  ;;  %v1854_v15 = vadd.f32 %v1790_v22, %v1726_v24  ;;  %v945_v8 = vmul.f32 %v4506_v44, %v4896_v21  ;;  %v5053_v22 = vld [vmem:[#allocation2 + $0x1d9] sm:$0xff]  ;;  %v5055_v11 = vld [vmem:[#allocation2 + $0x1e2] sm:$0xff] }
 0x1a7   :  { %v2326_v58 = vpop.f32.mrf.mxu1  ;;  %v2924_v54 = vpop.eup %2923  ;;  %v1078_v35 = vmul.f32 %v4591_v18, %v4946_v10  ;;  %v1149_v1 = vmul.f32 %v4554_v6, %v5018_v17  ;;  %v1187_v7 = vmul.f32 %v4518_v9, %v4961_v63  ;;  %v1258_v42 = vmul.f32 %v4496_v56, %v5028_v49 }
 0x1a8   :  { %2683 = vmatmul.msk.f32.gmra.mxu3 %vm552_vm2, %v2924_v54  ;;  %v1469_v14 = vmul.f32 %v4645_v32, %v5028_v49  ;;  %v1917_v12 = vadd.f32 %v1853_v52, %v1661_v50  ;;  %v1218_v24 = vmul.f32 %v4518_v9, %v4896_v21  ;;  %v1431_v30 = vmul.f32 %v4575_v37, %v5030_v41  ;;  %v5071_v54 = vld [vmem:[#allocation2 + $0x1f0] sm:$0xff] }
 0x1a9   :  { %v942_v43 = vmul.f32 %v4506_v44, %v4683_v2  ;;  %v1146_v38 = vmul.f32 %v4554_v6, %v4807_v3  ;;  %2498 = vst.msk [vmem:[%s5568_s4 + $0x50] sm:$0xff] %vm552_vm2, %v2326_v58  ;;  %v1792_v50 = vadd.f32 %v1401_v13, %v1330_v60  ;;  %v1289_v52 = vmul.f32 %v4496_v56, %v4946_v10 }
 0x1aa   :  { %v1791_v46 = vadd.f32 %v1400_v0, %v1329_v20  ;;  %v1981_v21 = vadd.f32 %v1917_v12, %v1469_v14  ;;  %v1360_v27 = vmul.f32 %v4568_v36, %v5018_v17  ;;  %v809_v44 = vmul.f32 %v4485_v19, %v4681_v5 }
 0x1ab   :  { %v1217_v2 = vmul.f32 %v4518_v9, %v4809_v26  ;;  %v1430_v3 = vmul.f32 %v4575_v37, %v5053_v22  ;;  %v1220_v13 = vmul.f32 %v4518_v9, %v5030_v41  ;;  %v1291_v10 = vmul.f32 %v4496_v56, %v5055_v11  ;;  %v5091_v41 = vld [vmem:[#allocation2 + $0x1e9] sm:$0xff]  ;;  %v2419_v40 = vpop.f32.mrf.mxu3 }
 0x1ac   :  { %v1727_v60 = vadd.f32 %v1258_v42, %v1187_v7  ;;  %2925 = vtanh.f32 %v1981_v21  ;;  %v1822_v20 = vadd.f32 %v1431_v30, %v1360_v27  ;;  %v1359_v0 = vmul.f32 %v4568_v36, %v4909_v16  ;;  %2529 = vst.msk [vmem:[%s5568_s4 + $0x148] sm:$0xff] %vm552_vm2, %v2419_v40  ;;  %v5118_v40 = vld [vmem:[#allocation2 + $0x1f1] sm:$0xff]  ;;  %v5132_v21 = vld [vmem:[#allocation2 + $0xf9] sm:$0xff] }
 0x1ad   :  { %v1565_v58 = vadd.f32 %v942_v43, %v809_v44  ;;  %v1629_v5 = vadd.f32 %v1146_v38, %v4888_v25  ;;  %v1856_v14 = vadd.f32 %v1792_v50, %v1728_v61  ;;  %v1918_v26 = vadd.f32 %v1854_v15, %v4940_v33  ;;  %v5108_v15 = vld [vmem:[#allocation2 + $0x1e8] sm:$0xff]  ;;  %v5138_v44 = vld [vmem:[%s5566_s2 + $0x5] ss:$0 sm:$0xff] }
 0x1ae   :  { %v1362_v12 = vmul.f32 %v4568_v36, %v5071_v54  ;;  %v1855_v17 = vadd.f32 %v1791_v46, %v1727_v60  ;;  %v5093_v7 = vadd.f32 %v945_v8, %v812_v48  ;;  %v1758_v27 = vadd.f32 %v1289_v52, %v1218_v24  ;;  %v5110_v48 = vld [vmem:[#allocation2 + $0x1da] sm:$0xff] }
 0x1af   :  { %v1757_v42 = vadd.f32 %v4999_v23, %v1217_v2  ;;  %v1821_v30 = vadd.f32 %v1430_v3, %v1359_v0  ;;  %v5100_v61 = vadd.f32 %v1149_v1, %v1078_v35  ;;  %v5102_v25 = vadd.f32 %v1291_v10, %v1220_v13  ;;  %v5120_v35 = vld [vmem:[#allocation2 + $0xea] sm:$0xff]  ;;  %v5130_v46 = vld [vmem:[#allocation2 + $0xf8] sm:$0xff]  ;;  %v5151_v3 = vld [vmem:[%s5566_s2] ss:$0 sm:$0xff] }
 0x1b0   :  { %v5106_v33 = vmul.f32 %v4485_v19, %v4880_v45  ;;  %v1470_v23 = vmul.f32 %v4645_v32, %v4963_v47  ;;  %v1886_v8 = vadd.f32 %v1822_v20, %v1758_v27  ;;  %v1432_v19 = vmul.f32 %v4575_v37, %v5091_v41  ;;  %v5161_v20 = vld [vmem:[%s5566_s2 + $0x1] ss:$0 sm:$0xff] }
 0x1b1   :  { %v2329_v56 = vpop.f32.mrf.mxu1  ;;  %v1693_v45 = vadd.f32 %v1629_v5, %v1565_v58  ;;  %v1885_v1 = vadd.f32 %v1821_v30, %v1757_v42  ;;  %v5125_v43 = vadd.f32 %v1856_v14, %v5022_v29  ;;  %v1919_v38 = vadd.f32 %v1855_v17, %v4952_v57 }
 0x1b2   :  { %2499 = vst.msk [vmem:[%s5568_s4 + $0x58] sm:$0xff] %vm552_vm2, %v2329_v56  ;;  %v2926_v24 = vpop.eup %2925  ;;  %v1219_v50 = vmul.f32 %v4518_v9, %v5053_v22  ;;  %v1982_v52 = vadd.f32 %v1918_v26, %v1470_v23  ;;  %v1290_v29 = vmul.f32 %v5138_v44, %v5110_v48  ;;  %v1361_v57 = vmul.f32 %v4568_v36, %v5108_v15 }
 0x1b3   :  { %2652 = vmatmul.msk.f32.gmra.mxu1 %vm552_vm2, %v2926_v24  ;;  %v1501_v9 = vmul.f32 %v4645_v32, %v5110_v48  ;;  %v1949_v17 = vadd.f32 %v1885_v1, %v1693_v45  ;;  %v1433_v2 = vmul.f32 %v4575_v37, %v5118_v40  ;;  %v783_v13 = vmul.f32 %v5151_v3, %v5026_v59  ;;  %v2422_v27 = vpop.f32.mrf.mxu3  ;;  %v981_v1 = vld [vmem:[#allocation2 + $0xf2] sm:$0xff] }
 0x1b4   :  { %2927 = vtanh.f32 %v1982_v52  ;;  %v1471_v10 = vmul.f32 %v4645_v32, %v5120_v35  ;;  %v1950_v60 = vadd.f32 %v1886_v8, %v4948_v55  ;;  %v914_v0 = vmul.f32 %v5161_v20, %v4961_v63  ;;  %2530 = vst.msk [vmem:[%s5568_s4 + $0x150] sm:$0xff] %vm552_vm2, %v2422_v27 }
 0x1b5   :  { %v1823_v58 = vadd.f32 %v1432_v19, %v1361_v57  ;;  %v2013_v5 = vadd.f32 %v1949_v17, %v1501_v9  ;;  %v1118_v14 = vmul.f32 %v4554_v6, %v5026_v59  ;;  %v1331_v26 = vmul.f32 %v4568_v36, %v5130_v46  ;;  %v5184_v59 = vld [vmem:[%s5566_s2 + $0x4] ss:$0 sm:$0xff]  ;;  %v5208_v9 = vld [vmem:[#allocation2 + $0x1ea] sm:$0xff]  ;;  %v5216_v17 = vld [vmem:[#allocation2 + $0x1f8] sm:$0xff] }
 0x1b6   :  { %v1402_v56 = vmul.f32 %v4575_v37, %v5132_v21  ;;  %v1983_v55 = vadd.f32 %v1919_v38, %v1471_v10  ;;  %v916_v30 = vmul.f32 %v5161_v20, %v5015_v51  ;;  %v1759_v23 = vadd.f32 %v1290_v29, %v1219_v50 }
 0x1b7   :  { %2929 = vtanh.f32 %v2013_v5  ;;  %v1502_v63 = vmul.f32 %v4645_v32, %v5055_v11  ;;  %v1824_v36 = vadd.f32 %v1433_v2, %v1362_v12  ;;  %v1047_v37 = vmul.f32 %v4591_v18, %v5028_v49  ;;  %v5581_v2 = vld [vmem:[#allocation7_spill] sm:$0xff] }
 0x1b8   :  { %v1189_v8 = vmul.f32 %v5184_v59, %v5015_v51  ;;  %v1260_v19 = vmul.f32 %v5138_v44, %v5120_v35  ;;  %v1887_v12 = vadd.f32 %v1823_v58, %v1759_v23  ;;  %v1119_v49 = vmul.f32 %v4554_v6, %v5003_v39 }
 0x1b9   :  { %v2014_v45 = vadd.f32 %v1950_v60, %v1502_v63  ;;  %v5198_v24 = vadd.f32 %v3461_v62, %v3447_v53  ;;  %v1601_v51 = vadd.f32 %v1118_v14, %v1047_v37  ;;  %v1793_v50 = vadd.f32 %v1402_v56, %v1331_v26  ;;  %v5231_v26 = vld [vmem:[%s5566_s2 + $0x6] ss:$0 sm:$0xff]  ;;  %v5265_v37 = vld [vmem:[%s5566_s2 + $0x3] ss:$0 sm:$0xff] }
 0x1ba   :  { %v2332_v42 = vpop.f32.mrf.mxu1  ;;  %v2928_v38 = vpop.eup %2927  ;;  %2931 = vtanh.f32 %v1983_v55  ;;  %v5202_v52 = vadd.f32 %v3568_v31, %v3562_v28  ;;  %v1538_v29 = vadd.f32 %v5011_v34, %v5006_v4  ;;  %v1696_v57 = vadd.f32 %v5100_v61, %v5093_v7  ;;  %v5218_v4 = vld [vmem:[#allocation2 + $0x1f9] sm:$0xff] }
 0x1bb   :  { %2500 = vst.msk [vmem:[%s5568_s4 + $0x60] sm:$0xff] %vm552_vm2, %v2332_v42  ;;  %2653 = vmatmul.msk.f32.gmra.mxu1 %vm552_vm2, %v2928_v38  ;;  %v1472_v53 = vmul.f32 %v4645_v32, %v981_v1  ;;  %v1048_v62 = vmul.f32 %v4591_v18, %v4963_v47  ;;  %v1888_v6 = vadd.f32 %v1824_v36, %v5102_v25  ;;  %v5221_v7 = vld [vmem:[#allocation2 + $0xfa] sm:$0xff]  ;;  %2933 = vtanh.f32 %v2014_v45 }
 0x1bc   :  { %v1537_v28 = vadd.f32 %v914_v0, %v5106_v33  ;;  %v1729_v31 = vadd.f32 %v1260_v19, %v1189_v8  ;;  %v1261_v34 = vmul.f32 %v5138_v44, %v981_v1  ;;  %v1951_v10 = vadd.f32 %v1887_v12, %v5581_v2  ;;  %v5582_v33 = vld [vmem:[#allocation8_spill] sm:$0xff]  ;;  %v2425_v5 = vpop.f32.mrf.mxu3 }
 0x1bd   :  { %v2930_v61 = vpop.eup %2929  ;;  %v1984_v60 = vadd.f32 %v5125_v43, %v1472_v53  ;;  %v1602_v18 = vadd.f32 %v1119_v49, %v1048_v62  ;;  %v1539_v47 = vadd.f32 %v916_v30, %v783_v13  ;;  %v1190_v0 = vmul.f32 %v5184_v59, %v5582_v33  ;;  %v5238_v43 = vld [vmem:[%s5566_s2 + $0x7] ss:$0 sm:$0xff]  ;;  %2531 = vst.msk [vmem:[%s5568_s4 + $0x158] sm:$0xff] %vm552_vm2, %v2425_v5  ;;  %v5253_v30 = vld [vmem:[%s5566_s2 + $0x2] ss:$0 sm:$0xff]  ;;  %v5586_v5 = vld [vmem:[#allocation5_spill] sm:$0xff] }
 0x1be   :  { %v1665_v25 = vadd.f32 %v1601_v51, %v1537_v28  ;;  %v1857_v58 = vadd.f32 %v1793_v50, %v1729_v31  ;;  %2684 = vmatmul.msk.f32.gmra.mxu3 %vm552_vm2, %v2930_v61  ;;  %v1363_v56 = vmul.f32 %v5231_v26, %v5216_v17  ;;  %v1434_v13 = vmul.f32 %v5238_v43, %v5218_v4  ;;  %v5283_v61 = vld [vmem:[#allocation2 + $0x1f2] sm:$0xff] }
 0x1bf   :  { %v1503_v55 = vmul.f32 %v4645_v32, %v5208_v9  ;;  %v1262_v27 = vmul.f32 %v5138_v44, %v5221_v7  ;;  %v1050_v23 = vmul.f32 %v5253_v30, %v981_v1  ;;  %v1730_v63 = vadd.f32 %v1261_v34, %v1190_v0  ;;  %v5583_v1 = vld [vmem:[#allocation3_spill] sm:$0xff] }
 0x1c0   :  { %v2932_v42 = vpop.eup %2931  ;;  %v1049_v36 = vmul.f32 %v5253_v30, %v5120_v35  ;;  %v1120_v8 = vmul.f32 %v5265_v37, %v5130_v46  ;;  %2935 = vtanh.f32 %v1984_v60  ;;  %v1666_v12 = vadd.f32 %v1602_v18, %v1538_v29  ;;  %v5585_v18 = vld [vmem:[#allocation6_spill] sm:$0xff] }
 0x1c1   :  { %v2015_v19 = vadd.f32 %v1951_v10, %v1503_v55  ;;  %v1191_v45 = vmul.f32 %v5184_v59, %v5132_v21  ;;  %v1858_v49 = vadd.f32 %v5583_v1, %v1730_v63  ;;  %v784_v35 = vmul.f32 %v5151_v3, %v5003_v39  ;;  %v2934_v50 = vpop.eup %2933  ;;  %v5584_v10 = vld [vmem:[#allocation4_spill] sm:$0xff] }
 0x1c2   :  { %v1603_v38 = vadd.f32 %v1120_v8, %v1049_v36  ;;  %v917_v51 = vmul.f32 %v5161_v20, %v5582_v33  ;;  %v1952_v53 = vadd.f32 %v1888_v6, %v1696_v57  ;;  %v1921_v62 = vadd.f32 %v1857_v58, %v1665_v25  ;;  %v5311_v8 = vld [vmem:[#allocation2 + $0x200] sm:$0xff] }
 0x1c3   :  { %v946_v28 = vmul.f32 %v5161_v20, %v5053_v22  ;;  %2654 = vmatmul.msk.f32.gmra.mxu1 %vm552_vm2, %v2932_v42  ;;  %v1731_v29 = vadd.f32 %v1262_v27, %v1191_v45  ;;  %v1221_v31 = vmul.f32 %v5184_v59, %v5091_v41  ;;  %v1292_v34 = vmul.f32 %v5138_v44, %v5208_v9 }
 0x1c4   :  { %v2335_v14 = vpop.f32.mrf.mxu1  ;;  %v1922_v39 = vadd.f32 %v1858_v49, %v1666_v12  ;;  %v1667_v2 = vadd.f32 %v1603_v38, %v1539_v47  ;;  %v1150_v57 = vmul.f32 %v5265_v37, %v5108_v15  ;;  %v1825_v6 = vadd.f32 %v1434_v13, %v1363_v56  ;;  %v5298_v56 = vld [vmem:[%s5566_s2 + $0x8] ss:$0 sm:$0xff]  ;;  %v2990_v13 = vld [vmem:[#allocation2 + $0x10a] sm:$0xff] }
 0x1c5   :  { %2501 = vst.msk [vmem:[%s5568_s4 + $0x68] sm:$0xff] %vm552_vm2, %v2335_v14  ;;  %2937 = vtanh.f32 %v2015_v19  ;;  %v1859_v22 = vadd.f32 %v5584_v10, %v1731_v29  ;;  %v1473_v60 = vmul.f32 %v4645_v32, %v5221_v7  ;;  %v2428_v58 = vpop.f32.mrf.mxu3  ;;  %v1540_v0 = vadd.f32 %v917_v51, %v784_v35  ;;  %v5313_v19 = vld [vmem:[#allocation2 + $0x201] sm:$0xff]  ;;  %v5342_v10 = vld [vmem:[#allocation2 + $0x209] sm:$0xff] }
 0x1c6   :  { %2685 = vmatmul.msk.f32.gmra.mxu3 %vm552_vm2, %v2934_v50  ;;  %v5292_v25 = vadd.f32 %v1922_v39, %v5585_v18  ;;  %v1604_v47 = vadd.f32 %v5586_v5, %v1050_v23  ;;  %v2936_v14 = vpop.eup %2935  ;;  %v1475_v55 = vmul.f32 %v2990_v13, %v5298_v56  ;;  %v1079_v32 = vmul.f32 %v5253_v30, %v5110_v48  ;;  %v5332_v29 = vld [vmem:[#allocation2 + $0x1fa] sm:$0xff] }
 0x1c7   :  { %v1504_v27 = vmul.f32 %v5298_v56, %v5283_v61  ;;  %v1923_v42 = vadd.f32 %v1859_v22, %v1667_v2  ;;  %2532 = vst.msk [vmem:[%s5568_s4 + $0x160] sm:$0xff] %vm552_vm2, %v2428_v58  ;;  %v813_v23 = vmul.f32 %v5151_v3, %v4909_v16  ;;  %v1761_v63 = vadd.f32 %v1292_v34, %v1221_v31  ;;  %v2991_v31 = vld [vmem:[#allocation2 + $0x112] sm:$0xff]  ;;  %v5587_v39 = vld [vmem:[#allocation10_spill] sm:$0xff] }
 0x1c8   :  { %v1985_v36 = vadd.f32 %v1921_v62, %v1473_v60  ;;  %v1633_v48 = vadd.f32 %v1150_v57, %v1079_v32  ;;  %v1668_v38 = vadd.f32 %v1604_v47, %v1540_v0  ;;  %v1293_v16 = vmul.f32 %v5138_v44, %v5283_v61  ;;  %v5588_v58 = vld [vmem:[#allocation9_spill] sm:$0xff] }
 0x1c9   :  { %v2016_v12 = vadd.f32 %v1952_v53, %v1504_v27  ;;  %v5319_v45 = vadd.f32 %v1923_v42, %v1475_v55  ;;  %v1569_v1 = vadd.f32 %v946_v28, %v813_v23  ;;  %v1889_v49 = vadd.f32 %v1825_v6, %v1761_v63  ;;  %v5340_v6 = vld [vmem:[#allocation2 + $0x208] sm:$0xff] }
 0x1ca   :  { %v1222_v51 = vmul.f32 %v5184_v59, %v5118_v40  ;;  %v1364_v50 = vmul.f32 %v5231_v26, %v5311_v8  ;;  %v1435_v53 = vmul.f32 %v5238_v43, %v5313_v19  ;;  %2939 = vtanh.f32 %v1985_v36 }
 0x1cb   :  { %v2938_v35 = vpop.eup %2937  ;;  %2655 = vmatmul.msk.f32.gmra.mxu1 %vm552_vm2, %v2936_v14  ;;  %v1151_v62 = vmul.f32 %v5265_v37, %v5071_v54  ;;  %v1697_v28 = vadd.f32 %v1633_v48, %v1569_v1  ;;  %2941 = vtanh.f32 %v2016_v12  ;;  %v1476_v34 = vmul.f32 %v2991_v31, %v5298_v56 }
 0x1cc   :  { %v947_v2 = vmul.f32 %v5161_v20, %v5587_v39  ;;  %v1080_v57 = vmul.f32 %v5253_v30, %v5055_v11  ;;  %v1924_v22 = vadd.f32 %v5198_v24, %v1668_v38  ;;  %v1762_v5 = vadd.f32 %v1293_v16, %v1222_v51 }
 0x1cd   :  { %v2338_v33 = vpop.f32.mrf.mxu1  ;;  %v1953_v0 = vadd.f32 %v1889_v49, %v1697_v28  ;;  %v1826_v47 = vadd.f32 %v1435_v53, %v1364_v50  ;;  %v1294_v11 = vmul.f32 %v5138_v44, %v5332_v29  ;;  %v1505_v14 = vmul.f32 %v5298_v56, %v5332_v29 }
 0x1ce   :  { %2502 = vst.msk [vmem:[%s5568_s4 + $0x70] sm:$0xff] %vm552_vm2, %v2338_v33  ;;  %2686 = vmatmul.msk.f32.gmra.mxu3 %vm552_vm2, %v2938_v35  ;;  %v814_v33 = vmul.f32 %v5151_v3, %v5588_v58  ;;  %v1634_v24 = vadd.f32 %v1151_v62, %v1080_v57  ;;  %v5355_v13 = vadd.f32 %v1924_v22, %v1476_v34  ;;  %v2992_v35 = vld [vmem:[#allocation2 + $0x108] sm:$0xff]  ;;  %2943 = vtanh.f32 %v5292_v25  ;;  %v1368_v57 = vld [vmem:[#allocation2 + $0x211] sm:$0xff] }
 0x1cf   :  { %v2431_v60 = vpop.f32.mrf.mxu3  ;;  %v1152_v55 = vmul.f32 %v5265_v37, %v5216_v17  ;;  %v1223_v32 = vmul.f32 %v5184_v59, %v5218_v4  ;;  %v1365_v27 = vmul.f32 %v5231_v26, %v5340_v6  ;;  %v1436_v42 = vmul.f32 %v5238_v43, %v5342_v10 }
 0x1d0   :  { %2533 = vst.msk [vmem:[%s5568_s4 + $0x168] sm:$0xff] %vm552_vm2, %v2431_v60  ;;  %v2940_v23 = vpop.eup %2939  ;;  %v1570_v63 = vadd.f32 %v947_v2, %v814_v33  ;;  %v1051_v36 = vmul.f32 %v5253_v30, %v5221_v7  ;;  %v948_v12 = vmul.f32 %v5161_v20, %v5091_v41  ;;  %v2017_v1 = vadd.f32 %v1953_v0, %v1505_v14  ;;  %v1226_v7 = vld [vmem:[#allocation2 + $0x202] sm:$0xff]  ;;  %v1297_v2 = vld [vmem:[#allocation2 + $0x210] sm:$0xff] }
 0x1d1   :  { %v2942_v48 = vpop.eup %2941  ;;  %v1890_v49 = vadd.f32 %v1826_v47, %v1762_v5  ;;  %v1081_v38 = vmul.f32 %v5253_v30, %v5208_v9  ;;  %v1122_v16 = vmul.f32 %v2992_v35, %v5265_v37  ;;  %v815_v51 = vmul.f32 %v5151_v3, %v5108_v15 }
 0x1d2   :  { %v1698_v50 = vadd.f32 %v1634_v24, %v1570_v63  ;;  %v1763_v62 = vadd.f32 %v1294_v11, %v1223_v32  ;;  %v1827_v41 = vadd.f32 %v1436_v42, %v1365_v27  ;;  %v785_v28 = vmul.f32 %v5151_v3, %v5130_v46  ;;  %v2993_v32 = vld [vmem:[#allocation2 + $0x11a] sm:$0xff] }
 0x1d3   :  { %2656 = vmatmul.msk.f32.gmra.mxu1 %vm552_vm2, %v2940_v23  ;;  %v1635_v53 = vadd.f32 %v1152_v55, %v1081_v38  ;;  %v918_v9 = vmul.f32 %v5161_v20, %v5132_v21  ;;  %v1605_v31 = vadd.f32 %v1122_v16, %v1051_v36  ;;  %v1571_v39 = vadd.f32 %v948_v12, %v815_v51 }
 0x1d4   :  { %2945 = vtanh.f32 %v2017_v1  ;;  %v1506_v15 = vmul.f32 %v5298_v56, %v1226_v7  ;;  %v1954_v25 = vadd.f32 %v1890_v49, %v1698_v50  ;;  %v1082_v46 = vmul.f32 %v5253_v30, %v5283_v61  ;;  %v2944_v5 = vpop.eup %2943 }
 0x1d5   :  { %v1295_v21 = vmul.f32 %v5138_v44, %v1226_v7  ;;  %v1541_v60 = vadd.f32 %v918_v9, %v785_v28  ;;  %v1891_v58 = vadd.f32 %v1827_v41, %v1763_v62  ;;  %v949_v33 = vmul.f32 %v5161_v20, %v5118_v40 }
 0x1d6   :  { %2687 = vmatmul.msk.f32.gmra.mxu3 %vm552_vm2, %v2942_v48  ;;  %v1153_v0 = vmul.f32 %v5265_v37, %v5311_v8  ;;  %v1224_v61 = vmul.f32 %v5184_v59, %v5313_v19  ;;  %v1366_v47 = vmul.f32 %v5231_v26, %v1297_v2  ;;  %v1437_v11 = vmul.f32 %v5238_v43, %v1368_v57  ;;  %v1227_v8 = vld [vmem:[#allocation2 + $0x20a] sm:$0xff] }
 0x1d7   :  { %v2341_v18 = vpop.f32.mrf.mxu1  ;;  %v1669_v14 = vadd.f32 %v1605_v31, %v1541_v60  ;;  %v2018_v24 = vadd.f32 %v1954_v25, %v1506_v15  ;;  %v816_v55 = vmul.f32 %v5151_v3, %v5071_v54  ;;  %v1477_v40 = vmul.f32 %v2993_v32, %v5298_v56 }
 0x1d8   :  { %2503 = vst.msk [vmem:[%s5568_s4 + $0x78] sm:$0xff] %vm552_vm2, %v2341_v18  ;;  %v2434_v34 = vpop.f32.mrf.mxu3  ;;  %v1699_v18 = vadd.f32 %v1635_v53, %v1571_v39  ;;  %2947 = vtanh.f32 %v5319_v45  ;;  %v1507_v42 = vmul.f32 %v5298_v56, %v1227_v8  ;;  %v1636_v36 = vadd.f32 %v1153_v0, %v1082_v46  ;;  %v1298_v45 = vld [vmem:[#allocation2 + $0x218] sm:$0xff] }
 0x1d9   :  { %2534 = vst.msk [vmem:[%s5568_s4 + $0x170] sm:$0xff] %vm552_vm2, %v2434_v34  ;;  %v1925_v27 = vadd.f32 %v5202_v52, %v1669_v14  ;;  %v1572_v63 = vadd.f32 %v949_v33, %v816_v55  ;;  %v1764_v48 = vadd.f32 %v1295_v21, %v1224_v61  ;;  %v1828_v12 = vadd.f32 %v1437_v11, %v1366_v47  ;;  %v1369_v52 = vld [vmem:[#allocation2 + $0x219] sm:$0xff] }
 0x1da   :  { %v2946_v19 = vpop.eup %2945  ;;  %v1955_v23 = vadd.f32 %v1891_v58, %v1699_v18  ;;  %2949 = vtanh.f32 %v2018_v24  ;;  %v1083_v49 = vmul.f32 %v5253_v30, %v5332_v29  ;;  %v1296_v38 = vmul.f32 %v5138_v44, %v1227_v8  ;;  %v1439_v30 = vld [vmem:[#allocation2 + $0x212] sm:$0xff]  ;;  %v1440_v39 = vld [vmem:[#allocation2 + $0x21a] sm:$0xff] }
 0x1db   :  { %2657 = vmatmul.msk.f32.gmra.mxu1 %vm552_vm2, %v2944_v5  ;;  %v1989_v1 = vadd.f32 %v1925_v27, %v1477_v40  ;;  %v1700_v7 = vadd.f32 %v1636_v36, %v1572_v63  ;;  %v1892_v50 = vadd.f32 %v1828_v12, %v1764_v48  ;;  %v817_v53 = vmul.f32 %v5151_v3, %v5216_v17 }
 0x1dc   :  { %v2019_v35 = vadd.f32 %v1955_v23, %v1507_v42  ;;  %v950_v62 = vmul.f32 %v5161_v20, %v5218_v4  ;;  %v1154_v44 = vmul.f32 %v5265_v37, %v5340_v6  ;;  %v1225_v29 = vmul.f32 %v5184_v59, %v5342_v10 }
 0x1dd   :  { %v1367_v41 = vmul.f32 %v5231_v26, %v1298_v45  ;;  %v1438_v3 = vmul.f32 %v5238_v43, %v1369_v52  ;;  %2951 = vtanh.f32 %v5355_v13  ;;  %v1508_v17 = vmul.f32 %v5298_v56, %v1439_v30 }
 0x1de   :  { %2688 = vmatmul.msk.f32.gmra.mxu3 %vm552_vm2, %v2946_v19  ;;  %v2948_v51 = vpop.eup %2947  ;;  %2953 = vtanh.f32 %v2019_v35  ;;  %v1956_v4 = vadd.f32 %v1892_v50, %v1700_v7  ;;  %v1573_v9 = vadd.f32 %v950_v62, %v817_v53  ;;  %v1637_v31 = vadd.f32 %v1154_v44, %v1083_v49 }
 0x1df   :  { %v1765_v37 = vadd.f32 %v1296_v38, %v1225_v29  ;;  %v1829_v6 = vadd.f32 %v1438_v3, %v1367_v41  ;;  %2955 = vtanh.f32 %v1989_v1  ;;  %v1509_v25 = vmul.f32 %v5298_v56, %v1440_v39 }
 0x1e0   :  { %v2950_v20 = vpop.eup %2949  ;;  %v2020_v43 = vadd.f32 %v1956_v4, %v1508_v17  ;;  %v1701_v10 = vadd.f32 %v1637_v31, %v1573_v9 }
 0x1e1   :  { %v2344_v22 = vpop.f32.mrf.mxu1  ;;  %v1893_v13 = vadd.f32 %v1829_v6, %v1765_v37 }
 0x1e2   :  { %2504 = vst.msk [vmem:[%s5568_s4 + $0x80] sm:$0xff] %vm552_vm2, %v2344_v22  ;;  %v2437_v54 = vpop.f32.mrf.mxu3  ;;  %2957 = vtanh.f32 %v2020_v43 }
 0x1e3   :  { %2535 = vst.msk [vmem:[%s5568_s4 + $0x178] sm:$0xff] %vm552_vm2, %v2437_v54  ;;  %2658 = vmatmul.msk.f32.gmra.mxu1 %vm552_vm2, %v2948_v51  ;;  %v2952_v59 = vpop.eup %2951  ;;  %v1957_v2 = vadd.f32 %v1893_v13, %v1701_v10 }
 0x1e4   :  { %v2954_v34 = vpop.eup %2953 }
 0x1e5   :  { %v2956_v57 = vpop.eup %2955  ;;  %v2021_v22 = vadd.f32 %v1957_v2, %v1509_v25 }
 0x1e6   :  { %2689 = vmatmul.msk.f32.gmra.mxu3 %vm552_vm2, %v2950_v20 }
 0x1e7   :  { %2959 = vtanh.f32 %v2021_v22 }
 0x1e8   :  { %v2958_v21 = vpop.eup %2957 }
 0x1ea   :  { %v2347_v16 = vpop.f32.mrf.mxu1 }
 0x1eb   :  { %2505 = vst.msk [vmem:[%s5568_s4 + $0x88] sm:$0xff] %vm552_vm2, %v2347_v16  ;;  %v2440_v28 = vpop.f32.mrf.mxu3  ;;  %2659 = vmatmul.msk.f32.gmra.mxu1 %vm552_vm2, %v2952_v59 }
 0x1ec   :  { %2536 = vst.msk [vmem:[%s5568_s4 + $0x180] sm:$0xff] %vm552_vm2, %v2440_v28 }
 0x1ed   :  { %v2960_v60 = vpop.eup %2959 }
 0x1ee   :  { %2690 = vmatmul.msk.f32.gmra.mxu3 %vm552_vm2, %v2954_v34 }
 0x1f3   :  { %v2350_v26 = vpop.f32.mrf.mxu1  ;;  %2660 = vmatmul.msk.f32.gmra.mxu1 %vm552_vm2, %v2956_v57 }
 0x1f4   :  { %2506 = vst.msk [vmem:[%s5568_s4 + $0x90] sm:$0xff] %vm552_vm2, %v2350_v26 }
 0x1f5   :  { %v2443_v15 = vpop.f32.mrf.mxu3 }
 0x1f6   :  { %2537 = vst.msk [vmem:[%s5568_s4 + $0x188] sm:$0xff] %vm552_vm2, %v2443_v15  ;;  %2691 = vmatmul.msk.f32.gmra.mxu3 %vm552_vm2, %v2958_v21 }
 0x1fd   :  { %v2353_v46 = vpop.f32.mrf.mxu1 }
 0x1fe   :  { %2507 = vst.msk [vmem:[%s5568_s4 + $0x98] sm:$0xff] %vm552_vm2, %v2353_v46  ;;  %v2446_v56 = vpop.f32.mrf.mxu3  ;;  %2692 = vmatmul.msk.f32.gmra.mxu3 %vm552_vm2, %v2960_v60 }
 0x1ff   :  { %2538 = vst.msk [vmem:[%s5568_s4 + $0x190] sm:$0xff] %vm552_vm2, %v2446_v56 }
 0x206   :  { %v2356_v18 = vpop.f32.mrf.mxu1 }
 0x207   :  { %2508 = vst.msk [vmem:[%s5568_s4 + $0xa0] sm:$0xff] %vm552_vm2, %v2356_v18 }
 0x208   :  { %v2449_v58 = vpop.f32.mrf.mxu3 }
 0x209   :  { %2539 = vst.msk [vmem:[%s5568_s4 + $0x198] sm:$0xff] %vm552_vm2, %v2449_v58 }
 0x211   :  { %v2452_v0 = vpop.f32.mrf.mxu3 }
 0x212   :  { %v2359_v33 = vpop.f32.mrf.mxu1  ;;  %2540 = vst.msk [vmem:[%s5568_s4 + $0x1a0] sm:$0xff] %vm552_vm2, %v2452_v0 }
 0x213   :  { %2509 = vst.msk [vmem:[%s5568_s4 + $0xa8] sm:$0xff] %vm552_vm2, %v2359_v33 }
 0x21b   :  { %v2455_v5 = vpop.f32.mrf.mxu3 }
 0x21c   :  { %2541 = vst.msk [vmem:[%s5568_s4 + $0x1a8] sm:$0xff] %vm552_vm2, %v2455_v5 }
 0x21d   :  { %v2362_v61 = vpop.f32.mrf.mxu1 }
 0x21e   :  { %2510 = vst.msk [vmem:[%s5568_s4 + $0xb0] sm:$0xff] %vm552_vm2, %v2362_v61 }
 0x22b   :  { %v2458_v47 = vpop.f32.mrf.mxu3 }
 0x22c   :  { %2542 = vst.msk [vmem:[%s5568_s4 + $0x1b0] sm:$0xff] %vm552_vm2, %v2458_v47 }
 0x230   :  { %v2365_v11 = vpop.f32.mrf.mxu1 }
 0x231   :  { %2511 = vst.msk [vmem:[%s5568_s4 + $0xb8] sm:$0xff] %vm552_vm2, %v2365_v11 }
 0x238   :  { %v2368_v14 = vpop.f32.mrf.mxu1 }
 0x239   :  { %2512 = vst.msk [vmem:[%s5568_s4 + $0xc0] sm:$0xff] %vm552_vm2, %v2368_v14 }
 0x240   :  { %v2371_v24 = vpop.f32.mrf.mxu1 }
 0x241   :  { %v2461_v55 = vpop.f32.mrf.mxu3  ;;  %2513 = vst.msk [vmem:[%s5568_s4 + $0xc8] sm:$0xff] %vm552_vm2, %v2371_v24 }
 0x242   :  { %2543 = vst.msk [vmem:[%s5568_s4 + $0x1b8] sm:$0xff] %vm552_vm2, %v2461_v55 }
 0x248   :  { %v2374_v32 = vpop.f32.mrf.mxu1 }
 0x249   :  { %v2464_v40 = vpop.f32.mrf.mxu3  ;;  %2514 = vst.msk [vmem:[%s5568_s4 + $0xd0] sm:$0xff] %vm552_vm2, %v2374_v32 }
 0x24a   :  { %2544 = vst.msk [vmem:[%s5568_s4 + $0x1c0] sm:$0xff] %vm552_vm2, %v2464_v40 }
 0x250   :  { %v2377_v8 = vpop.f32.mrf.mxu1 }
 0x251   :  { %v2467_v27 = vpop.f32.mrf.mxu3  ;;  %2515 = vst.msk [vmem:[%s5568_s4 + $0xd8] sm:$0xff] %vm552_vm2, %v2377_v8 }
 0x252   :  { %2545 = vst.msk [vmem:[%s5568_s4 + $0x1c8] sm:$0xff] %vm552_vm2, %v2467_v27 }
 0x258   :  { %v2380_v19 = vpop.f32.mrf.mxu1 }
 0x259   :  { %v2470_v42 = vpop.f32.mrf.mxu3  ;;  %2516 = vst.msk [vmem:[%s5568_s4 + $0xe0] sm:$0xff] %vm552_vm2, %v2380_v19 }
 0x25a   :  { %2546 = vst.msk [vmem:[%s5568_s4 + $0x1d0] sm:$0xff] %vm552_vm2, %v2470_v42 }
 0x260   :  { %v2383_v23 = vpop.f32.mrf.mxu1 }
 0x261   :  { %v2473_v63 = vpop.f32.mrf.mxu3  ;;  %2517 = vst.msk [vmem:[%s5568_s4 + $0xe8] sm:$0xff] %vm552_vm2, %v2383_v23 }
 0x262   :  { %2547 = vst.msk [vmem:[%s5568_s4 + $0x1d8] sm:$0xff] %vm552_vm2, %v2473_v63 }
 0x268   :  { %v2386_v36 = vpop.f32.mrf.mxu1 }
 0x269   :  { %v2476_v48 = vpop.f32.mrf.mxu3  ;;  %2518 = vst.msk [vmem:[%s5568_s4 + $0xf0] sm:$0xff] %vm552_vm2, %v2386_v36 }
 0x26a   :  { %2548 = vst.msk [vmem:[%s5568_s4 + $0x1e0] sm:$0xff] %vm552_vm2, %v2476_v48 }
 0x270   :  { %v2389_v12 = vpop.f32.mrf.mxu1 }
 0x271   :  { %v2479_v1 = vpop.f32.mrf.mxu3  ;;  %2519 = vst.msk [vmem:[%s5568_s4 + $0xf8] sm:$0xff] %vm552_vm2, %v2389_v12 }
 0x272   :  { %2549 = vst.msk [vmem:[%s5568_s4 + $0x1e8] sm:$0xff] %vm552_vm2, %v2479_v1 }
 0x279   :  { %v2482_v54 = vpop.f32.mrf.mxu3 }
 0x27a   :  { %2550 = vst.msk [vmem:[%s5568_s4 + $0x1f0] sm:$0xff] %vm552_vm2, %v2482_v54 }
 0x281   :  { %v2485_v45 = vpop.f32.mrf.mxu3 }
 0x282   :  { %2551 = vst.msk [vmem:[%s5568_s4 + $0x1f8] sm:$0xff] %vm552_vm2, %v2485_v45 }

</bundles_post_ra>
